<compile_context>
chip_gen: v7x
topology: tpu7x:2x2x1
jax: 0.10.0
libtpu: 0.0.40
codegen_flags: <defaults>
</compile_context>

<pallas_src>
import jax
import jax.numpy as jnp
from jax import lax
from jax.experimental import pallas as pl
from jax.experimental.pallas import tpu as pltpu

# ----------------------------- model hyperparams -----------------------------
B = 2            # batch
L = 8            # sequence length
D_MODEL = 64     # d_word_vec == d_model
N_LAYERS = 2
N_HEAD = 2
D_K = 64
D_V = 64
D_INNER = 1024
N_POSITION = 200
EPS = 1e-6
HK = N_HEAD * D_K          # 128
HV = N_HEAD * D_V          # 128


# --------------------------------- helpers -----------------------------------
def _ln(x, g, b):
    """LayerNorm over the last axis (biased variance, like nn.LayerNorm). f32."""
    mu = jnp.mean(x, axis=-1, keepdims=True)
    var = jnp.mean((x - mu) ** 2, axis=-1, keepdims=True)
    return (x - mu) * lax.rsqrt(var + EPS) * g + b


def sinusoid_table(n_position, d_hid):
    pos = jnp.arange(n_position, dtype=jnp.float32)[:, None]
    hid = jnp.arange(d_hid, dtype=jnp.float32)[None, :]
    angle = pos / jnp.power(10000.0, 2.0 * jnp.floor(hid / 2.0) / d_hid)
    even = jnp.sin(angle)
    odd = jnp.cos(angle)
    is_even = (jnp.arange(d_hid) % 2 == 0)[None, :]
    table = jnp.where(is_even, even, odd)
    return table[None]  # (1, n_position, d_hid)


# ------------------------------ fused kernel ----------------------------------
def fused_encoder_kernel(x_ref, pos_ref, mask_ref,
                         wqkv_ref, wo_ref,
                         ln1g_ref, ln1b_ref,
                         w1_ref, b1_ref, w2_ref, b2_ref,
                         ln2g_ref, ln2b_ref,
                         fg_ref, fb_ref,
                         o_ref):
    # posenc add; (B, L, D) -> (B*L, D) is a pure leading-dim merge (layout-free).
    x = (x_ref[...] + pos_ref[...]).reshape(B * L, D_MODEL)      # f32 residual path
    # additive attention bias: 0.0 keep / -1e9 masked, per batch: (B, 1, L)
    bias = (mask_ref[...] - 1.0) * 1e9

    for layer in range(N_LAYERS):        # static unroll; weights VMEM-resident
        wqkv = wqkv_ref[layer]           # (D, 3*H*Dk)  bf16, Wq pre-scaled 1/sqrt(Dk)
        wo = wo_ref[layer]               # (H*Dv, D)    bf16
        w1 = w1_ref[layer]               # (D, D_INNER) bf16
        w2 = w2_ref[layer]               # (D_INNER, D) bf16

        # ---- fused Q/K/V projection: one bf16 MXU matmul, f32 accumulation ----
        qkv = jnp.dot(x.astype(jnp.bfloat16), wqkv,
                      preferred_element_type=jnp.float32)        # (B*L, 384) f32
        qkv = qkv.astype(jnp.bfloat16)   # operands for the attention dots
        q = qkv[:, 0:HK]                 # lanes   0:128  (vreg-aligned, free)
        k = qkv[:, HK:2 * HK]            # lanes 128:256  (vreg-aligned, free)
        v = qkv[:, 2 * HK:3 * HK]        # lanes 256:384  (vreg-aligned, free)

        # ---- per-batch multi-head attention (L=8 rows = one sublane tile) ----
        rows = []
        for b in range(B):               # static unroll
            qb = q[b * L:(b + 1) * L]
            kb = k[b * L:(b + 1) * L]
            vb = v[b * L:(b + 1) * L]
            bias_b = bias[b]             # (1, L) f32, broadcast over key axis
            ctx = None
            for h in range(N_HEAD):      # static unroll; no head concat / relayout
                qh = qb[:, h * D_K:(h + 1) * D_K]
                kh = kb[:, h * D_K:(h + 1) * D_K]
                vh = vb[:, h * D_V:(h + 1) * D_V]
                # scale folded into Wq -> plain q @ k^T
                s = lax.dot_general(qh, kh, (((1,), (1,)), ((), ())),
                                    preferred_element_type=jnp.float32) + bias_b
                m = jnp.max(s, axis=-1, keepdims=True)
                e = jnp.exp(s - m)
                inv = pl.reciprocal(jnp.sum(e, axis=-1, keepdims=True), approx=True)
                p = (e * inv).astype(jnp.bfloat16)                       # softmax
                oh = jnp.dot(p, vh,
                             preferred_element_type=jnp.float32).astype(jnp.bfloat16)
                # concat(heads) @ Wo == sum_h head_h @ Wo[h*Dv:(h+1)*Dv, :]
                ctb = jnp.dot(oh, wo[h * D_V:(h + 1) * D_V, :],
                              preferred_element_type=jnp.float32)
                ctx = ctb if ctx is None else ctx + ctb
            rows.append(ctx)
        attn_out = jnp.concatenate(rows, axis=0)                 # (B*L, D) f32

        h1 = _ln(attn_out + x, ln1g_ref[layer], ln1b_ref[layer])  # residual + LN (f32)

        # ---- position-wise feed-forward (bf16 matmul operands, f32 math) ----
        f = jnp.dot(h1.astype(jnp.bfloat16), w1,
                    preferred_element_type=jnp.float32) + b1_ref[layer]
        f = jnp.maximum(f, 0.0)
        f = jnp.dot(f.astype(jnp.bfloat16), w2,
                    preferred_element_type=jnp.float32) + b2_ref[layer]
        x = _ln(f + h1, ln2g_ref[layer], ln2b_ref[layer])         # residual + LN (f32)

    y = _ln(x, fg_ref[...], fb_ref[...])                          # final LayerNorm
    o_ref[...] = y.reshape(B, L, D_MODEL)


# --------------------------------- wrapper ------------------------------------
@jax.jit
def self_attention_forward(word_emb, src_mask, pos_table, stacked,
                           final_g, final_b):
    Bb, Ll, Dd = word_emb.shape
    vmem = pl.BlockSpec(memory_space=pltpu.MemorySpace.VMEM)   # whole array in VMEM
    args = (word_emb, pos_table, src_mask,
            stacked["wqkv"], stacked["wo"],
            stacked["ln1g"], stacked["ln1b"],
            stacked["w1"], stacked["b1"], stacked["w2"], stacked["b2"],
            stacked["ln2g"], stacked["ln2b"],
            final_g, final_b)
    return pl.pallas_call(
        fused_encoder_kernel,
        out_shape=jax.ShapeDtypeStruct((Bb, Ll, Dd), jnp.float32),
        in_specs=[vmem] * len(args),
        out_specs=vmem,
    )(*args)


# ----------------------------- pure-JAX reference -----------------------------
def _ln_ref(x, g, b):
    mu = x.mean(-1, keepdims=True)
    var = ((x - mu) ** 2).mean(-1, keepdims=True)
    return (x - mu) / jnp.sqrt(var + EPS) * g + b


def ref_forward(word_emb, mask, pos_table, layer_params, final_g, final_b):
    x = word_emb + pos_table
    for p in layer_params:
        wq = p["wq"].astype(jnp.float32); wk = p["wk"].astype(jnp.float32)
        wv = p["wv"].astype(jnp.float32); wo = p["wo"].astype(jnp.float32)
        w1 = p["w1"].astype(jnp.float32); w2 = p["w2"].astype(jnp.float32)
        q = x @ wq; k = x @ wk; v = x @ wv
        split = lambda t, dh: t.reshape(B, L, N_HEAD, dh).transpose(0, 2, 1, 3)
        qh, kh, vh = split(q, D_K), split(k, D_K), split(v, D_V)
        scores = jnp.einsum("bhqd,bhkd->bhqk", qh, kh) / (D_K ** 0.5)
        scores = jnp.where(mask[:, None, :, :] == 0.0, -1e9, scores)
        attn = jax.nn.softmax(scores, axis=-1)
        out = jnp.einsum("bhqk,bhkd->bhqd", attn, vh)
        out = out.transpose(0, 2, 1, 3).reshape(B, L, N_HEAD * D_V)
        h1 = _ln_ref(out @ wo + x, p["ln1g"], p["ln1b"])
        f = jnp.maximum(h1 @ w1 + p["b1"], 0.0) @ w2 + p["b2"]
        x = _ln_ref(f + h1, p["ln2g"], p["ln2b"])
    return _ln_ref(x, final_g, final_b)


# ----------------------------------- params -----------------------------------
def make_params(key):
    def nrm(k, shape, scale=0.05):
        return (scale * jax.random.normal(k, shape)).astype(jnp.float32)

    layer_params = []
    for _ in range(N_LAYERS):
        key, *ks = jax.random.split(key, 13)
        layer_params.append(dict(
            wq=nrm(ks[0], (D_MODEL, N_HEAD * D_K)).astype(jnp.bfloat16),
            wk=nrm(ks[1], (D_MODEL, N_HEAD * D_K)).astype(jnp.bfloat16),
            wv=nrm(ks[2], (D_MODEL, N_HEAD * D_V)).astype(jnp.bfloat16),
            wo=nrm(ks[3], (N_HEAD * D_V, D_MODEL)).astype(jnp.bfloat16),
            ln1g=1.0 + nrm(ks[4], (1, D_MODEL), 0.1),
            ln1b=nrm(ks[5], (1, D_MODEL), 0.1),
            w1=nrm(ks[6], (D_MODEL, D_INNER)).astype(jnp.bfloat16),
            b1=nrm(ks[7], (1, D_INNER)),
            w2=nrm(ks[8], (D_INNER, D_MODEL)).astype(jnp.bfloat16),
            b2=nrm(ks[9], (1, D_MODEL)),
            ln2g=1.0 + nrm(ks[10], (1, D_MODEL), 0.1),
            ln2b=nrm(ks[11], (1, D_MODEL), 0.1),
        ))
    key, kg, kb = jax.random.split(key, 3)
    final_g = 1.0 + nrm(kg, (1, D_MODEL), 0.1)
    final_b = nrm(kb, (1, D_MODEL), 0.1)
    return key, layer_params, final_g, final_b


def stack_params(layer_params):
    """Kernel-format parameters: fused, pre-scaled QKV (bf16) + stacked rest."""
    scale = 1.0 / (D_K ** 0.5)   # 1/8 = power of two -> exact fold in bf16
    out = {
        "wqkv": jnp.stack([jnp.concatenate([p["wq"] * scale, p["wk"], p["wv"]],
                                           axis=-1) for p in layer_params]),
        "wo": jnp.stack([p["wo"] for p in layer_params]),
        "w1": jnp.stack([p["w1"] for p in layer_params]),
        "w2": jnp.stack([p["w2"] for p in layer_params]),
        "b1": jnp.stack([p["b1"] for p in layer_params]),
        "b2": jnp.stack([p["b2"] for p in layer_params]),
        "ln1g": jnp.stack([p["ln1g"] for p in layer_params]),
        "ln1b": jnp.stack([p["ln1b"] for p in layer_params]),
        "ln2g": jnp.stack([p["ln2g"] for p in layer_params]),
        "ln2b": jnp.stack([p["ln2b"] for p in layer_params]),
    }
    return out


# ----------------------------------- main -------------------------------------
if __name__ == "__main__":
    key = jax.random.PRNGKey(0)
    key, layer_params, final_g, final_b = make_params(key)
    stacked = stack_params(layer_params)          # kernel-format parameters

    key, kx = jax.random.split(key)
    word_emb = jax.random.normal(kx, (B, L, D_MODEL), dtype=jnp.float32)
    # padding mask: batch 1 has its last two positions masked out
    src_mask = jnp.ones((B, 1, L), dtype=jnp.float32).at[1, 0, L - 2:].set(0.0)

    pos_table = sinusoid_table(N_POSITION, D_MODEL)[:, :L, :]  # (1, L, D)

    out = self_attention_forward(word_emb, src_mask, pos_table, stacked,
                                 final_g, final_b)
    out = jax.block_until_ready(out)

    ref = ref_forward(word_emb, src_mask, pos_table, layer_params,
                      final_g, final_b)
    assert out.shape == (B, L, D_MODEL)
    # Deliberate inference-precision trade (per review): bf16 matmul operands
    # feeding the bf16-native MXU + approx-reciprocal softmax; LN/softmax/
    # residuals stay f32.  Reference uses the same bf16 weight values in f32 math.
    assert jnp.allclose(out, ref, atol=2e-2, rtol=2e-2), "mismatch vs JAX reference"

    print("KERNEL_OK")
</pallas_src>

<mosaic_0001>
module attributes {stable_mosaic.version = 11 : i64} {
  func.func @fused_encoder_kernel(%arg0: memref<2x8x64xf32, #tpu.memory_space<vmem>>, %arg1: memref<1x8x64xf32, #tpu.memory_space<vmem>>, %arg2: memref<2x1x8xf32, #tpu.memory_space<vmem>>, %arg3: memref<2x64x384xbf16, #tpu.memory_space<vmem>>, %arg4: memref<2x128x64xbf16, #tpu.memory_space<vmem>>, %arg5: memref<2x1x64xf32, #tpu.memory_space<vmem>>, %arg6: memref<2x1x64xf32, #tpu.memory_space<vmem>>, %arg7: memref<2x64x1024xbf16, #tpu.memory_space<vmem>>, %arg8: memref<2x1x1024xf32, #tpu.memory_space<vmem>>, %arg9: memref<2x1024x64xbf16, #tpu.memory_space<vmem>>, %arg10: memref<2x1x64xf32, #tpu.memory_space<vmem>>, %arg11: memref<2x1x64xf32, #tpu.memory_space<vmem>>, %arg12: memref<2x1x64xf32, #tpu.memory_space<vmem>>, %arg13: memref<1x64xf32, #tpu.memory_space<vmem>>, %arg14: memref<1x64xf32, #tpu.memory_space<vmem>>, %arg15: memref<2x8x64xf32, #tpu.memory_space<vmem>>) attributes {dimension_semantics = [], scalar_prefetch = 0 : i64, scratch_operands = 0 : i64, tpu.core_type = #tpu.core_type<tc>} {
    %c0 = arith.constant 0 : index
    %c0_0 = arith.constant 0 : index
    %c0_1 = arith.constant 0 : index
    %0 = vector.load %arg0[%c0, %c0_0, %c0_1] : memref<2x8x64xf32, #tpu.memory_space<vmem>>, vector<2x8x64xf32>
    %c0_2 = arith.constant 0 : index
    %c0_3 = arith.constant 0 : index
    %c0_4 = arith.constant 0 : index
    %1 = vector.load %arg1[%c0_2, %c0_3, %c0_4] : memref<1x8x64xf32, #tpu.memory_space<vmem>>, vector<1x8x64xf32>
    %2 = vector.broadcast %1 : vector<1x8x64xf32> to vector<2x8x64xf32>
    %3 = arith.addf %0, %2 : vector<2x8x64xf32>
    %4 = vector.shape_cast %3 : vector<2x8x64xf32> to vector<16x64xf32>
    %c0_5 = arith.constant 0 : index
    %c0_6 = arith.constant 0 : index
    %c0_7 = arith.constant 0 : index
    %5 = vector.load %arg2[%c0_5, %c0_6, %c0_7] : memref<2x1x8xf32, #tpu.memory_space<vmem>>, vector<2x1x8xf32>
    %cst = arith.constant 1.000000e+00 : f32
    %6 = vector.broadcast %cst : f32 to vector<2x1x8xf32>
    %7 = arith.subf %5, %6 : vector<2x1x8xf32>
    %cst_8 = arith.constant 1.000000e+09 : f32
    %8 = vector.broadcast %cst_8 : f32 to vector<2x1x8xf32>
    %9 = arith.mulf %7, %8 : vector<2x1x8xf32>
    %c0_9 = arith.constant 0 : index
    %c0_10 = arith.constant 0 : index
    %c0_11 = arith.constant 0 : index
    %10 = vector.load %arg3[%c0_9, %c0_10, %c0_11] : memref<2x64x384xbf16, #tpu.memory_space<vmem>>, vector<1x64x384xbf16>
    %11 = vector.shape_cast %10 : vector<1x64x384xbf16> to vector<64x384xbf16>
    %c0_12 = arith.constant 0 : index
    %c0_13 = arith.constant 0 : index
    %c0_14 = arith.constant 0 : index
    %12 = vector.load %arg4[%c0_12, %c0_13, %c0_14] : memref<2x128x64xbf16, #tpu.memory_space<vmem>>, vector<1x128x64xbf16>
    %13 = vector.shape_cast %12 : vector<1x128x64xbf16> to vector<128x64xbf16>
    %c0_15 = arith.constant 0 : index
    %c0_16 = arith.constant 0 : index
    %c0_17 = arith.constant 0 : index
    %14 = vector.load %arg7[%c0_15, %c0_16, %c0_17] : memref<2x64x1024xbf16, #tpu.memory_space<vmem>>, vector<1x64x1024xbf16>
    %15 = vector.shape_cast %14 : vector<1x64x1024xbf16> to vector<64x1024xbf16>
    %c0_18 = arith.constant 0 : index
    %c0_19 = arith.constant 0 : index
    %c0_20 = arith.constant 0 : index
    %16 = vector.load %arg9[%c0_18, %c0_19, %c0_20] : memref<2x1024x64xbf16, #tpu.memory_space<vmem>>, vector<1x1024x64xbf16>
    %17 = vector.shape_cast %16 : vector<1x1024x64xbf16> to vector<1024x64xbf16>
    %18 = arith.truncf %4 : vector<16x64xf32> to vector<16x64xbf16>
    %cst_21 = arith.constant dense<0.000000e+00> : vector<16x384xf32>
    %19 = tpu.matmul %18, %11, %cst_21 {dimension_numbers = #tpu.dot_dimension_numbers<[1], [0], [0], [1], [0, 0, 1, 1], [], []>} : vector<16x64xbf16>, vector<64x384xbf16>, vector<16x384xf32> -> vector<16x384xf32>
    %20 = arith.truncf %19 : vector<16x384xf32> to vector<16x384xbf16>
    %21 = vector.extract_strided_slice %20 {offsets = [0, 0], sizes = [16, 128], strides = [1, 1]} : vector<16x384xbf16> to vector<16x128xbf16>
    %22 = vector.extract_strided_slice %20 {offsets = [0, 128], sizes = [16, 128], strides = [1, 1]} : vector<16x384xbf16> to vector<16x128xbf16>
    %23 = vector.extract_strided_slice %20 {offsets = [0, 256], sizes = [16, 128], strides = [1, 1]} : vector<16x384xbf16> to vector<16x128xbf16>
    %24 = vector.extract_strided_slice %21 {offsets = [0, 0], sizes = [8, 128], strides = [1, 1]} : vector<16x128xbf16> to vector<8x128xbf16>
    %25 = vector.extract_strided_slice %22 {offsets = [0, 0], sizes = [8, 128], strides = [1, 1]} : vector<16x128xbf16> to vector<8x128xbf16>
    %26 = vector.extract_strided_slice %23 {offsets = [0, 0], sizes = [8, 128], strides = [1, 1]} : vector<16x128xbf16> to vector<8x128xbf16>
    %27 = vector.extract_strided_slice %9 {offsets = [0, 0, 0], sizes = [1, 1, 8], strides = [1, 1, 1]} : vector<2x1x8xf32> to vector<1x1x8xf32>
    %28 = vector.shape_cast %27 : vector<1x1x8xf32> to vector<1x8xf32>
    %29 = vector.extract_strided_slice %24 {offsets = [0, 0], sizes = [8, 64], strides = [1, 1]} : vector<8x128xbf16> to vector<8x64xbf16>
    %30 = vector.extract_strided_slice %25 {offsets = [0, 0], sizes = [8, 64], strides = [1, 1]} : vector<8x128xbf16> to vector<8x64xbf16>
    %31 = vector.extract_strided_slice %26 {offsets = [0, 0], sizes = [8, 64], strides = [1, 1]} : vector<8x128xbf16> to vector<8x64xbf16>
    %cst_22 = arith.constant dense<0.000000e+00> : vector<8x8xf32>
    %32 = tpu.matmul %29, %30, %cst_22 {dimension_numbers = #tpu.dot_dimension_numbers<[1], [1], [0], [0], [0, 0, 1, 0], [], []>} : vector<8x64xbf16>, vector<8x64xbf16>, vector<8x8xf32> -> vector<8x8xf32>
    %33 = vector.broadcast %28 : vector<1x8xf32> to vector<8x8xf32>
    %34 = arith.addf %32, %33 : vector<8x8xf32>
    %cst_23 = arith.constant dense<0xFF800000> : vector<8xf32>
    %35 = vector.multi_reduction <maximumf>, %34, %cst_23 [1] : vector<8x8xf32> to vector<8xf32>
    %36 = vector.shape_cast %35 : vector<8xf32> to vector<8x1xf32>
    %37 = vector.broadcast %36 : vector<8x1xf32> to vector<8x8xf32>
    %38 = arith.subf %34, %37 : vector<8x8xf32>
    %39 = math.exp %38 : vector<8x8xf32>
    %cst_24 = arith.constant dense<0.000000e+00> : vector<8xf32>
    %40 = vector.multi_reduction <add>, %39, %cst_24 [1] : vector<8x8xf32> to vector<8xf32>
    %41 = vector.shape_cast %40 : vector<8xf32> to vector<8x1xf32>
    %42 = tpu.reciprocal %41 {approx = true} : vector<8x1xf32> -> vector<8x1xf32>
    %43 = vector.broadcast %42 : vector<8x1xf32> to vector<8x8xf32>
    %44 = arith.mulf %39, %43 : vector<8x8xf32>
    %45 = arith.truncf %44 : vector<8x8xf32> to vector<8x8xbf16>
    %cst_25 = arith.constant dense<0.000000e+00> : vector<8x64xf32>
    %46 = tpu.matmul %45, %31, %cst_25 {dimension_numbers = #tpu.dot_dimension_numbers<[1], [0], [0], [1], [0, 0, 1, 1], [], []>} : vector<8x8xbf16>, vector<8x64xbf16>, vector<8x64xf32> -> vector<8x64xf32>
    %47 = arith.truncf %46 : vector<8x64xf32> to vector<8x64xbf16>
    %48 = vector.extract_strided_slice %13 {offsets = [0, 0], sizes = [64, 64], strides = [1, 1]} : vector<128x64xbf16> to vector<64x64xbf16>
    %cst_26 = arith.constant dense<0.000000e+00> : vector<8x64xf32>
    %49 = tpu.matmul %47, %48, %cst_26 {dimension_numbers = #tpu.dot_dimension_numbers<[1], [0], [0], [1], [0, 0, 1, 1], [], []>} : vector<8x64xbf16>, vector<64x64xbf16>, vector<8x64xf32> -> vector<8x64xf32>
    %50 = vector.extract_strided_slice %24 {offsets = [0, 64], sizes = [8, 64], strides = [1, 1]} : vector<8x128xbf16> to vector<8x64xbf16>
    %51 = vector.extract_strided_slice %25 {offsets = [0, 64], sizes = [8, 64], strides = [1, 1]} : vector<8x128xbf16> to vector<8x64xbf16>
    %52 = vector.extract_strided_slice %26 {offsets = [0, 64], sizes = [8, 64], strides = [1, 1]} : vector<8x128xbf16> to vector<8x64xbf16>
    %cst_27 = arith.constant dense<0.000000e+00> : vector<8x8xf32>
    %53 = tpu.matmul %50, %51, %cst_27 {dimension_numbers = #tpu.dot_dimension_numbers<[1], [1], [0], [0], [0, 0, 1, 0], [], []>} : vector<8x64xbf16>, vector<8x64xbf16>, vector<8x8xf32> -> vector<8x8xf32>
    %54 = vector.broadcast %28 : vector<1x8xf32> to vector<8x8xf32>
    %55 = arith.addf %53, %54 : vector<8x8xf32>
    %cst_28 = arith.constant dense<0xFF800000> : vector<8xf32>
    %56 = vector.multi_reduction <maximumf>, %55, %cst_28 [1] : vector<8x8xf32> to vector<8xf32>
    %57 = vector.shape_cast %56 : vector<8xf32> to vector<8x1xf32>
    %58 = vector.broadcast %57 : vector<8x1xf32> to vector<8x8xf32>
    %59 = arith.subf %55, %58 : vector<8x8xf32>
    %60 = math.exp %59 : vector<8x8xf32>
    %cst_29 = arith.constant dense<0.000000e+00> : vector<8xf32>
    %61 = vector.multi_reduction <add>, %60, %cst_29 [1] : vector<8x8xf32> to vector<8xf32>
    %62 = vector.shape_cast %61 : vector<8xf32> to vector<8x1xf32>
    %63 = tpu.reciprocal %62 {approx = true} : vector<8x1xf32> -> vector<8x1xf32>
    %64 = vector.broadcast %63 : vector<8x1xf32> to vector<8x8xf32>
    %65 = arith.mulf %60, %64 : vector<8x8xf32>
    %66 = arith.truncf %65 : vector<8x8xf32> to vector<8x8xbf16>
    %cst_30 = arith.constant dense<0.000000e+00> : vector<8x64xf32>
    %67 = tpu.matmul %66, %52, %cst_30 {dimension_numbers = #tpu.dot_dimension_numbers<[1], [0], [0], [1], [0, 0, 1, 1], [], []>} : vector<8x8xbf16>, vector<8x64xbf16>, vector<8x64xf32> -> vector<8x64xf32>
    %68 = arith.truncf %67 : vector<8x64xf32> to vector<8x64xbf16>
    %69 = vector.extract_strided_slice %13 {offsets = [64, 0], sizes = [64, 64], strides = [1, 1]} : vector<128x64xbf16> to vector<64x64xbf16>
    %cst_31 = arith.constant dense<0.000000e+00> : vector<8x64xf32>
    %70 = tpu.matmul %68, %69, %cst_31 {dimension_numbers = #tpu.dot_dimension_numbers<[1], [0], [0], [1], [0, 0, 1, 1], [], []>} : vector<8x64xbf16>, vector<64x64xbf16>, vector<8x64xf32> -> vector<8x64xf32>
    %71 = arith.addf %49, %70 : vector<8x64xf32>
    %72 = vector.extract_strided_slice %21 {offsets = [8, 0], sizes = [8, 128], strides = [1, 1]} : vector<16x128xbf16> to vector<8x128xbf16>
    %73 = vector.extract_strided_slice %22 {offsets = [8, 0], sizes = [8, 128], strides = [1, 1]} : vector<16x128xbf16> to vector<8x128xbf16>
    %74 = vector.extract_strided_slice %23 {offsets = [8, 0], sizes = [8, 128], strides = [1, 1]} : vector<16x128xbf16> to vector<8x128xbf16>
    %75 = vector.extract_strided_slice %9 {offsets = [1, 0, 0], sizes = [1, 1, 8], strides = [1, 1, 1]} : vector<2x1x8xf32> to vector<1x1x8xf32>
    %76 = vector.shape_cast %75 : vector<1x1x8xf32> to vector<1x8xf32>
    %77 = vector.extract_strided_slice %72 {offsets = [0, 0], sizes = [8, 64], strides = [1, 1]} : vector<8x128xbf16> to vector<8x64xbf16>
    %78 = vector.extract_strided_slice %73 {offsets = [0, 0], sizes = [8, 64], strides = [1, 1]} : vector<8x128xbf16> to vector<8x64xbf16>
    %79 = vector.extract_strided_slice %74 {offsets = [0, 0], sizes = [8, 64], strides = [1, 1]} : vector<8x128xbf16> to vector<8x64xbf16>
    %cst_32 = arith.constant dense<0.000000e+00> : vector<8x8xf32>
    %80 = tpu.matmul %77, %78, %cst_32 {dimension_numbers = #tpu.dot_dimension_numbers<[1], [1], [0], [0], [0, 0, 1, 0], [], []>} : vector<8x64xbf16>, vector<8x64xbf16>, vector<8x8xf32> -> vector<8x8xf32>
    %81 = vector.broadcast %76 : vector<1x8xf32> to vector<8x8xf32>
    %82 = arith.addf %80, %81 : vector<8x8xf32>
    %cst_33 = arith.constant dense<0xFF800000> : vector<8xf32>
    %83 = vector.multi_reduction <maximumf>, %82, %cst_33 [1] : vector<8x8xf32> to vector<8xf32>
    %84 = vector.shape_cast %83 : vector<8xf32> to vector<8x1xf32>
    %85 = vector.broadcast %84 : vector<8x1xf32> to vector<8x8xf32>
    %86 = arith.subf %82, %85 : vector<8x8xf32>
    %87 = math.exp %86 : vector<8x8xf32>
    %cst_34 = arith.constant dense<0.000000e+00> : vector<8xf32>
    %88 = vector.multi_reduction <add>, %87, %cst_34 [1] : vector<8x8xf32> to vector<8xf32>
    %89 = vector.shape_cast %88 : vector<8xf32> to vector<8x1xf32>
    %90 = tpu.reciprocal %89 {approx = true} : vector<8x1xf32> -> vector<8x1xf32>
    %91 = vector.broadcast %90 : vector<8x1xf32> to vector<8x8xf32>
    %92 = arith.mulf %87, %91 : vector<8x8xf32>
    %93 = arith.truncf %92 : vector<8x8xf32> to vector<8x8xbf16>
    %cst_35 = arith.constant dense<0.000000e+00> : vector<8x64xf32>
    %94 = tpu.matmul %93, %79, %cst_35 {dimension_numbers = #tpu.dot_dimension_numbers<[1], [0], [0], [1], [0, 0, 1, 1], [], []>} : vector<8x8xbf16>, vector<8x64xbf16>, vector<8x64xf32> -> vector<8x64xf32>
    %95 = arith.truncf %94 : vector<8x64xf32> to vector<8x64xbf16>
    %96 = vector.extract_strided_slice %13 {offsets = [0, 0], sizes = [64, 64], strides = [1, 1]} : vector<128x64xbf16> to vector<64x64xbf16>
    %cst_36 = arith.constant dense<0.000000e+00> : vector<8x64xf32>
    %97 = tpu.matmul %95, %96, %cst_36 {dimension_numbers = #tpu.dot_dimension_numbers<[1], [0], [0], [1], [0, 0, 1, 1], [], []>} : vector<8x64xbf16>, vector<64x64xbf16>, vector<8x64xf32> -> vector<8x64xf32>
    %98 = vector.extract_strided_slice %72 {offsets = [0, 64], sizes = [8, 64], strides = [1, 1]} : vector<8x128xbf16> to vector<8x64xbf16>
    %99 = vector.extract_strided_slice %73 {offsets = [0, 64], sizes = [8, 64], strides = [1, 1]} : vector<8x128xbf16> to vector<8x64xbf16>
    %100 = vector.extract_strided_slice %74 {offsets = [0, 64], sizes = [8, 64], strides = [1, 1]} : vector<8x128xbf16> to vector<8x64xbf16>
    %cst_37 = arith.constant dense<0.000000e+00> : vector<8x8xf32>
    %101 = tpu.matmul %98, %99, %cst_37 {dimension_numbers = #tpu.dot_dimension_numbers<[1], [1], [0], [0], [0, 0, 1, 0], [], []>} : vector<8x64xbf16>, vector<8x64xbf16>, vector<8x8xf32> -> vector<8x8xf32>
    %102 = vector.broadcast %76 : vector<1x8xf32> to vector<8x8xf32>
    %103 = arith.addf %101, %102 : vector<8x8xf32>
    %cst_38 = arith.constant dense<0xFF800000> : vector<8xf32>
    %104 = vector.multi_reduction <maximumf>, %103, %cst_38 [1] : vector<8x8xf32> to vector<8xf32>
    %105 = vector.shape_cast %104 : vector<8xf32> to vector<8x1xf32>
    %106 = vector.broadcast %105 : vector<8x1xf32> to vector<8x8xf32>
    %107 = arith.subf %103, %106 : vector<8x8xf32>
    %108 = math.exp %107 : vector<8x8xf32>
    %cst_39 = arith.constant dense<0.000000e+00> : vector<8xf32>
    %109 = vector.multi_reduction <add>, %108, %cst_39 [1] : vector<8x8xf32> to vector<8xf32>
    %110 = vector.shape_cast %109 : vector<8xf32> to vector<8x1xf32>
    %111 = tpu.reciprocal %110 {approx = true} : vector<8x1xf32> -> vector<8x1xf32>
    %112 = vector.broadcast %111 : vector<8x1xf32> to vector<8x8xf32>
    %113 = arith.mulf %108, %112 : vector<8x8xf32>
    %114 = arith.truncf %113 : vector<8x8xf32> to vector<8x8xbf16>
    %cst_40 = arith.constant dense<0.000000e+00> : vector<8x64xf32>
    %115 = tpu.matmul %114, %100, %cst_40 {dimension_numbers = #tpu.dot_dimension_numbers<[1], [0], [0], [1], [0, 0, 1, 1], [], []>} : vector<8x8xbf16>, vector<8x64xbf16>, vector<8x64xf32> -> vector<8x64xf32>
    %116 = arith.truncf %115 : vector<8x64xf32> to vector<8x64xbf16>
    %117 = vector.extract_strided_slice %13 {offsets = [64, 0], sizes = [64, 64], strides = [1, 1]} : vector<128x64xbf16> to vector<64x64xbf16>
    %cst_41 = arith.constant dense<0.000000e+00> : vector<8x64xf32>
    %118 = tpu.matmul %116, %117, %cst_41 {dimension_numbers = #tpu.dot_dimension_numbers<[1], [0], [0], [1], [0, 0, 1, 1], [], []>} : vector<8x64xbf16>, vector<64x64xbf16>, vector<8x64xf32> -> vector<8x64xf32>
    %119 = arith.addf %97, %118 : vector<8x64xf32>
    %120 = tpu.concatenate %71, %119 in 0 : vector<8x64xf32>, vector<8x64xf32> -> vector<16x64xf32>
    %121 = arith.addf %120, %4 : vector<16x64xf32>
    %c0_42 = arith.constant 0 : index
    %c0_43 = arith.constant 0 : index
    %c0_44 = arith.constant 0 : index
    %122 = vector.load %arg5[%c0_42, %c0_43, %c0_44] : memref<2x1x64xf32, #tpu.memory_space<vmem>>, vector<1x1x64xf32>
    %123 = vector.shape_cast %122 : vector<1x1x64xf32> to vector<1x64xf32>
    %c0_45 = arith.constant 0 : index
    %c0_46 = arith.constant 0 : index
    %c0_47 = arith.constant 0 : index
    %124 = vector.load %arg6[%c0_45, %c0_46, %c0_47] : memref<2x1x64xf32, #tpu.memory_space<vmem>>, vector<1x1x64xf32>
    %125 = vector.shape_cast %124 : vector<1x1x64xf32> to vector<1x64xf32>
    %cst_48 = arith.constant dense<0.000000e+00> : vector<16xf32>
    %126 = vector.multi_reduction <add>, %121, %cst_48 [1] : vector<16x64xf32> to vector<16xf32>
    %127 = vector.shape_cast %126 : vector<16xf32> to vector<16x1xf32>
    %cst_49 = arith.constant 6.400000e+01 : f32
    %128 = vector.broadcast %cst_49 : f32 to vector<16x1xf32>
    %129 = arith.divf %127, %128 : vector<16x1xf32>
    %130 = vector.broadcast %129 : vector<16x1xf32> to vector<16x64xf32>
    %131 = arith.subf %121, %130 : vector<16x64xf32>
    %132 = arith.mulf %131, %131 : vector<16x64xf32>
    %cst_50 = arith.constant dense<0.000000e+00> : vector<16xf32>
    %133 = vector.multi_reduction <add>, %132, %cst_50 [1] : vector<16x64xf32> to vector<16xf32>
    %134 = vector.shape_cast %133 : vector<16xf32> to vector<16x1xf32>
    %cst_51 = arith.constant 6.400000e+01 : f32
    %135 = vector.broadcast %cst_51 : f32 to vector<16x1xf32>
    %136 = arith.divf %134, %135 : vector<16x1xf32>
    %137 = vector.broadcast %129 : vector<16x1xf32> to vector<16x64xf32>
    %138 = arith.subf %121, %137 : vector<16x64xf32>
    %cst_52 = arith.constant 9.99999997E-7 : f32
    %139 = vector.broadcast %cst_52 : f32 to vector<16x1xf32>
    %140 = arith.addf %136, %139 : vector<16x1xf32>
    %141 = math.rsqrt %140 : vector<16x1xf32>
    %142 = vector.broadcast %141 : vector<16x1xf32> to vector<16x64xf32>
    %143 = arith.mulf %138, %142 : vector<16x64xf32>
    %144 = vector.broadcast %123 : vector<1x64xf32> to vector<16x64xf32>
    %145 = arith.mulf %143, %144 : vector<16x64xf32>
    %146 = vector.broadcast %125 : vector<1x64xf32> to vector<16x64xf32>
    %147 = arith.addf %145, %146 : vector<16x64xf32>
    %148 = arith.truncf %147 : vector<16x64xf32> to vector<16x64xbf16>
    %cst_53 = arith.constant dense<0.000000e+00> : vector<16x1024xf32>
    %149 = tpu.matmul %148, %15, %cst_53 {dimension_numbers = #tpu.dot_dimension_numbers<[1], [0], [0], [1], [0, 0, 1, 1], [], []>} : vector<16x64xbf16>, vector<64x1024xbf16>, vector<16x1024xf32> -> vector<16x1024xf32>
    %c0_54 = arith.constant 0 : index
    %c0_55 = arith.constant 0 : index
    %c0_56 = arith.constant 0 : index
    %150 = vector.load %arg8[%c0_54, %c0_55, %c0_56] : memref<2x1x1024xf32, #tpu.memory_space<vmem>>, vector<1x1x1024xf32>
    %151 = vector.shape_cast %150 : vector<1x1x1024xf32> to vector<1x1024xf32>
    %152 = vector.broadcast %151 : vector<1x1024xf32> to vector<16x1024xf32>
    %153 = arith.addf %149, %152 : vector<16x1024xf32>
    %cst_57 = arith.constant 0.000000e+00 : f32
    %154 = vector.broadcast %cst_57 : f32 to vector<16x1024xf32>
    %155 = arith.maximumf %153, %154 : vector<16x1024xf32>
    %156 = arith.truncf %155 : vector<16x1024xf32> to vector<16x1024xbf16>
    %cst_58 = arith.constant dense<0.000000e+00> : vector<16x64xf32>
    %157 = tpu.matmul %156, %17, %cst_58 {dimension_numbers = #tpu.dot_dimension_numbers<[1], [0], [0], [1], [0, 0, 1, 1], [], []>} : vector<16x1024xbf16>, vector<1024x64xbf16>, vector<16x64xf32> -> vector<16x64xf32>
    %c0_59 = arith.constant 0 : index
    %c0_60 = arith.constant 0 : index
    %c0_61 = arith.constant 0 : index
    %158 = vector.load %arg10[%c0_59, %c0_60, %c0_61] : memref<2x1x64xf32, #tpu.memory_space<vmem>>, vector<1x1x64xf32>
    %159 = vector.shape_cast %158 : vector<1x1x64xf32> to vector<1x64xf32>
    %160 = vector.broadcast %159 : vector<1x64xf32> to vector<16x64xf32>
    %161 = arith.addf %157, %160 : vector<16x64xf32>
    %162 = arith.addf %161, %147 : vector<16x64xf32>
    %c0_62 = arith.constant 0 : index
    %c0_63 = arith.constant 0 : index
    %c0_64 = arith.constant 0 : index
    %163 = vector.load %arg11[%c0_62, %c0_63, %c0_64] : memref<2x1x64xf32, #tpu.memory_space<vmem>>, vector<1x1x64xf32>
    %164 = vector.shape_cast %163 : vector<1x1x64xf32> to vector<1x64xf32>
    %c0_65 = arith.constant 0 : index
    %c0_66 = arith.constant 0 : index
    %c0_67 = arith.constant 0 : index
    %165 = vector.load %arg12[%c0_65, %c0_66, %c0_67] : memref<2x1x64xf32, #tpu.memory_space<vmem>>, vector<1x1x64xf32>
    %166 = vector.shape_cast %165 : vector<1x1x64xf32> to vector<1x64xf32>
    %cst_68 = arith.constant dense<0.000000e+00> : vector<16xf32>
    %167 = vector.multi_reduction <add>, %162, %cst_68 [1] : vector<16x64xf32> to vector<16xf32>
    %168 = vector.shape_cast %167 : vector<16xf32> to vector<16x1xf32>
    %cst_69 = arith.constant 6.400000e+01 : f32
    %169 = vector.broadcast %cst_69 : f32 to vector<16x1xf32>
    %170 = arith.divf %168, %169 : vector<16x1xf32>
    %171 = vector.broadcast %170 : vector<16x1xf32> to vector<16x64xf32>
    %172 = arith.subf %162, %171 : vector<16x64xf32>
    %173 = arith.mulf %172, %172 : vector<16x64xf32>
    %cst_70 = arith.constant dense<0.000000e+00> : vector<16xf32>
    %174 = vector.multi_reduction <add>, %173, %cst_70 [1] : vector<16x64xf32> to vector<16xf32>
    %175 = vector.shape_cast %174 : vector<16xf32> to vector<16x1xf32>
    %cst_71 = arith.constant 6.400000e+01 : f32
    %176 = vector.broadcast %cst_71 : f32 to vector<16x1xf32>
    %177 = arith.divf %175, %176 : vector<16x1xf32>
    %178 = vector.broadcast %170 : vector<16x1xf32> to vector<16x64xf32>
    %179 = arith.subf %162, %178 : vector<16x64xf32>
    %cst_72 = arith.constant 9.99999997E-7 : f32
    %180 = vector.broadcast %cst_72 : f32 to vector<16x1xf32>
    %181 = arith.addf %177, %180 : vector<16x1xf32>
    %182 = math.rsqrt %181 : vector<16x1xf32>
    %183 = vector.broadcast %182 : vector<16x1xf32> to vector<16x64xf32>
    %184 = arith.mulf %179, %183 : vector<16x64xf32>
    %185 = vector.broadcast %164 : vector<1x64xf32> to vector<16x64xf32>
    %186 = arith.mulf %184, %185 : vector<16x64xf32>
    %187 = vector.broadcast %166 : vector<1x64xf32> to vector<16x64xf32>
    %188 = arith.addf %186, %187 : vector<16x64xf32>
    %c1 = arith.constant 1 : index
    %c0_73 = arith.constant 0 : index
    %c0_74 = arith.constant 0 : index
    %189 = vector.load %arg3[%c1, %c0_73, %c0_74] : memref<2x64x384xbf16, #tpu.memory_space<vmem>>, vector<1x64x384xbf16>
    %190 = vector.shape_cast %189 : vector<1x64x384xbf16> to vector<64x384xbf16>
    %c1_75 = arith.constant 1 : index
    %c0_76 = arith.constant 0 : index
    %c0_77 = arith.constant 0 : index
    %191 = vector.load %arg4[%c1_75, %c0_76, %c0_77] : memref<2x128x64xbf16, #tpu.memory_space<vmem>>, vector<1x128x64xbf16>
    %192 = vector.shape_cast %191 : vector<1x128x64xbf16> to vector<128x64xbf16>
    %c1_78 = arith.constant 1 : index
    %c0_79 = arith.constant 0 : index
    %c0_80 = arith.constant 0 : index
    %193 = vector.load %arg7[%c1_78, %c0_79, %c0_80] : memref<2x64x1024xbf16, #tpu.memory_space<vmem>>, vector<1x64x1024xbf16>
    %194 = vector.shape_cast %193 : vector<1x64x1024xbf16> to vector<64x1024xbf16>
    %c1_81 = arith.constant 1 : index
    %c0_82 = arith.constant 0 : index
    %c0_83 = arith.constant 0 : index
    %195 = vector.load %arg9[%c1_81, %c0_82, %c0_83] : memref<2x1024x64xbf16, #tpu.memory_space<vmem>>, vector<1x1024x64xbf16>
    %196 = vector.shape_cast %195 : vector<1x1024x64xbf16> to vector<1024x64xbf16>
    %197 = arith.truncf %188 : vector<16x64xf32> to vector<16x64xbf16>
    %cst_84 = arith.constant dense<0.000000e+00> : vector<16x384xf32>
    %198 = tpu.matmul %197, %190, %cst_84 {dimension_numbers = #tpu.dot_dimension_numbers<[1], [0], [0], [1], [0, 0, 1, 1], [], []>} : vector<16x64xbf16>, vector<64x384xbf16>, vector<16x384xf32> -> vector<16x384xf32>
    %199 = arith.truncf %198 : vector<16x384xf32> to vector<16x384xbf16>
    %200 = vector.extract_strided_slice %199 {offsets = [0, 0], sizes = [16, 128], strides = [1, 1]} : vector<16x384xbf16> to vector<16x128xbf16>
    %201 = vector.extract_strided_slice %199 {offsets = [0, 128], sizes = [16, 128], strides = [1, 1]} : vector<16x384xbf16> to vector<16x128xbf16>
    %202 = vector.extract_strided_slice %199 {offsets = [0, 256], sizes = [16, 128], strides = [1, 1]} : vector<16x384xbf16> to vector<16x128xbf16>
    %203 = vector.extract_strided_slice %200 {offsets = [0, 0], sizes = [8, 128], strides = [1, 1]} : vector<16x128xbf16> to vector<8x128xbf16>
    %204 = vector.extract_strided_slice %201 {offsets = [0, 0], sizes = [8, 128], strides = [1, 1]} : vector<16x128xbf16> to vector<8x128xbf16>
    %205 = vector.extract_strided_slice %202 {offsets = [0, 0], sizes = [8, 128], strides = [1, 1]} : vector<16x128xbf16> to vector<8x128xbf16>
    %206 = vector.extract_strided_slice %9 {offsets = [0, 0, 0], sizes = [1, 1, 8], strides = [1, 1, 1]} : vector<2x1x8xf32> to vector<1x1x8xf32>
    %207 = vector.shape_cast %206 : vector<1x1x8xf32> to vector<1x8xf32>
    %208 = vector.extract_strided_slice %203 {offsets = [0, 0], sizes = [8, 64], strides = [1, 1]} : vector<8x128xbf16> to vector<8x64xbf16>
    %209 = vector.extract_strided_slice %204 {offsets = [0, 0], sizes = [8, 64], strides = [1, 1]} : vector<8x128xbf16> to vector<8x64xbf16>
    %210 = vector.extract_strided_slice %205 {offsets = [0, 0], sizes = [8, 64], strides = [1, 1]} : vector<8x128xbf16> to vector<8x64xbf16>
    %cst_85 = arith.constant dense<0.000000e+00> : vector<8x8xf32>
    %211 = tpu.matmul %208, %209, %cst_85 {dimension_numbers = #tpu.dot_dimension_numbers<[1], [1], [0], [0], [0, 0, 1, 0], [], []>} : vector<8x64xbf16>, vector<8x64xbf16>, vector<8x8xf32> -> vector<8x8xf32>
    %212 = vector.broadcast %207 : vector<1x8xf32> to vector<8x8xf32>
    %213 = arith.addf %211, %212 : vector<8x8xf32>
    %cst_86 = arith.constant dense<0xFF800000> : vector<8xf32>
    %214 = vector.multi_reduction <maximumf>, %213, %cst_86 [1] : vector<8x8xf32> to vector<8xf32>
    %215 = vector.shape_cast %214 : vector<8xf32> to vector<8x1xf32>
    %216 = vector.broadcast %215 : vector<8x1xf32> to vector<8x8xf32>
    %217 = arith.subf %213, %216 : vector<8x8xf32>
    %218 = math.exp %217 : vector<8x8xf32>
    %cst_87 = arith.constant dense<0.000000e+00> : vector<8xf32>
    %219 = vector.multi_reduction <add>, %218, %cst_87 [1] : vector<8x8xf32> to vector<8xf32>
    %220 = vector.shape_cast %219 : vector<8xf32> to vector<8x1xf32>
    %221 = tpu.reciprocal %220 {approx = true} : vector<8x1xf32> -> vector<8x1xf32>
    %222 = vector.broadcast %221 : vector<8x1xf32> to vector<8x8xf32>
    %223 = arith.mulf %218, %222 : vector<8x8xf32>
    %224 = arith.truncf %223 : vector<8x8xf32> to vector<8x8xbf16>
    %cst_88 = arith.constant dense<0.000000e+00> : vector<8x64xf32>
    %225 = tpu.matmul %224, %210, %cst_88 {dimension_numbers = #tpu.dot_dimension_numbers<[1], [0], [0], [1], [0, 0, 1, 1], [], []>} : vector<8x8xbf16>, vector<8x64xbf16>, vector<8x64xf32> -> vector<8x64xf32>
    %226 = arith.truncf %225 : vector<8x64xf32> to vector<8x64xbf16>
    %227 = vector.extract_strided_slice %192 {offsets = [0, 0], sizes = [64, 64], strides = [1, 1]} : vector<128x64xbf16> to vector<64x64xbf16>
    %cst_89 = arith.constant dense<0.000000e+00> : vector<8x64xf32>
    %228 = tpu.matmul %226, %227, %cst_89 {dimension_numbers = #tpu.dot_dimension_numbers<[1], [0], [0], [1], [0, 0, 1, 1], [], []>} : vector<8x64xbf16>, vector<64x64xbf16>, vector<8x64xf32> -> vector<8x64xf32>
    %229 = vector.extract_strided_slice %203 {offsets = [0, 64], sizes = [8, 64], strides = [1, 1]} : vector<8x128xbf16> to vector<8x64xbf16>
    %230 = vector.extract_strided_slice %204 {offsets = [0, 64], sizes = [8, 64], strides = [1, 1]} : vector<8x128xbf16> to vector<8x64xbf16>
    %231 = vector.extract_strided_slice %205 {offsets = [0, 64], sizes = [8, 64], strides = [1, 1]} : vector<8x128xbf16> to vector<8x64xbf16>
    %cst_90 = arith.constant dense<0.000000e+00> : vector<8x8xf32>
    %232 = tpu.matmul %229, %230, %cst_90 {dimension_numbers = #tpu.dot_dimension_numbers<[1], [1], [0], [0], [0, 0, 1, 0], [], []>} : vector<8x64xbf16>, vector<8x64xbf16>, vector<8x8xf32> -> vector<8x8xf32>
    %233 = vector.broadcast %207 : vector<1x8xf32> to vector<8x8xf32>
    %234 = arith.addf %232, %233 : vector<8x8xf32>
    %cst_91 = arith.constant dense<0xFF800000> : vector<8xf32>
    %235 = vector.multi_reduction <maximumf>, %234, %cst_91 [1] : vector<8x8xf32> to vector<8xf32>
    %236 = vector.shape_cast %235 : vector<8xf32> to vector<8x1xf32>
    %237 = vector.broadcast %236 : vector<8x1xf32> to vector<8x8xf32>
    %238 = arith.subf %234, %237 : vector<8x8xf32>
    %239 = math.exp %238 : vector<8x8xf32>
    %cst_92 = arith.constant dense<0.000000e+00> : vector<8xf32>
    %240 = vector.multi_reduction <add>, %239, %cst_92 [1] : vector<8x8xf32> to vector<8xf32>
    %241 = vector.shape_cast %240 : vector<8xf32> to vector<8x1xf32>
    %242 = tpu.reciprocal %241 {approx = true} : vector<8x1xf32> -> vector<8x1xf32>
    %243 = vector.broadcast %242 : vector<8x1xf32> to vector<8x8xf32>
    %244 = arith.mulf %239, %243 : vector<8x8xf32>
    %245 = arith.truncf %244 : vector<8x8xf32> to vector<8x8xbf16>
    %cst_93 = arith.constant dense<0.000000e+00> : vector<8x64xf32>
    %246 = tpu.matmul %245, %231, %cst_93 {dimension_numbers = #tpu.dot_dimension_numbers<[1], [0], [0], [1], [0, 0, 1, 1], [], []>} : vector<8x8xbf16>, vector<8x64xbf16>, vector<8x64xf32> -> vector<8x64xf32>
    %247 = arith.truncf %246 : vector<8x64xf32> to vector<8x64xbf16>
    %248 = vector.extract_strided_slice %192 {offsets = [64, 0], sizes = [64, 64], strides = [1, 1]} : vector<128x64xbf16> to vector<64x64xbf16>
    %cst_94 = arith.constant dense<0.000000e+00> : vector<8x64xf32>
    %249 = tpu.matmul %247, %248, %cst_94 {dimension_numbers = #tpu.dot_dimension_numbers<[1], [0], [0], [1], [0, 0, 1, 1], [], []>} : vector<8x64xbf16>, vector<64x64xbf16>, vector<8x64xf32> -> vector<8x64xf32>
    %250 = arith.addf %228, %249 : vector<8x64xf32>
    %251 = vector.extract_strided_slice %200 {offsets = [8, 0], sizes = [8, 128], strides = [1, 1]} : vector<16x128xbf16> to vector<8x128xbf16>
    %252 = vector.extract_strided_slice %201 {offsets = [8, 0], sizes = [8, 128], strides = [1, 1]} : vector<16x128xbf16> to vector<8x128xbf16>
    %253 = vector.extract_strided_slice %202 {offsets = [8, 0], sizes = [8, 128], strides = [1, 1]} : vector<16x128xbf16> to vector<8x128xbf16>
    %254 = vector.extract_strided_slice %9 {offsets = [1, 0, 0], sizes = [1, 1, 8], strides = [1, 1, 1]} : vector<2x1x8xf32> to vector<1x1x8xf32>
    %255 = vector.shape_cast %254 : vector<1x1x8xf32> to vector<1x8xf32>
    %256 = vector.extract_strided_slice %251 {offsets = [0, 0], sizes = [8, 64], strides = [1, 1]} : vector<8x128xbf16> to vector<8x64xbf16>
    %257 = vector.extract_strided_slice %252 {offsets = [0, 0], sizes = [8, 64], strides = [1, 1]} : vector<8x128xbf16> to vector<8x64xbf16>
    %258 = vector.extract_strided_slice %253 {offsets = [0, 0], sizes = [8, 64], strides = [1, 1]} : vector<8x128xbf16> to vector<8x64xbf16>
    %cst_95 = arith.constant dense<0.000000e+00> : vector<8x8xf32>
    %259 = tpu.matmul %256, %257, %cst_95 {dimension_numbers = #tpu.dot_dimension_numbers<[1], [1], [0], [0], [0, 0, 1, 0], [], []>} : vector<8x64xbf16>, vector<8x64xbf16>, vector<8x8xf32> -> vector<8x8xf32>
    %260 = vector.broadcast %255 : vector<1x8xf32> to vector<8x8xf32>
    %261 = arith.addf %259, %260 : vector<8x8xf32>
    %cst_96 = arith.constant dense<0xFF800000> : vector<8xf32>
    %262 = vector.multi_reduction <maximumf>, %261, %cst_96 [1] : vector<8x8xf32> to vector<8xf32>
    %263 = vector.shape_cast %262 : vector<8xf32> to vector<8x1xf32>
    %264 = vector.broadcast %263 : vector<8x1xf32> to vector<8x8xf32>
    %265 = arith.subf %261, %264 : vector<8x8xf32>
    %266 = math.exp %265 : vector<8x8xf32>
    %cst_97 = arith.constant dense<0.000000e+00> : vector<8xf32>
    %267 = vector.multi_reduction <add>, %266, %cst_97 [1] : vector<8x8xf32> to vector<8xf32>
    %268 = vector.shape_cast %267 : vector<8xf32> to vector<8x1xf32>
    %269 = tpu.reciprocal %268 {approx = true} : vector<8x1xf32> -> vector<8x1xf32>
    %270 = vector.broadcast %269 : vector<8x1xf32> to vector<8x8xf32>
    %271 = arith.mulf %266, %270 : vector<8x8xf32>
    %272 = arith.truncf %271 : vector<8x8xf32> to vector<8x8xbf16>
    %cst_98 = arith.constant dense<0.000000e+00> : vector<8x64xf32>
    %273 = tpu.matmul %272, %258, %cst_98 {dimension_numbers = #tpu.dot_dimension_numbers<[1], [0], [0], [1], [0, 0, 1, 1], [], []>} : vector<8x8xbf16>, vector<8x64xbf16>, vector<8x64xf32> -> vector<8x64xf32>
    %274 = arith.truncf %273 : vector<8x64xf32> to vector<8x64xbf16>
    %275 = vector.extract_strided_slice %192 {offsets = [0, 0], sizes = [64, 64], strides = [1, 1]} : vector<128x64xbf16> to vector<64x64xbf16>
    %cst_99 = arith.constant dense<0.000000e+00> : vector<8x64xf32>
    %276 = tpu.matmul %274, %275, %cst_99 {dimension_numbers = #tpu.dot_dimension_numbers<[1], [0], [0], [1], [0, 0, 1, 1], [], []>} : vector<8x64xbf16>, vector<64x64xbf16>, vector<8x64xf32> -> vector<8x64xf32>
    %277 = vector.extract_strided_slice %251 {offsets = [0, 64], sizes = [8, 64], strides = [1, 1]} : vector<8x128xbf16> to vector<8x64xbf16>
    %278 = vector.extract_strided_slice %252 {offsets = [0, 64], sizes = [8, 64], strides = [1, 1]} : vector<8x128xbf16> to vector<8x64xbf16>
    %279 = vector.extract_strided_slice %253 {offsets = [0, 64], sizes = [8, 64], strides = [1, 1]} : vector<8x128xbf16> to vector<8x64xbf16>
    %cst_100 = arith.constant dense<0.000000e+00> : vector<8x8xf32>
    %280 = tpu.matmul %277, %278, %cst_100 {dimension_numbers = #tpu.dot_dimension_numbers<[1], [1], [0], [0], [0, 0, 1, 0], [], []>} : vector<8x64xbf16>, vector<8x64xbf16>, vector<8x8xf32> -> vector<8x8xf32>
    %281 = vector.broadcast %255 : vector<1x8xf32> to vector<8x8xf32>
    %282 = arith.addf %280, %281 : vector<8x8xf32>
    %cst_101 = arith.constant dense<0xFF800000> : vector<8xf32>
    %283 = vector.multi_reduction <maximumf>, %282, %cst_101 [1] : vector<8x8xf32> to vector<8xf32>
    %284 = vector.shape_cast %283 : vector<8xf32> to vector<8x1xf32>
    %285 = vector.broadcast %284 : vector<8x1xf32> to vector<8x8xf32>
    %286 = arith.subf %282, %285 : vector<8x8xf32>
    %287 = math.exp %286 : vector<8x8xf32>
    %cst_102 = arith.constant dense<0.000000e+00> : vector<8xf32>
    %288 = vector.multi_reduction <add>, %287, %cst_102 [1] : vector<8x8xf32> to vector<8xf32>
    %289 = vector.shape_cast %288 : vector<8xf32> to vector<8x1xf32>
    %290 = tpu.reciprocal %289 {approx = true} : vector<8x1xf32> -> vector<8x1xf32>
    %291 = vector.broadcast %290 : vector<8x1xf32> to vector<8x8xf32>
    %292 = arith.mulf %287, %291 : vector<8x8xf32>
    %293 = arith.truncf %292 : vector<8x8xf32> to vector<8x8xbf16>
    %cst_103 = arith.constant dense<0.000000e+00> : vector<8x64xf32>
    %294 = tpu.matmul %293, %279, %cst_103 {dimension_numbers = #tpu.dot_dimension_numbers<[1], [0], [0], [1], [0, 0, 1, 1], [], []>} : vector<8x8xbf16>, vector<8x64xbf16>, vector<8x64xf32> -> vector<8x64xf32>
    %295 = arith.truncf %294 : vector<8x64xf32> to vector<8x64xbf16>
    %296 = vector.extract_strided_slice %192 {offsets = [64, 0], sizes = [64, 64], strides = [1, 1]} : vector<128x64xbf16> to vector<64x64xbf16>
    %cst_104 = arith.constant dense<0.000000e+00> : vector<8x64xf32>
    %297 = tpu.matmul %295, %296, %cst_104 {dimension_numbers = #tpu.dot_dimension_numbers<[1], [0], [0], [1], [0, 0, 1, 1], [], []>} : vector<8x64xbf16>, vector<64x64xbf16>, vector<8x64xf32> -> vector<8x64xf32>
    %298 = arith.addf %276, %297 : vector<8x64xf32>
    %299 = tpu.concatenate %250, %298 in 0 : vector<8x64xf32>, vector<8x64xf32> -> vector<16x64xf32>
    %300 = arith.addf %299, %188 : vector<16x64xf32>
    %c1_105 = arith.constant 1 : index
    %c0_106 = arith.constant 0 : index
    %c0_107 = arith.constant 0 : index
    %301 = vector.load %arg5[%c1_105, %c0_106, %c0_107] : memref<2x1x64xf32, #tpu.memory_space<vmem>>, vector<1x1x64xf32>
    %302 = vector.shape_cast %301 : vector<1x1x64xf32> to vector<1x64xf32>
    %c1_108 = arith.constant 1 : index
    %c0_109 = arith.constant 0 : index
    %c0_110 = arith.constant 0 : index
    %303 = vector.load %arg6[%c1_108, %c0_109, %c0_110] : memref<2x1x64xf32, #tpu.memory_space<vmem>>, vector<1x1x64xf32>
    %304 = vector.shape_cast %303 : vector<1x1x64xf32> to vector<1x64xf32>
    %cst_111 = arith.constant dense<0.000000e+00> : vector<16xf32>
    %305 = vector.multi_reduction <add>, %300, %cst_111 [1] : vector<16x64xf32> to vector<16xf32>
    %306 = vector.shape_cast %305 : vector<16xf32> to vector<16x1xf32>
    %cst_112 = arith.constant 6.400000e+01 : f32
    %307 = vector.broadcast %cst_112 : f32 to vector<16x1xf32>
    %308 = arith.divf %306, %307 : vector<16x1xf32>
    %309 = vector.broadcast %308 : vector<16x1xf32> to vector<16x64xf32>
    %310 = arith.subf %300, %309 : vector<16x64xf32>
    %311 = arith.mulf %310, %310 : vector<16x64xf32>
    %cst_113 = arith.constant dense<0.000000e+00> : vector<16xf32>
    %312 = vector.multi_reduction <add>, %311, %cst_113 [1] : vector<16x64xf32> to vector<16xf32>
    %313 = vector.shape_cast %312 : vector<16xf32> to vector<16x1xf32>
    %cst_114 = arith.constant 6.400000e+01 : f32
    %314 = vector.broadcast %cst_114 : f32 to vector<16x1xf32>
    %315 = arith.divf %313, %314 : vector<16x1xf32>
    %316 = vector.broadcast %308 : vector<16x1xf32> to vector<16x64xf32>
    %317 = arith.subf %300, %316 : vector<16x64xf32>
    %cst_115 = arith.constant 9.99999997E-7 : f32
    %318 = vector.broadcast %cst_115 : f32 to vector<16x1xf32>
    %319 = arith.addf %315, %318 : vector<16x1xf32>
    %320 = math.rsqrt %319 : vector<16x1xf32>
    %321 = vector.broadcast %320 : vector<16x1xf32> to vector<16x64xf32>
    %322 = arith.mulf %317, %321 : vector<16x64xf32>
    %323 = vector.broadcast %302 : vector<1x64xf32> to vector<16x64xf32>
    %324 = arith.mulf %322, %323 : vector<16x64xf32>
    %325 = vector.broadcast %304 : vector<1x64xf32> to vector<16x64xf32>
    %326 = arith.addf %324, %325 : vector<16x64xf32>
    %327 = arith.truncf %326 : vector<16x64xf32> to vector<16x64xbf16>
    %cst_116 = arith.constant dense<0.000000e+00> : vector<16x1024xf32>
    %328 = tpu.matmul %327, %194, %cst_116 {dimension_numbers = #tpu.dot_dimension_numbers<[1], [0], [0], [1], [0, 0, 1, 1], [], []>} : vector<16x64xbf16>, vector<64x1024xbf16>, vector<16x1024xf32> -> vector<16x1024xf32>
    %c1_117 = arith.constant 1 : index
    %c0_118 = arith.constant 0 : index
    %c0_119 = arith.constant 0 : index
    %329 = vector.load %arg8[%c1_117, %c0_118, %c0_119] : memref<2x1x1024xf32, #tpu.memory_space<vmem>>, vector<1x1x1024xf32>
    %330 = vector.shape_cast %329 : vector<1x1x1024xf32> to vector<1x1024xf32>
    %331 = vector.broadcast %330 : vector<1x1024xf32> to vector<16x1024xf32>
    %332 = arith.addf %328, %331 : vector<16x1024xf32>
    %cst_120 = arith.constant 0.000000e+00 : f32
    %333 = vector.broadcast %cst_120 : f32 to vector<16x1024xf32>
    %334 = arith.maximumf %332, %333 : vector<16x1024xf32>
    %335 = arith.truncf %334 : vector<16x1024xf32> to vector<16x1024xbf16>
    %cst_121 = arith.constant dense<0.000000e+00> : vector<16x64xf32>
    %336 = tpu.matmul %335, %196, %cst_121 {dimension_numbers = #tpu.dot_dimension_numbers<[1], [0], [0], [1], [0, 0, 1, 1], [], []>} : vector<16x1024xbf16>, vector<1024x64xbf16>, vector<16x64xf32> -> vector<16x64xf32>
    %c1_122 = arith.constant 1 : index
    %c0_123 = arith.constant 0 : index
    %c0_124 = arith.constant 0 : index
    %337 = vector.load %arg10[%c1_122, %c0_123, %c0_124] : memref<2x1x64xf32, #tpu.memory_space<vmem>>, vector<1x1x64xf32>
    %338 = vector.shape_cast %337 : vector<1x1x64xf32> to vector<1x64xf32>
    %339 = vector.broadcast %338 : vector<1x64xf32> to vector<16x64xf32>
    %340 = arith.addf %336, %339 : vector<16x64xf32>
    %341 = arith.addf %340, %326 : vector<16x64xf32>
    %c1_125 = arith.constant 1 : index
    %c0_126 = arith.constant 0 : index
    %c0_127 = arith.constant 0 : index
    %342 = vector.load %arg11[%c1_125, %c0_126, %c0_127] : memref<2x1x64xf32, #tpu.memory_space<vmem>>, vector<1x1x64xf32>
    %343 = vector.shape_cast %342 : vector<1x1x64xf32> to vector<1x64xf32>
    %c1_128 = arith.constant 1 : index
    %c0_129 = arith.constant 0 : index
    %c0_130 = arith.constant 0 : index
    %344 = vector.load %arg12[%c1_128, %c0_129, %c0_130] : memref<2x1x64xf32, #tpu.memory_space<vmem>>, vector<1x1x64xf32>
    %345 = vector.shape_cast %344 : vector<1x1x64xf32> to vector<1x64xf32>
    %cst_131 = arith.constant dense<0.000000e+00> : vector<16xf32>
    %346 = vector.multi_reduction <add>, %341, %cst_131 [1] : vector<16x64xf32> to vector<16xf32>
    %347 = vector.shape_cast %346 : vector<16xf32> to vector<16x1xf32>
    %cst_132 = arith.constant 6.400000e+01 : f32
    %348 = vector.broadcast %cst_132 : f32 to vector<16x1xf32>
    %349 = arith.divf %347, %348 : vector<16x1xf32>
    %350 = vector.broadcast %349 : vector<16x1xf32> to vector<16x64xf32>
    %351 = arith.subf %341, %350 : vector<16x64xf32>
    %352 = arith.mulf %351, %351 : vector<16x64xf32>
    %cst_133 = arith.constant dense<0.000000e+00> : vector<16xf32>
    %353 = vector.multi_reduction <add>, %352, %cst_133 [1] : vector<16x64xf32> to vector<16xf32>
    %354 = vector.shape_cast %353 : vector<16xf32> to vector<16x1xf32>
    %cst_134 = arith.constant 6.400000e+01 : f32
    %355 = vector.broadcast %cst_134 : f32 to vector<16x1xf32>
    %356 = arith.divf %354, %355 : vector<16x1xf32>
    %357 = vector.broadcast %349 : vector<16x1xf32> to vector<16x64xf32>
    %358 = arith.subf %341, %357 : vector<16x64xf32>
    %cst_135 = arith.constant 9.99999997E-7 : f32
    %359 = vector.broadcast %cst_135 : f32 to vector<16x1xf32>
    %360 = arith.addf %356, %359 : vector<16x1xf32>
    %361 = math.rsqrt %360 : vector<16x1xf32>
    %362 = vector.broadcast %361 : vector<16x1xf32> to vector<16x64xf32>
    %363 = arith.mulf %358, %362 : vector<16x64xf32>
    %364 = vector.broadcast %343 : vector<1x64xf32> to vector<16x64xf32>
    %365 = arith.mulf %363, %364 : vector<16x64xf32>
    %366 = vector.broadcast %345 : vector<1x64xf32> to vector<16x64xf32>
    %367 = arith.addf %365, %366 : vector<16x64xf32>
    %c0_136 = arith.constant 0 : index
    %c0_137 = arith.constant 0 : index
    %368 = vector.load %arg13[%c0_136, %c0_137] : memref<1x64xf32, #tpu.memory_space<vmem>>, vector<1x64xf32>
    %c0_138 = arith.constant 0 : index
    %c0_139 = arith.constant 0 : index
    %369 = vector.load %arg14[%c0_138, %c0_139] : memref<1x64xf32, #tpu.memory_space<vmem>>, vector<1x64xf32>
    %cst_140 = arith.constant dense<0.000000e+00> : vector<16xf32>
    %370 = vector.multi_reduction <add>, %367, %cst_140 [1] : vector<16x64xf32> to vector<16xf32>
    %371 = vector.shape_cast %370 : vector<16xf32> to vector<16x1xf32>
    %cst_141 = arith.constant 6.400000e+01 : f32
    %372 = vector.broadcast %cst_141 : f32 to vector<16x1xf32>
    %373 = arith.divf %371, %372 : vector<16x1xf32>
    %374 = vector.broadcast %373 : vector<16x1xf32> to vector<16x64xf32>
    %375 = arith.subf %367, %374 : vector<16x64xf32>
    %376 = arith.mulf %375, %375 : vector<16x64xf32>
    %cst_142 = arith.constant dense<0.000000e+00> : vector<16xf32>
    %377 = vector.multi_reduction <add>, %376, %cst_142 [1] : vector<16x64xf32> to vector<16xf32>
    %378 = vector.shape_cast %377 : vector<16xf32> to vector<16x1xf32>
    %cst_143 = arith.constant 6.400000e+01 : f32
    %379 = vector.broadcast %cst_143 : f32 to vector<16x1xf32>
    %380 = arith.divf %378, %379 : vector<16x1xf32>
    %381 = vector.broadcast %373 : vector<16x1xf32> to vector<16x64xf32>
    %382 = arith.subf %367, %381 : vector<16x64xf32>
    %cst_144 = arith.constant 9.99999997E-7 : f32
    %383 = vector.broadcast %cst_144 : f32 to vector<16x1xf32>
    %384 = arith.addf %380, %383 : vector<16x1xf32>
    %385 = math.rsqrt %384 : vector<16x1xf32>
    %386 = vector.broadcast %385 : vector<16x1xf32> to vector<16x64xf32>
    %387 = arith.mulf %382, %386 : vector<16x64xf32>
    %388 = vector.broadcast %368 : vector<1x64xf32> to vector<16x64xf32>
    %389 = arith.mulf %387, %388 : vector<16x64xf32>
    %390 = vector.broadcast %369 : vector<1x64xf32> to vector<16x64xf32>
    %391 = arith.addf %389, %390 : vector<16x64xf32>
    %392 = vector.shape_cast %391 : vector<16x64xf32> to vector<2x8x64xf32>
    %c0_145 = arith.constant 0 : index
    %c0_146 = arith.constant 0 : index
    %c0_147 = arith.constant 0 : index
    %393 = vector.load %arg15[%c0_145, %c0_146, %c0_147] : memref<2x8x64xf32, #tpu.memory_space<vmem>>, vector<2x8x64xf32>
    tpu.vector_store %arg15[%c0_145, %c0_146, %c0_147], %392 {strides = array<i32>} : memref<2x8x64xf32, #tpu.memory_space<vmem>>, vector<2x8x64xf32>,
    return
  }
}

</mosaic_0001>

<bundles_post_ra>
// kernel: self_attention_forward.1
= control target key start
LH: loop header
LB: loop body
LE: loop exit
PB: predicated region body
PF: predicated region fallthrough
CT: control target
= control target key end

     0   :  { %v5472_v2 = vmov 0   ;;  %vm320_vm0 = vcmask 523264   ;;  %v5473_v15 = vmov 0.0   ;;  %s6746_s0 = inlined_call_operand.vmem [shape: f32[2,8,64], index: 0, kind: input, shape index: {}]   ;;  %s6747_s1 = inlined_call_operand.vmem [shape: f32[1,8,64], index: 1, kind: input, shape index: {}]   ;;  %s6748_s2 = inlined_call_operand.vmem [shape: f32[2,1,8], index: 2, kind: input, shape index: {}]   ;;  %s6749_s3 = inlined_call_operand.vmem [shape: bf16[2,64,384], index: 3, kind: input, shape index: {}]   ;;  %s6750_s4 = inlined_call_operand.vmem [shape: bf16[2,128,64], index: 4, kind: input, shape index: {}]   ;;  %s6751_s5 = inlined_call_operand.vmem [shape: f32[2,1,64], index: 5, kind: input, shape index: {}]   ;;  %s6752_s6 = inlined_call_operand.vmem [shape: f32[2,1,64], index: 6, kind: input, shape index: {}]   ;;  %s6753_s7 = inlined_call_operand.vmem [shape: bf16[2,64,1024], index: 7, kind: input, shape index: {}]   ;;  %s6754_s8 = inlined_call_operand.vmem [shape: f32[2,1,1024], index: 8, kind: input, shape index: {}]   ;;  %s6755_s9 = inlined_call_operand.vmem [shape: bf16[2,1024,64], index: 9, kind: input, shape index: {}]   ;;  %s6756_s10 = inlined_call_operand.vmem [shape: f32[2,1,64], index: 10, kind: input, shape index: {}]   ;;  %s6757_s11 = inlined_call_operand.vmem [shape: f32[2,1,64], index: 11, kind: input, shape index: {}]   ;;  %s6758_s12 = inlined_call_operand.vmem [shape: f32[2,1,64], index: 12, kind: input, shape index: {}]   ;;  %s6759_s13 = inlined_call_operand.vmem [shape: f32[1,64], index: 13, kind: input, shape index: {}]   ;;  %s6760_s14 = inlined_call_operand.vmem [shape: f32[1,64], index: 14, kind: input, shape index: {}]   ;;  %s6761_s15 = inlined_call_operand.hbm [shape: f32[2,8,64], index: 15, kind: output, shape index: {}]  }
   0x1   :  { %v5220_v0 = vld [vmem:[%s6749_s3 + $0x4] ss:$12 sps:$4 sm:$0xff]   ;;  %v5222_v1 = vld [vmem:[%s6749_s3] ss:$12 sps:$4 sm:$0xff]   ;;  %356 = vmatprep.mubr.bf16.mxu0 %v5472_v2  ;;  %v5223_v3 = vld [vmem:[%s6749_s3 + $0x1c] ss:$12 sps:$4 sm:$0xff]   ;;  %4997 = vmatprep.subr.bf16.mxu1 %v5473_v15 }
   0x2   :  { %324 = vmatprep.subr.bf16.mxu0 %v5220_v0  ;;  %v5225_v4 = vld [vmem:[%s6749_s3 + $0x18] ss:$12 sps:$4 sm:$0xff]   ;;  %v5226_v5 = vld [vmem:[%s6749_s3 + $0x34] ss:$12 sps:$4 sm:$0xff]   ;;  %v5228_v6 = vld [vmem:[%s6749_s3 + $0x30] ss:$12 sps:$4 sm:$0xff]  }
   0x3   :  { %325 = vmatpush1.bf16.msra.mxu0 %v5222_v1  ;;  %v52_v7 = vld [vmem:[%s6746_s0] sm:$0xff]  ;;  %v53_v8 = vld [vmem:[%s6746_s0 + $0x8] sm:$0xff] }
   0x4   :  { %326 = vmatprep.subr.bf16.mxu0 %v5223_v3  ;;  %v5229_v9 = vld [vmem:[%s6749_s3 + $0x4c] ss:$12 sps:$4 sm:$0xff]   ;;  %v54_v10 = vld [vmem:[%s6747_s1] sm:$0xff]  ;;  %v5231_v11 = vld [vmem:[%s6749_s3 + $0x48] ss:$12 sps:$4 sm:$0xff]  }
   0x5   :  { %v5593_v12 = vadd.f32 %v54_v10, %v52_v7  ;;  %v5595_v13 = vadd.f32 %v54_v10, %v53_v8 }
   0x7   :  { %327 = vmatpush1.bf16.msra.mxu0 %v5225_v4  ;;  %v255_v14 = vpack.c.bf16 %v5595_v13, %v5593_v12 }
   0x8   :  { %328 = vmatprep.subr.bf16.mxu0 %v5226_v5 }
   0xb   :  { %329 = vmatpush1.bf16.msra.mxu0 %v5228_v6 }
   0xc   :  { %330 = vmatprep.subr.bf16.mxu0 %v5229_v9 }
   0xf   :  { %331 = vmatpush1.bf16.msra.mxu0 %v5231_v11 }
  0x10   :  { %5009 = vmatprep.subr.bf16.mxu0 %v5473_v15 }
  0x12   :  { %4273 = vmatmul.mubr.msk.bf16.vlgmr.msra.gmra.mrb[0].mxu0 %vm320_vm0, %v255_v14 }
  0x13   :  { %20 = vsyncpa [#allocation3], 0  ;;  %vm5474_vm1 = vmmov 0   ;;  %s5475_s0 = smov 64   ;;  %v5232_v23 = vld [vmem:[%s6749_s3 + $0x8] ss:$12 sps:$4 sm:$0xff]   ;;  %v412_v30 = vlaneseq }
  0x14   :  { %5011 = vmatprep.mubr.msk.bf16.mxu0 %vm5474_vm1, %v5473_v15  ;;  %5005 = vmatprep.mubr.msk.bf16.mxu1 %vm5474_vm1, %v5473_v15  ;;  %v5233_v24 = vld [vmem:[%s6749_s3 + $0x20] ss:$12 sps:$4 sm:$0xff]   ;;  %v5234_v25 = vld [vmem:[%s6749_s3 + $0x38] ss:$12 sps:$4 sm:$0xff]   ;;  %v5235_v26 = vld [vmem:[%s6749_s3 + $0x50] ss:$12 sps:$4 sm:$0xff]  }
  0x15   :  { %4998 = vmatpush3.bf16.msra.mxu1 %v5232_v23  ;;  %v57_v31 = vld [vmem:[%s6748_s2] sm:$0x1]  ;;  %v5648_v33 = vshrl.u32 %v412_v30, 7  ;;  %vm463_vm2 = vcmask 64512   ;;  %vm479_vm3 = vcmask 1043456   ;;  %v5689_v9 = vld [vmem:[%s6750_s4 + $0x28] sm:$0xff]  }
  0x16   :  { %4999 = vmatprep.subr.bf16.mxu1 %v5473_v15  ;;  %v4259_v32 = vadd.f32 -1.0, %v57_v31  ;;  %v5683_v8 = vld [vmem:[%s6750_s4 + $0x20] sm:$0xff]   ;;  %v5696_v10 = vld [vmem:[%s6750_s4 + $0x30] sm:$0xff]   ;;  %v5243_v11 = vld [vmem:[%s6750_s4 + $0x38] sm:$0xff]  }
  0x17   :  { %v5651_v35 = vsub.s32 0, %v5648_v33 }
  0x18   :  { %v61_v34 = vmul.f32 1e+09, %v4259_v32 }
  0x19   :  { %5000 = vmatpush3.bf16.msra.mxu1 %v5233_v24  ;;  %v5717_v24 = vld [vmem:[%s6750_s4 + $0x8] sm:$0xff]  }
  0x1a   :  { %5001 = vmatprep.subr.bf16.mxu1 %v5473_v15  ;;  %v5654_v36 = vrot.slane %v61_v34, %v5651_v35 }
  0x1d   :  { %5002 = vmatpush3.bf16.msra.mxu1 %v5234_v25  ;;  %v5726_v25 = vld [vmem:[%s6750_s4 + $0x10] sm:$0xff]  }
  0x1e   :  { %5003 = vmatprep.subr.bf16.mxu1 %v5473_v15 }
  0x21   :  { %5004 = vmatpush3.bf16.msra.mxu1 %v5235_v26  ;;  %v5733_v26 = vld [vmem:[%s6750_s4 + $0x18] sm:$0xff]  }
  0x22   :  { %5015 = vmatprep.subr.bf16.mxu1 %v5473_v15 }
  0x24   :  { %5006 = vmatmul.mubr.msk.bf16.vlgmr.msra.gmra.mrb[0].mxu1 %vm320_vm0, %v255_v14 }
  0x25   :  { %5017 = vmatprep.mubr.msk.bf16.mxu1 %vm5474_vm1, %v5473_v15 }
  0xe5   :  { %v358_v16 = vpop.f32.mrb[0].mxu0 }
  0xe6   :  { %v360_v17 = vpop.f32.mrb[1].mxu0 }
  0xe7   :  { %v362_v18 = vpop.f32.mrb[2].mxu0 }
  0xe8   :  { %v5606_v19 = vpack.c.bf16 %v362_v18, %v358_v16  ;;  %v364_v20 = vpop.f32.mrb[3].mxu0 }
  0xe9   :  { %v5608_v21 = vpack.c.bf16 %v364_v20, %v360_v17 }
  0xea   :  { %v778_v3 = vrot.slane %v5606_v19, 4 }
  0xeb   :  { %528 = vrot.lane.b32.xlu0 %v5608_v21, %s5475_s0  ;;  %v421_v22 = vsel %vm320_vm0, %v5608_v21, 0  ;;  %v779_v1 = vrot.slane %v5608_v21, 4 }
  0xec   :  { %5010 = vmatpush3.bf16.xpose.msra.mxu0 %v421_v22  ;;  %v5710_v22 = vld [vmem:[%s6750_s4] sm:$0xff]  }
  0xed   :  { %5021 = vmatprep.subr.bf16.mxu0 %v5473_v15 }
  0xef   :  { %525 = vrot.lane.b32.xlu0 %v5606_v19, %s5475_s0 }
  0xf3   :  { %5012 = vmatmul.mubr.msk.bf16.vlgmr.msra.gmra.mrb[4].mxu0 %vm320_vm0, %v5606_v19 }
  0xf4   :  { %5023 = vmatprep.mubr.msk.bf16.mxu0 %vm5474_vm1, %v5473_v15 }
  0xf7   :  { %v401_v52 = vpop.f32.mrb[0].mxu1 }
  0xf8   :  { %v5007_v53 = vpop.f32.mrb[1].mxu1 }
  0xf9   :  { %v404_v54 = vpop.f32.mrb[2].mxu1 }
  0xfa   :  { %v5660_v55 = vpack.c.bf16 %v404_v54, %v401_v52  ;;  %v5008_v56 = vpop.f32.mrb[3].mxu1 }
  0xfc   :  { %v481_v59 = vsel %vm479_vm3, %v5660_v55, 0 }
  0xfd   :  { %5016 = vmatpush3.bf16.msra.mxu1 %v481_v59 }
  0xfe   :  { %5027 = vmatprep.subr.bf16.mxu1 %v5473_v15 }
 0x15d   :  { %v529_v27 = vpop.permute.xlu0 %528 }
 0x15e   :  { %v534_v28 = vsel %vm320_vm0, %v529_v27, 0  ;;  %v838_v27 = vrot.slane %v5660_v55, 4 }
 0x15f   :  { %5022 = vmatpush3.bf16.xpose.msra.mxu0 %v534_v28 }
 0x160   :  { %5033 = vmatprep.subr.bf16.mxu0 %v5473_v15  ;;  %v843_v34 = vsel %vm479_vm3, %v838_v27, 0 }
 0x161   :  { %v526_v29 = vpop.permute.xlu0 %525 }
 0x166   :  { %5024 = vmatmul.mubr.msk.bf16.vlgmr.msra.gmra.mrb[8].mxu0 %vm320_vm0, %v526_v29 }
 0x167   :  { %5041 = vmatprep.mubr.msk.bf16.mxu0 %vm5474_vm1, %v5473_v15  ;;  %5034 = vmatpush3.bf16.msra.mxu0 %v5683_v8 }
 0x168   :  { %5035 = vmatprep.subr.bf16.mxu0 %v5473_v15 }
 0x16b   :  { %5036 = vmatpush3.bf16.msra.mxu0 %v5689_v9 }
 0x16c   :  { %5037 = vmatprep.subr.bf16.mxu0 %v5473_v15 }
 0x16f   :  { %5038 = vmatpush3.bf16.msra.mxu0 %v5696_v10 }
 0x170   :  { %5039 = vmatprep.subr.bf16.mxu0 %v5473_v15 }
 0x173   :  { %5040 = vmatpush3.bf16.msra.mxu0 %v5243_v11 }
 0x174   :  { %5057 = vmatprep.subr.bf16.mxu0 %v5473_v15 }
 0x1c6   :  { %v457_v37 = vpop.f32.mrb[4].mxu0 }
 0x1c7   :  { %v458_v38 = vadd.f32 %v457_v37, %v5654_v36  ;;  %v5013_v39 = vpop.f32.mrb[5].mxu0 }
 0x1c8   :  { %v460_v40 = vpop.f32.mrb[6].mxu0 }
 0x1c9   :  { %v5014_v41 = vpop.f32.mrb[7].mxu0  ;;  %v464_v42 = vsel %vm463_vm2, %v458_v38, -inf }
 0x1ca   :  { %465 = vmax.xlane.f32.xlu1 %v464_v42  ;;  %v784_v42 = vsel %vm320_vm0, %v779_v1, 0 }
 0x239   :  { %v570_v43 = vpop.f32.mrb[8].mxu0 }
 0x23a   :  { %v571_v44 = vadd.f32 %v570_v43, %v5654_v36  ;;  %v5025_v45 = vpop.f32.mrb[9].mxu0 }
 0x23b   :  { %v573_v46 = vpop.f32.mrb[10].mxu0 }
 0x23c   :  { %v5026_v47 = vpop.f32.mrb[11].mxu0  ;;  %v576_v48 = vsel %vm463_vm2, %v571_v44, -inf }
 0x23d   :  { %577 = vmax.xlane.f32.xlu1 %v576_v48  ;;  %v58_v48 = vld [vmem:[%s6748_s2 + $0x1] sm:$0x1] }
 0x257   :  { %v466_v49 = vpop.xlane.xlu1 %465 }
 0x258   :  { %v467_v50 = vsub.f32 %v458_v38, %v466_v49  ;;  %v4260_v49 = vadd.f32 -1.0, %v58_v48 }
 0x25a   :  { %v468_v51 = vmul.f32 1.442695, %v467_v50  ;;  %v62_v53 = vmul.f32 1e+09, %v4260_v49 }
 0x25c   :  { %5396 = vpow2.f32 %v468_v51 }
 0x266   :  { %v5397_v57 = vpop.eup %5396 }
 0x267   :  { %v470_v58 = vsel %vm463_vm2, %v5397_v57, 0.0 }
 0x268   :  { %471 = vadd.xlane.f32.xlu0 %v470_v58 }
 0x2ca   :  { %v578_v60 = vpop.xlane.xlu1 %577 }
 0x2cb   :  { %v579_v61 = vsub.f32 %v571_v44, %v578_v60 }
 0x2cd   :  { %v580_v62 = vmul.f32 1.442695, %v579_v61 }
 0x2cf   :  { %5398 = vpow2.f32 %v580_v62 }
 0x2d9   :  { %v5399_v63 = vpop.eup %5398 }
 0x2da   :  { %v582_v0 = vsel %vm463_vm2, %v5399_v63, 0.0 }
 0x2db   :  { %583 = vadd.xlane.f32.xlu1 %v582_v0 }
 0x2ec   :  { %589 = vrot.lane.b32.xlu1 %v5660_v55, %s5475_s0 }
 0x2f0   :  { %888 = vrot.lane.b32.xlu1 %v779_v1, %s5475_s0 }
 0x2f4   :  { %886 = vrot.lane.b32.xlu1 %v778_v3, %s5475_s0 }
 0x2f5   :  { %v472_v4 = vpop.xlane.xlu0 %471 }
 0x2f6   :  { %5400 = vrcp.f32 %v472_v4 }
 0x300   :  { %v5401_v5 = vpop.eup %5400 }
 0x301   :  { %v474_v6 = vmul.f32 %v5401_v5, %v5397_v57  ;;  %v5773_v57 = vrot.slane %v62_v53, %v5651_v35 }
 0x303   :  { %v475_v7 = vpack.c.bf16 %v474_v6, %v474_v6 }
 0x305   :  { %5018 = vmatmul.mubr.msk.bf16.vlgmr.msra.gmra.mrb[4].mxu1 %vm463_vm2, %v475_v7 }
 0x306   :  { %5029 = vmatprep.mubr.msk.bf16.mxu1 %vm5474_vm1, %v5473_v15 }
 0x368   :  { %v584_v14 = vpop.xlane.xlu1 %583 }
 0x369   :  { %5402 = vrcp.f32 %v584_v14 }
 0x36c   :  { %v590_v16 = vpop.permute.xlu1 %589 }
 0x36d   :  { %v595_v17 = vsel %vm479_vm3, %v590_v16, 0 }
 0x36e   :  { %5028 = vmatpush3.bf16.msra.mxu1 %v595_v17 }
 0x36f   :  { %5045 = vmatprep.subr.bf16.mxu1 %v5473_v15 }
 0x370   :  { %v889_v43 = vpop.permute.xlu1 %888 }
 0x371   :  { %v894_v44 = vsel %vm320_vm0, %v889_v43, 0 }
 0x373   :  { %v5403_v18 = vpop.eup %5402 }
 0x374   :  { %v586_v20 = vmul.f32 %v5403_v18, %v5399_v63  ;;  %v887_v21 = vpop.permute.xlu1 %886 }
 0x376   :  { %v587_v23 = vpack.c.bf16 %v586_v20, %v586_v20 }
 0x378   :  { %5030 = vmatmul.mubr.msk.bf16.vlgmr.msra.gmra.mrb[8].mxu1 %vm463_vm2, %v587_v23 }
 0x379   :  { %5046 = vmatpush3.bf16.msra.mxu1 %v5710_v22  ;;  %5053 = vmatprep.mubr.msk.bf16.mxu1 %vm5474_vm1, %v5473_v15 }
 0x37a   :  { %5047 = vmatprep.subr.bf16.mxu1 %v5473_v15 }
 0x37d   :  { %5048 = vmatpush3.bf16.msra.mxu1 %v5717_v24 }
 0x37e   :  { %5049 = vmatprep.subr.bf16.mxu1 %v5473_v15 }
 0x381   :  { %5050 = vmatpush3.bf16.msra.mxu1 %v5726_v25 }
 0x382   :  { %5051 = vmatprep.subr.bf16.mxu1 %v5473_v15 }
 0x385   :  { %5052 = vmatpush3.bf16.msra.mxu1 %v5733_v26 }
 0x386   :  { %5063 = vmatprep.subr.bf16.mxu1 %v5473_v15 }
 0x3d8   :  { %v517_v28 = vpop.f32.mrb[4].mxu1 }
 0x3d9   :  { %v523_v29 = vpack.c.bf16 %v517_v28, %v517_v28  ;;  %v5019_v30 = vpop.f32.mrb[5].mxu1 }
 0x3da   :  { %v520_v31 = vpop.f32.mrb[6].mxu1 }
 0x3db   :  { %v5020_v32 = vpop.f32.mrb[7].mxu1  ;;  %5054 = vmatmul.mubr.msk.bf16.vlgmr.msra.gmra.mrb[12].mxu1 %vm320_vm0, %v523_v29 }
 0x3dc   :  { %5064 = vmatpush3.bf16.msra.mxu1 %v843_v34  ;;  %5065 = vmatprep.mubr.msk.bf16.mxu1 %vm5474_vm1, %v5473_v15 }
 0x3dd   :  { %5075 = vmatprep.subr.bf16.mxu1 %v5473_v15 }
 0x44b   :  { %v631_v37 = vpop.f32.mrb[8].mxu1 }
 0x44c   :  { %v637_v38 = vpack.c.bf16 %v631_v37, %v631_v37  ;;  %v5031_v39 = vpop.f32.mrb[9].mxu1 }
 0x44d   :  { %v634_v40 = vpop.f32.mrb[10].mxu1 }
 0x44e   :  { %v5032_v41 = vpop.f32.mrb[11].mxu1  ;;  %5042 = vmatmul.mubr.msk.bf16.vlgmr.msra.gmra.mrb[12].mxu0 %vm320_vm0, %v637_v38 }
 0x44f   :  { %5058 = vmatpush3.bf16.xpose.msra.mxu0 %v784_v42  ;;  %5059 = vmatprep.mubr.msk.bf16.mxu0 %vm5474_vm1, %v5473_v15 }
 0x450   :  { %5069 = vmatprep.subr.bf16.mxu0 %v5473_v15 }
 0x456   :  { %5060 = vmatmul.mubr.msk.bf16.vlgmr.msra.gmra.mrb[16].mxu0 %vm320_vm0, %v778_v3 }
 0x457   :  { %5070 = vmatpush3.bf16.xpose.msra.mxu0 %v894_v44  ;;  %5071 = vmatprep.mubr.msk.bf16.mxu0 %vm5474_vm1, %v5473_v15 }
 0x458   :  { %5081 = vmatprep.subr.bf16.mxu0 %v5473_v15 }
 0x45e   :  { %5072 = vmatmul.mubr.msk.bf16.vlgmr.msra.gmra.mrb[20].mxu0 %vm320_vm0, %v887_v21 }
 0x45f   :  { %5082 = vmatpush3.bf16.msra.mxu0 %v5683_v8  ;;  %5089 = vmatprep.mubr.msk.bf16.mxu0 %vm5474_vm1, %v5473_v15 }
 0x460   :  { %5083 = vmatprep.subr.bf16.mxu0 %v5473_v15 }
 0x463   :  { %5084 = vmatpush3.bf16.msra.mxu0 %v5689_v9 }
 0x464   :  { %5085 = vmatprep.subr.bf16.mxu0 %v5473_v15 }
 0x467   :  { %5086 = vmatpush3.bf16.msra.mxu0 %v5696_v10 }
 0x468   :  { %5087 = vmatprep.subr.bf16.mxu0 %v5473_v15 }
 0x46b   :  { %5088 = vmatpush3.bf16.msra.mxu0 %v5243_v11 }
 0x4ae   :  { %v766_v19 = vpop.f32.mrb[12].mxu1 }
 0x4af   :  { %v5055_v45 = vpop.f32.mrb[13].mxu1 }
 0x4b0   :  { %v769_v46 = vpop.f32.mrb[14].mxu1 }
 0x4b1   :  { %v5056_v47 = vpop.f32.mrb[15].mxu1 }
 0x521   :  { %v699_v50 = vpop.f32.mrb[12].mxu0 }
 0x522   :  { %v767_v51 = vadd.f32 %v766_v19, %v699_v50  ;;  %v5043_v52 = vpop.f32.mrb[13].mxu0 }
 0x523   :  { %v702_v54 = vpop.f32.mrb[14].mxu0 }
 0x524   :  { %v5044_v56 = vpop.f32.mrb[15].mxu0  ;;  %v1083_v23 = vadd.f32 %v767_v51, %v5593_v12 }
 0x526   :  { %v1087_v28 = vsel %vm320_vm0, %v1083_v23, 0.0 }
 0x529   :  { %v820_v58 = vpop.f32.mrb[16].mxu0 }
 0x52a   :  { %v821_v59 = vadd.f32 %v820_v58, %v5773_v57  ;;  %v5061_v60 = vpop.f32.mrb[17].mxu0 }
 0x52b   :  { %v823_v61 = vpop.f32.mrb[18].mxu0 }
 0x52c   :  { %v5062_v62 = vpop.f32.mrb[19].mxu0  ;;  %v826_v63 = vsel %vm463_vm2, %v821_v59, -inf }
 0x52d   :  { %827 = vmax.xlane.f32.xlu1 %v826_v63 }
 0x531   :  { %v930_v0 = vpop.f32.mrb[20].mxu0 }
 0x532   :  { %v931_v1 = vadd.f32 %v930_v0, %v5773_v57  ;;  %v5073_v3 = vpop.f32.mrb[21].mxu0 }
 0x533   :  { %v933_v4 = vpop.f32.mrb[22].mxu0  ;;  %v99_v3 = vld [vmem:[%s6753_s7 + $0x20] sm:$0xff] }
 0x534   :  { %v5074_v5 = vpop.f32.mrb[23].mxu0  ;;  %v936_v6 = vsel %vm463_vm2, %v931_v1, -inf  ;;  %v96_v4 = vld [vmem:[%s6753_s7 + $0x8] sm:$0xff] }
 0x535   :  { %937 = vmax.xlane.f32.xlu0 %v936_v6  ;;  %v100_v6 = vld [vmem:[%s6753_s7 + $0x28] sm:$0xff] }
 0x5ba   :  { %v828_v7 = vpop.xlane.xlu1 %827 }
 0x5bb   :  { %v829_v8 = vsub.f32 %v821_v59, %v828_v7 }
 0x5bd   :  { %v830_v9 = vmul.f32 1.442695, %v829_v8  ;;  %v4299_v8 = vcombine.low %v96_v4, %v100_v6 }
 0x5bf   :  { %5404 = vpow2.f32 %v830_v9  ;;  %v4300_v9 = vcombine.high %v96_v4, %v100_v6 }
 0x5c2   :  { %v938_v10 = vpop.xlane.xlu0 %937 }
 0x5c3   :  { %v939_v11 = vsub.f32 %v931_v1, %v938_v10  ;;  %v103_v10 = vld [vmem:[%s6753_s7 + $0x40] sm:$0xff] }
 0x5c5   :  { %v940_v14 = vmul.f32 1.442695, %v939_v11  ;;  %v107_v11 = vld [vmem:[%s6753_s7 + $0x60] sm:$0xff] }
 0x5c7   :  { %5406 = vpow2.f32 %v940_v14  ;;  %v104_v14 = vld [vmem:[%s6753_s7 + $0x48] sm:$0xff] }
 0x5c9   :  { %v5405_v16 = vpop.eup %5404 }
 0x5ca   :  { %v832_v17 = vsel %vm463_vm2, %v5405_v16, 0.0 }
 0x5cb   :  { %833 = vadd.xlane.f32.xlu0 %v832_v17  ;;  %v108_v17 = vld [vmem:[%s6753_s7 + $0x68] sm:$0xff] }
 0x5d1   :  { %v5407_v18 = vpop.eup %5406 }
 0x5d2   :  { %v942_v20 = vsel %vm463_vm2, %v5407_v18, 0.0 }
 0x5d3   :  { %943 = vadd.xlane.f32.xlu0 %v942_v20  ;;  %v4307_v20 = vcombine.low %v104_v14, %v108_v17 }
 0x5e9   :  { %948 = vrot.lane.b32.xlu0 %v838_v27, %s5475_s0 }
 0x608   :  { %1088 = vadd.xlane.f32.xlu0 %v1087_v28  ;;  %v111_v28 = vld [vmem:[%s6753_s7 + $0x80] sm:$0xff] }
 0x658   :  { %v834_v29 = vpop.xlane.xlu0 %833 }
 0x659   :  { %5408 = vrcp.f32 %v834_v29  ;;  %v115_v29 = vld [vmem:[%s6753_s7 + $0xa0] sm:$0xff] }
 0x660   :  { %v944_v30 = vpop.xlane.xlu0 %943 }
 0x661   :  { %5410 = vrcp.f32 %v944_v30  ;;  %v112_v30 = vld [vmem:[%s6753_s7 + $0x88] sm:$0xff] }
 0x663   :  { %v5409_v31 = vpop.eup %5408 }
 0x664   :  { %v836_v32 = vmul.f32 %v5409_v31, %v5405_v16  ;;  %v949_v34 = vpop.permute.xlu0 %948  ;;  %v4306_v16 = vcombine.high %v103_v10, %v107_v11  ;;  %v4314_v31 = vcombine.high %v111_v28, %v115_v29 }
 0x665   :  { %v954_v38 = vsel %vm479_vm3, %v949_v34, 0  ;;  %v4313_v34 = vcombine.low %v111_v28, %v115_v29  ;;  %v126_v28 = vld [vmem:[%s6753_s7 + $0xf8] sm:$0xff] }
 0x666   :  { %v837_v37 = vpack.c.bf16 %v836_v32, %v836_v32  ;;  %v116_v32 = vld [vmem:[%s6753_s7 + $0xa8] sm:$0xff] }
 0x668   :  { %5066 = vmatmul.mubr.msk.bf16.vlgmr.msra.gmra.mrb[16].mxu1 %vm463_vm2, %v837_v37  ;;  %v4315_v37 = vcombine.low %v112_v30, %v116_v32 }
 0x669   :  { %5076 = vmatpush3.bf16.msra.mxu1 %v954_v38  ;;  %5077 = vmatprep.mubr.msk.bf16.mxu1 %vm5474_vm1, %v5473_v15  ;;  %v4316_v38 = vcombine.high %v112_v30, %v116_v32 }
 0x66a   :  { %5093 = vmatprep.subr.bf16.mxu1 %v5473_v15 }
 0x66b   :  { %v5411_v12 = vpop.eup %5410 }
 0x66c   :  { %v946_v55 = vmul.f32 %v5411_v12, %v5407_v18  ;;  %v4305_v18 = vcombine.low %v103_v10, %v107_v11  ;;  %v119_v12 = vld [vmem:[%s6753_s7 + $0xc0] sm:$0xff]  ;;  %v118_v10 = vld [vmem:[%s6753_s7 + $0xb8] sm:$0xff] }
 0x66e   :  { %v947_v27 = vpack.c.bf16 %v946_v55, %v946_v55  ;;  %v123_v55 = vld [vmem:[%s6753_s7 + $0xe0] sm:$0xff] }
 0x670   :  { %5078 = vmatmul.mubr.msk.bf16.vlgmr.msra.gmra.mrb[20].mxu1 %vm463_vm2, %v947_v27  ;;  %v120_v27 = vld [vmem:[%s6753_s7 + $0xc8] sm:$0xff] }
 0x671   :  { %5094 = vmatpush3.bf16.msra.mxu1 %v5710_v22  ;;  %5101 = vmatprep.mubr.msk.bf16.mxu1 %vm5474_vm1, %v5473_v15 }
 0x672   :  { %5095 = vmatprep.subr.bf16.mxu1 %v5473_v15 }
 0x675   :  { %5096 = vmatpush3.bf16.msra.mxu1 %v5717_v24 }
 0x676   :  { %5097 = vmatprep.subr.bf16.mxu1 %v5473_v15 }
 0x679   :  { %5098 = vmatpush3.bf16.msra.mxu1 %v5726_v25 }
 0x67a   :  { %5099 = vmatprep.subr.bf16.mxu1 %v5473_v15 }
 0x67d   :  { %5100 = vmatpush3.bf16.msra.mxu1 %v5733_v26 }
 0x67e   :  { %1379 = vmatprep.subr.bf16.mxu1 %v4300_v9  ;;  %v114_v9 = vld [vmem:[%s6753_s7 + $0x98] sm:$0xff] }
 0x67f   :  { %v4319_v30 = vcombine.low %v114_v9, %v118_v10 }
 0x695   :  { %v1089_v45 = vpop.xlane.xlu0 %1088 }
 0x696   :  { %v1094_v48 = vmul.f32 0.015625, %v1089_v45 }
 0x698   :  { %v5805_v50 = vsub.f32 %v1083_v23, %v1094_v48  ;;  %v4308_v23 = vcombine.high %v104_v14, %v108_v17  ;;  %v4320_v17 = vcombine.high %v114_v9, %v118_v10 }
 0x69a   :  { %v1098_v59 = vmul.f32 %v5805_v50, %v5805_v50 }
 0x69c   :  { %v1100_v60 = vsel %vm320_vm0, %v1098_v59, 0.0 }
 0x73b   :  { %v879_v39 = vpop.f32.mrb[16].mxu1 }
 0x73c   :  { %v885_v40 = vpack.c.bf16 %v879_v39, %v879_v39  ;;  %v5067_v41 = vpop.f32.mrb[17].mxu1  ;;  %v4321_v39 = vcombine.low %v119_v12, %v123_v55 }
 0x73d   :  { %v882_v42 = vpop.f32.mrb[18].mxu1  ;;  %v124_v41 = vld [vmem:[%s6753_s7 + $0xe8] sm:$0xff] }
 0x73e   :  { %v5068_v22 = vpop.f32.mrb[19].mxu1  ;;  %5102 = vmatmul.mubr.msk.bf16.vlgmr.msra.gmra.mrb[24].mxu1 %vm320_vm0, %v885_v40  ;;  %v4322_v40 = vcombine.high %v119_v12, %v123_v55  ;;  %v97_v42 = vld [vmem:[%s6753_s7 + $0x10] sm:$0xff]  ;;  %v5245_v12 = vld [vmem:[%s6755_s9 + $0xc0] sm:$0xff]  }
 0x73f   :  { %1411 = vmatprep.mubr.bf16.mxu1 %v5472_v2  ;;  %1380 = vmatpush1.bf16.msra.mxu1 %v4299_v8  ;;  %v101_v22 = vld [vmem:[%s6753_s7 + $0x30] sm:$0xff]  ;;  %v5246_v55 = vld [vmem:[%s6755_s9] sm:$0xff]  }
 0x740   :  { %1381 = vmatprep.subr.bf16.mxu1 %v4308_v23  ;;  %v117_v8 = vld [vmem:[%s6753_s7 + $0xb0] sm:$0xff]  ;;  %v122_v23 = vld [vmem:[%s6753_s7 + $0xd8] sm:$0xff] }
 0x741   :  { %v4328_v32 = vcombine.high %v122_v23, %v126_v28 }
 0x743   :  { %v990_v43 = vpop.f32.mrb[20].mxu1  ;;  %1382 = vmatpush1.bf16.msra.mxu1 %v4307_v20  ;;  %v125_v20 = vld [vmem:[%s6753_s7 + $0xf0] sm:$0xff] }
 0x744   :  { %v996_v44 = vpack.c.bf16 %v990_v43, %v990_v43  ;;  %v5079_v24 = vpop.f32.mrb[21].mxu1  ;;  %1383 = vmatprep.subr.bf16.mxu1 %v4316_v38  ;;  %v4323_v43 = vcombine.low %v120_v27, %v124_v41  ;;  %v5244_v38 = vld [vmem:[%s6755_s9 + $0x40] sm:$0xff]  }
 0x745   :  { %v993_v21 = vpop.f32.mrb[22].mxu1  ;;  %v4301_v24 = vcombine.low %v97_v42, %v101_v22 }
 0x746   :  { %v5080_v19 = vpop.f32.mrb[23].mxu1  ;;  %5090 = vmatmul.mubr.msk.bf16.vlgmr.msra.gmra.mrb[24].mxu0 %vm320_vm0, %v996_v44  ;;  %v4324_v44 = vcombine.high %v120_v27, %v124_v41  ;;  %v4302_v21 = vcombine.high %v97_v42, %v101_v22  ;;  %v5247_v27 = vld [vmem:[%s6755_s9 + $0x80] sm:$0xff]   ;;  %v5250_v41 = vld [vmem:[%s6755_s9 + $0x8] sm:$0xff]   ;;  %v5252_v22 = vld [vmem:[%s6755_s9 + $0x50] sm:$0xff]  }
 0x747   :  { %1368 = vmatprep.mubr.bf16.mxu0 %v5472_v2  ;;  %1384 = vmatpush1.bf16.msra.mxu1 %v4315_v37  ;;  %v98_v19 = vld [vmem:[%s6753_s7 + $0x18] sm:$0xff]  ;;  %v4327_v37 = vcombine.low %v122_v23, %v126_v28  ;;  %v5251_v42 = vld [vmem:[%s6755_s9 + $0x88] sm:$0xff]  }
 0x748   :  { %1385 = vmatprep.subr.bf16.mxu1 %v4324_v44  ;;  %v5254_v44 = vld [vmem:[%s6755_s9 + $0x10] sm:$0xff]  }
 0x74b   :  { %1386 = vmatpush1.bf16.msra.mxu1 %v4323_v43  ;;  %v5253_v43 = vld [vmem:[%s6755_s9 + $0xd0] sm:$0xff]  }
 0x811   :  { %v1077_v25 = vpop.f32.mrb[24].mxu1 }
 0x812   :  { %v5103_v26 = vpop.f32.mrb[25].mxu1 }
 0x813   :  { %v1080_v46 = vpop.f32.mrb[26].mxu1 }
 0x814   :  { %v5104_v47 = vpop.f32.mrb[27].mxu1 }
 0x819   :  { %v1034_v49 = vpop.f32.mrb[24].mxu0 }
 0x81a   :  { %v1078_v51 = vadd.f32 %v1077_v25, %v1034_v49  ;;  %v5091_v52 = vpop.f32.mrb[25].mxu0  ;;  %v102_v25 = vld [vmem:[%s6753_s7 + $0x38] sm:$0xff] }
 0x81b   :  { %v1037_v53 = vpop.f32.mrb[26].mxu0  ;;  %v4303_v26 = vcombine.low %v98_v19, %v102_v25  ;;  %v4304_v45 = vcombine.high %v98_v19, %v102_v25  ;;  %v5257_v19 = vld [vmem:[%s6755_s9 + $0xd8] sm:$0xff]  }
 0x81c   :  { %v5092_v54 = vpop.f32.mrb[27].mxu0  ;;  %v1084_v56 = vadd.f32 %v1078_v51, %v5595_v13  ;;  %v95_v13 = vld [vmem:[%s6753_s7] sm:$0xff]  ;;  %v5258_v25 = vld [vmem:[%s6755_s9 + $0x18] sm:$0xff]  }
 0x81d   :  { %v4298_v5 = vcombine.high %v95_v13, %v99_v3  ;;  %v4297_v7 = vcombine.low %v95_v13, %v99_v3  ;;  %1465 = vmatprep.subr.bf16.mxu1 %v4304_v45  ;;  %v5260_v45 = vld [vmem:[%s6755_s9 + $0x60] sm:$0xff]  }
 0x81e   :  { %v1090_v58 = vsel %vm320_vm0, %v1084_v56, 0.0 }
 0x81f   :  { %1091 = vadd.xlane.f32.xlu1 %v1090_v58  ;;  %1336 = vmatprep.subr.bf16.mxu0 %v4298_v5 }
 0x820   :  { %1337 = vmatpush1.bf16.msra.mxu0 %v4297_v7  ;;  %v113_v7 = vld [vmem:[%s6753_s7 + $0x90] sm:$0xff] }
 0x821   :  { %1338 = vmatprep.subr.bf16.mxu0 %v4306_v16  ;;  %v4318_v16 = vcombine.high %v113_v7, %v117_v8  ;;  %v4317_v29 = vcombine.low %v113_v7, %v117_v8 }
 0x823   :  { %1101 = vadd.xlane.f32.xlu1 %v1100_v60 }
 0x824   :  { %1339 = vmatpush1.bf16.msra.mxu0 %v4305_v18  ;;  %v121_v18 = vld [vmem:[%s6753_s7 + $0xd0] sm:$0xff] }
 0x825   :  { %1340 = vmatprep.subr.bf16.mxu0 %v4314_v31  ;;  %v4326_v31 = vcombine.high %v121_v18, %v125_v20 }
 0x828   :  { %1341 = vmatpush1.bf16.msra.mxu0 %v4313_v34  ;;  %v4325_v34 = vcombine.low %v121_v18, %v125_v20 }
 0x829   :  { %1342 = vmatprep.subr.bf16.mxu0 %v4322_v40  ;;  %v5249_v40 = vld [vmem:[%s6755_s9 + $0xc8] sm:$0xff]  }
 0x82c   :  { %1343 = vmatpush1.bf16.msra.mxu0 %v4321_v39  ;;  %v5248_v39 = vld [vmem:[%s6755_s9 + $0x48] sm:$0xff]  }
 0x82d   :  { %1422 = vmatprep.subr.bf16.mxu0 %v4302_v21  ;;  %v5256_v21 = vld [vmem:[%s6755_s9 + $0x58] sm:$0xff]  }
 0x8ac   :  { %v1092_v61 = vpop.xlane.xlu1 %1091 }
 0x8ad   :  { %v1095_v62 = vmul.f32 0.015625, %v1092_v61  ;;  %v4296_v61 = vld [vmem:[%s6752_s6] ss:$0 sm:$0xff] }
 0x8af   :  { %v5812_v63 = vsub.f32 %v1084_v56, %v1095_v62  ;;  %v4295_v56 = vld [vmem:[%s6751_s5] ss:$0 sm:$0xff] }
 0x8b0   :  { %v1102_v46 = vpop.xlane.xlu1 %1101 }
 0x8b1   :  { %v1099_v0 = vmul.f32 %v5812_v63, %v5812_v63  ;;  %v1106_v47 = vmul.f32 0.015625, %v1102_v46  ;;  %v5261_v46 = vld [vmem:[%s6755_s9 + $0xe0] sm:$0xff]  }
 0x8b3   :  { %v1103_v1 = vsel %vm320_vm0, %v1099_v0, 0.0  ;;  %v1108_v48 = vadd.f32 1e-06, %v1106_v47  ;;  %v105_v0 = vld [vmem:[%s6753_s7 + $0x50] sm:$0xff]  ;;  %v5262_v47 = vld [vmem:[%s6755_s9 + $0x20] sm:$0xff]  }
 0x8b4   :  { %1104 = vadd.xlane.f32.xlu1 %v1103_v1  ;;  %v106_v1 = vld [vmem:[%s6753_s7 + $0x58] sm:$0xff] }
 0x8b5   :  { %5412 = vrsqrt.f32 %v1108_v48  ;;  %v5263_v48 = vld [vmem:[%s6755_s9 + $0xa0] sm:$0xff]  }
 0x8bf   :  { %v5413_v53 = vpop.eup %5412 }
 0x8c0   :  { %v1112_v54 = vmul.f32 %v5413_v53, %v5805_v50  ;;  %v109_v50 = vld [vmem:[%s6753_s7 + $0x70] sm:$0xff]  ;;  %v5267_v53 = vld [vmem:[%s6755_s9 + $0xa8] sm:$0xff]  }
 0x8c1   :  { %v4310_v5 = vcombine.high %v105_v0, %v109_v50  ;;  %v4309_v11 = vcombine.low %v105_v0, %v109_v50  ;;  %v5275_v0 = vld [vmem:[%s6755_s9 + $0xb8] sm:$0xff]   ;;  %v5276_v50 = vld [vmem:[%s6755_s9 + $0x140] sm:$0xff]  }
 0x8c2   :  { %v1120_v59 = vmul.f32 %v4295_v56, %v1112_v54  ;;  %v5268_v54 = vld [vmem:[%s6755_s9 + $0x70] sm:$0xff]  }
 0x8c4   :  { %v5897_v13 = vadd.f32 %v4296_v61, %v1120_v59  ;;  %v5271_v59 = vld [vmem:[%s6755_s9 + $0xb0] sm:$0xff]  }
 0x941   :  { %v1105_v49 = vpop.xlane.xlu1 %1104 }
 0x942   :  { %v1107_v51 = vmul.f32 0.015625, %v1105_v49  ;;  %v5264_v49 = vld [vmem:[%s6755_s9 + $0x68] sm:$0xff]  }
 0x944   :  { %v1109_v52 = vadd.f32 1e-06, %v1107_v51  ;;  %v5265_v51 = vld [vmem:[%s6755_s9 + $0xe8] sm:$0xff]  }
 0x946   :  { %5414 = vrsqrt.f32 %v1109_v52  ;;  %v5266_v52 = vld [vmem:[%s6755_s9 + $0x28] sm:$0xff]  }
 0x950   :  { %v5415_v58 = vpop.eup %5414 }
 0x951   :  { %v1113_v60 = vmul.f32 %v5415_v58, %v5812_v63  ;;  %v110_v63 = vld [vmem:[%s6753_s7 + $0x78] sm:$0xff]  ;;  %v5270_v58 = vld [vmem:[%s6755_s9 + $0x30] sm:$0xff]  }
 0x952   :  { %v4312_v6 = vcombine.high %v106_v1, %v110_v63  ;;  %v4311_v14 = vcombine.low %v106_v1, %v110_v63  ;;  %v5277_v1 = vld [vmem:[%s6755_s9 + $0x1c0] sm:$0xff]   ;;  %v1143_v63 = vsub.s32 2, %v5648_v33 }
 0x953   :  { %v1121_v62 = vmul.f32 %v4295_v56, %v1113_v60  ;;  %v5269_v56 = vld [vmem:[%s6755_s9 + $0xf0] sm:$0xff]   ;;  %v5272_v60 = vld [vmem:[%s6755_s9 + $0x78] sm:$0xff]  }
 0x955   :  { %v5899_v3 = vadd.f32 %v4296_v61, %v1121_v62  ;;  %v5273_v61 = vld [vmem:[%s6755_s9 + $0xf8] sm:$0xff]  }
 0x956   :  { %v5274_v62 = vld [vmem:[%s6755_s9 + $0x38] sm:$0xff]  }
 0x957   :  { %v1130_v4 = vpack.c.bf16 %v5899_v3, %v5897_v13 }
 0x959   :  { %4329 = vmatmul.mubr.msk.bf16.vlgmr.msra.gmra.mrb[28].mxu0 %vm320_vm0, %v1130_v4  ;;  %4330 = vmatmul.mubr.msk.bf16.vlgmr.msra.gmra.mrb[28].mxu1 %vm320_vm0, %v1130_v4 }
 0x95a   :  { %1423 = vmatpush1.bf16.msra.mxu0 %v4301_v24  ;;  %1466 = vmatpush1.bf16.msra.mxu1 %v4303_v26  ;;  %v5255_v24 = vld [vmem:[%s6755_s9 + $0x90] sm:$0xff]   ;;  %v5259_v26 = vld [vmem:[%s6755_s9 + $0x98] sm:$0xff]  }
 0x95b   :  { %1424 = vmatprep.subr.bf16.mxu0 %v4310_v5  ;;  %1467 = vmatprep.subr.bf16.mxu1 %v4312_v6  ;;  %v1139_v5 = vsub.s32 1, %v5648_v33  ;;  %v1147_v6 = vsub.s32 3, %v5648_v33 }
 0x95c   :  { %1454 = vmatprep.mubr.bf16.mxu0 %v5472_v2  ;;  %1497 = vmatprep.mubr.bf16.mxu1 %v5472_v2 }
 0x95e   :  { %1425 = vmatpush1.bf16.msra.mxu0 %v4309_v11  ;;  %1468 = vmatpush1.bf16.msra.mxu1 %v4311_v14 }
 0x95f   :  { %1426 = vmatprep.subr.bf16.mxu0 %v4318_v16  ;;  %1469 = vmatprep.subr.bf16.mxu1 %v4320_v17 }
 0x962   :  { %1427 = vmatpush1.bf16.msra.mxu0 %v4317_v29  ;;  %1470 = vmatpush1.bf16.msra.mxu1 %v4319_v30 }
 0x963   :  { %1428 = vmatprep.subr.bf16.mxu0 %v4326_v31  ;;  %1471 = vmatprep.subr.bf16.mxu1 %v4328_v32 }
 0x966   :  { %1429 = vmatpush1.bf16.msra.mxu0 %v4325_v34  ;;  %1472 = vmatpush1.bf16.msra.mxu1 %v4327_v37 }
 0x967   :  { %4780 = vmatprep.subr.bf16.mxu0 %v5244_v38  ;;  %4802 = vmatprep.subr.bf16.mxu1 %v5245_v12 }
 0x969   :  { %4331 = vmatmul.mubr.msk.bf16.vlgmr.msra.gmra.mrb[32].mxu0 %vm320_vm0, %v1130_v4  ;;  %4332 = vmatmul.mubr.msk.bf16.vlgmr.msra.gmra.mrb[32].mxu1 %vm320_vm0, %v1130_v4  ;;  %v1131_v4 = vld [vmem:[%s6754_s8] sm:$0xff] }
 0x96a   :  { %4781 = vmatpush3.bf16.msra.mxu0 %v5246_v55  ;;  %4803 = vmatpush3.bf16.msra.mxu1 %v5247_v27  ;;  %v1136_v7 = vrot.slane %v1131_v4, %v5651_v35  ;;  %v1144_v8 = vrot.slane %v1131_v4, %v1143_v63  ;;  %v1140_v9 = vrot.slane %v1131_v4, %v1139_v5 }
 0x96b   :  { %4782 = vmatprep.subr.bf16.mxu0 %v5248_v39  ;;  %4804 = vmatprep.subr.bf16.mxu1 %v5249_v40  ;;  %v1148_v10 = vrot.slane %v1131_v4, %v1147_v6 }
 0x96e   :  { %4783 = vmatpush3.bf16.msra.mxu0 %v5250_v41  ;;  %4805 = vmatpush3.bf16.msra.mxu1 %v5251_v42 }
 0x96f   :  { %4784 = vmatprep.subr.bf16.mxu0 %v5252_v22  ;;  %4806 = vmatprep.subr.bf16.mxu1 %v5253_v43 }
 0x972   :  { %4785 = vmatpush3.bf16.msra.mxu0 %v5254_v44  ;;  %4807 = vmatpush3.bf16.msra.mxu1 %v5255_v24 }
 0x973   :  { %4786 = vmatprep.subr.bf16.mxu0 %v5256_v21  ;;  %4808 = vmatprep.subr.bf16.mxu1 %v5257_v19 }
 0x976   :  { %4787 = vmatpush3.bf16.msra.mxu0 %v5258_v25  ;;  %4809 = vmatpush3.bf16.msra.mxu1 %v5259_v26  ;;  %v5278_v25 = vld [vmem:[%s6755_s9 + $0x100] sm:$0xff]  }
 0x977   :  { %4788 = vmatprep.subr.bf16.mxu0 %v5260_v45  ;;  %4810 = vmatprep.subr.bf16.mxu1 %v5261_v46  ;;  %v5279_v26 = vld [vmem:[%s6755_s9 + $0x180] sm:$0xff]   ;;  %v5280_v45 = vld [vmem:[%s6755_s9 + $0x148] sm:$0xff]  }
 0x978   :  { %v5281_v46 = vld [vmem:[%s6755_s9 + $0x1c8] sm:$0xff]  }
 0x97a   :  { %4789 = vmatpush3.bf16.msra.mxu0 %v5262_v47  ;;  %4811 = vmatpush3.bf16.msra.mxu1 %v5263_v48  ;;  %v1151_v47 = vsub.s32 4, %v5648_v33  ;;  %v1159_v48 = vsub.s32 6, %v5648_v33 }
 0x97b   :  { %4790 = vmatprep.subr.bf16.mxu0 %v5264_v49  ;;  %4812 = vmatprep.subr.bf16.mxu1 %v5265_v51  ;;  %v1155_v49 = vsub.s32 5, %v5648_v33  ;;  %v1163_v51 = vsub.s32 7, %v5648_v33  ;;  %v5376_v33 = vld [vmem:[%s6755_s9 + $0x358] sm:$0xff]  }
 0x97e   :  { %4791 = vmatpush3.bf16.msra.mxu0 %v5266_v52  ;;  %4813 = vmatpush3.bf16.msra.mxu1 %v5267_v53  ;;  %v5282_v52 = vld [vmem:[%s6755_s9 + $0x108] sm:$0xff]  }
 0x97f   :  { %4792 = vmatprep.subr.bf16.mxu0 %v5268_v54  ;;  %4814 = vmatprep.subr.bf16.mxu1 %v5269_v56  ;;  %v5283_v53 = vld [vmem:[%s6755_s9 + $0x188] sm:$0xff]   ;;  %v1152_v54 = vrot.slane %v1131_v4, %v1151_v47  ;;  %v1160_v56 = vrot.slane %v1131_v4, %v1159_v48 }
 0x982   :  { %4793 = vmatpush3.bf16.msra.mxu0 %v5270_v58  ;;  %4815 = vmatpush3.bf16.msra.mxu1 %v5271_v59  ;;  %v5284_v58 = vld [vmem:[%s6755_s9 + $0x150] sm:$0xff]  }
 0x983   :  { %4794 = vmatprep.subr.bf16.mxu0 %v5272_v60  ;;  %4816 = vmatprep.subr.bf16.mxu1 %v5273_v61  ;;  %v5285_v59 = vld [vmem:[%s6755_s9 + $0x1d0] sm:$0xff]   ;;  %v1156_v60 = vrot.slane %v1131_v4, %v1155_v49  ;;  %v1164_v61 = vrot.slane %v1131_v4, %v1163_v51  ;;  %v5288_v4 = vld [vmem:[%s6755_s9 + $0x158] sm:$0xff]  }
 0x986   :  { %4795 = vmatpush3.bf16.msra.mxu0 %v5274_v62  ;;  %4817 = vmatpush3.bf16.msra.mxu1 %v5275_v0 }
 0x987   :  { %4824 = vmatprep.subr.bf16.mxu0 %v5276_v50  ;;  %4846 = vmatprep.subr.bf16.mxu1 %v5277_v1  ;;  %v5286_v50 = vld [vmem:[%s6755_s9 + $0x110] sm:$0xff]  }
 0x988   :  { %v5287_v1 = vld [vmem:[%s6755_s9 + $0x190] sm:$0xff]  }
 0xa2c   :  { %v1370_v11 = vpop.f32.mrb[28].mxu0  ;;  %v1413_v14 = vpop.f32.mrb[28].mxu1 }
 0xa2d   :  { %v1371_v16 = vadd.f32 %v1370_v11, %v1136_v7  ;;  %v1414_v17 = vadd.f32 %v1413_v14, %v1144_v8  ;;  %v1372_v18 = vpop.f32.mrb[29].mxu0  ;;  %v1415_v20 = vpop.f32.mrb[29].mxu1  ;;  %v5289_v11 = vld [vmem:[%s6755_s9 + $0x1d8] sm:$0xff]  }
 0xa2e   :  { %v1373_v23 = vadd.f32 %v1372_v18, %v1140_v9  ;;  %v1416_v28 = vadd.f32 %v1415_v20, %v1148_v10  ;;  %v1374_v29 = vpop.f32.mrb[30].mxu0  ;;  %v1417_v30 = vpop.f32.mrb[30].mxu1 }
 0xa2f   :  { %v1375_v31 = vadd.f32 %v1374_v29, %v1136_v7  ;;  %v1418_v32 = vadd.f32 %v1417_v30, %v1144_v8  ;;  %v1376_v34 = vpop.f32.mrb[31].mxu0  ;;  %v1419_v37 = vpop.f32.mrb[31].mxu1  ;;  %v1508_v55 = vmax.f32 %v1371_v16, 0.0  ;;  %v1510_v27 = vmax.f32 %v1414_v17, 0.0 }
 0xa30   :  { %v1377_v38 = vadd.f32 %v1376_v34, %v1140_v9  ;;  %v1420_v12 = vadd.f32 %v1419_v37, %v1148_v10  ;;  %v1509_v41 = vmax.f32 %v1373_v23, 0.0  ;;  %v1511_v42 = vmax.f32 %v1416_v28, 0.0  ;;  %v5291_v34 = vld [vmem:[%s6755_s9 + $0x198] sm:$0xff]  }
 0xa31   :  { %v1516_v39 = vmax.f32 %v1375_v31, 0.0  ;;  %v1518_v40 = vmax.f32 %v1418_v32, 0.0  ;;  %v5290_v32 = vld [vmem:[%s6755_s9 + $0x118] sm:$0xff]  }
 0xa32   :  { %v1517_v22 = vmax.f32 %v1377_v38, 0.0  ;;  %v1519_v43 = vmax.f32 %v1420_v12, 0.0 }
 0xa33   :  { %v1524_v44 = vpack.c.bf16 %v1516_v39, %v1508_v55  ;;  %v1526_v24 = vpack.c.bf16 %v1518_v40, %v1510_v27  ;;  %v5292_v27 = vld [vmem:[%s6755_s9 + $0x160] sm:$0xff]  }
 0xa34   :  { %v1525_v21 = vpack.c.bf16 %v1517_v22, %v1509_v41  ;;  %v1527_v19 = vpack.c.bf16 %v1519_v43, %v1511_v42  ;;  %v5293_v39 = vld [vmem:[%s6755_s9 + $0x1e0] sm:$0xff]  }
 0xa36   :  { %1955 = vmatprep.mubr.bf16.mxu0 %v1525_v21  ;;  %1996 = vmatprep.mubr.bf16.mxu1 %v1527_v19  ;;  %v5294_v19 = vld [vmem:[%s6755_s9 + $0x120] sm:$0xff]  }
 0xa37   :  { %1956 = vmatmul.mubr.bf16.vlgmr.msra.gmra.mrb[36].mxu0 %v1524_v44  ;;  %1997 = vmatmul.mubr.bf16.vlgmr.msra.gmra.mrb[36].mxu1 %v1526_v24 }
 0xa38   :  { %4825 = vmatpush3.bf16.msra.mxu0 %v5278_v25  ;;  %4847 = vmatpush3.bf16.msra.mxu1 %v5279_v26  ;;  %v5295_v25 = vld [vmem:[%s6755_s9 + $0x1a0] sm:$0xff]   ;;  %v5296_v26 = vld [vmem:[%s6755_s9 + $0x168] sm:$0xff]  }
 0xa39   :  { %4826 = vmatprep.subr.bf16.mxu0 %v5280_v45  ;;  %4848 = vmatprep.subr.bf16.mxu1 %v5281_v46  ;;  %v5297_v45 = vld [vmem:[%s6755_s9 + $0x1e8] sm:$0xff]  }
 0xa3a   :  { %v5298_v46 = vld [vmem:[%s6755_s9 + $0x128] sm:$0xff]  }
 0xa3c   :  { %v1456_v62 = vpop.f32.mrb[32].mxu0  ;;  %v1499_v0 = vpop.f32.mrb[32].mxu1  ;;  %4827 = vmatpush3.bf16.msra.mxu0 %v5282_v52  ;;  %4849 = vmatpush3.bf16.msra.mxu1 %v5283_v53  ;;  %v5299_v52 = vld [vmem:[%s6755_s9 + $0x1a8] sm:$0xff]   ;;  %v5300_v53 = vld [vmem:[%s6755_s9 + $0x170] sm:$0xff]  }
 0xa3d   :  { %v1457_v7 = vadd.f32 %v1456_v62, %v1152_v54  ;;  %v1500_v8 = vadd.f32 %v1499_v0, %v1160_v56  ;;  %v1458_v9 = vpop.f32.mrb[33].mxu0  ;;  %v1501_v10 = vpop.f32.mrb[33].mxu1  ;;  %4828 = vmatprep.subr.bf16.mxu0 %v5284_v58  ;;  %4850 = vmatprep.subr.bf16.mxu1 %v5285_v59  ;;  %v5303_v58 = vld [vmem:[%s6755_s9 + $0x1b0] sm:$0xff]   ;;  %v5304_v59 = vld [vmem:[%s6755_s9 + $0x178] sm:$0xff]  }
 0xa3e   :  { %v1459_v14 = vadd.f32 %v1458_v9, %v1156_v60  ;;  %v1502_v16 = vadd.f32 %v1501_v10, %v1164_v61  ;;  %v1460_v17 = vpop.f32.mrb[34].mxu0  ;;  %v1503_v18 = vpop.f32.mrb[34].mxu1  ;;  %v5307_v62 = vld [vmem:[%s6755_s9 + $0x1b8] sm:$0xff]  }
 0xa3f   :  { %v1461_v20 = vadd.f32 %v1460_v17, %v1152_v54  ;;  %v1504_v23 = vadd.f32 %v1503_v18, %v1160_v56  ;;  %v1462_v28 = vpop.f32.mrb[35].mxu0  ;;  %v1505_v29 = vpop.f32.mrb[35].mxu1  ;;  %v1512_v37 = vmax.f32 %v1457_v7, 0.0  ;;  %v1514_v38 = vmax.f32 %v1500_v8, 0.0  ;;  %v5301_v54 = vld [vmem:[%s6755_s9 + $0x1f0] sm:$0xff]  }
 0xa40   :  { %v1463_v30 = vadd.f32 %v1462_v28, %v1156_v60  ;;  %v1506_v31 = vadd.f32 %v1505_v29, %v1164_v61  ;;  %4829 = vmatpush3.bf16.msra.mxu0 %v5286_v50  ;;  %4851 = vmatpush3.bf16.msra.mxu1 %v5287_v1  ;;  %v1513_v40 = vmax.f32 %v1459_v14, 0.0  ;;  %v1515_v41 = vmax.f32 %v1502_v16, 0.0  ;;  %v5302_v56 = vld [vmem:[%s6755_s9 + $0x130] sm:$0xff]   ;;  %v5305_v60 = vld [vmem:[%s6755_s9 + $0x1f8] sm:$0xff]   ;;  %v4333_v1 = vld [vmem:[%s6756_s10] ss:$0 sm:$0xff] }
 0xa41   :  { %v1520_v12 = vmax.f32 %v1461_v20, 0.0  ;;  %v1522_v55 = vmax.f32 %v1504_v23, 0.0  ;;  %4830 = vmatprep.subr.bf16.mxu0 %v5288_v4  ;;  %4852 = vmatprep.subr.bf16.mxu1 %v5289_v11  ;;  %v5306_v61 = vld [vmem:[%s6755_s9 + $0x138] sm:$0xff]  }
 0xa42   :  { %v1521_v42 = vmax.f32 %v1463_v30, 0.0  ;;  %v1523_v22 = vmax.f32 %v1506_v31, 0.0 }
 0xa43   :  { %v1528_v43 = vpack.c.bf16 %v1520_v12, %v1512_v37  ;;  %v1530_v44 = vpack.c.bf16 %v1522_v55, %v1514_v38 }
 0xa44   :  { %v1529_v24 = vpack.c.bf16 %v1521_v42, %v1513_v40  ;;  %v1531_v21 = vpack.c.bf16 %v1523_v22, %v1515_v41  ;;  %4831 = vmatpush3.bf16.msra.mxu0 %v5290_v32  ;;  %4853 = vmatpush3.bf16.msra.mxu1 %v5291_v34 }
 0xa45   :  { %4832 = vmatprep.subr.bf16.mxu0 %v5292_v27  ;;  %4854 = vmatprep.subr.bf16.mxu1 %v5293_v39 }
 0xa46   :  { %2037 = vmatprep.mubr.bf16.mxu0 %v1529_v24  ;;  %2078 = vmatprep.mubr.bf16.mxu1 %v1531_v21 }
 0xa48   :  { %4833 = vmatpush3.bf16.msra.mxu0 %v5294_v19  ;;  %4855 = vmatpush3.bf16.msra.mxu1 %v5295_v25 }
 0xa49   :  { %4834 = vmatprep.subr.bf16.mxu0 %v5296_v26  ;;  %4856 = vmatprep.subr.bf16.mxu1 %v5297_v45 }
 0xa4c   :  { %4835 = vmatpush3.bf16.msra.mxu0 %v5298_v46  ;;  %4857 = vmatpush3.bf16.msra.mxu1 %v5299_v52 }
 0xa4d   :  { %4836 = vmatprep.subr.bf16.mxu0 %v5300_v53  ;;  %4858 = vmatprep.subr.bf16.mxu1 %v5301_v54 }
 0xa50   :  { %4837 = vmatpush3.bf16.msra.mxu0 %v5302_v56  ;;  %4859 = vmatpush3.bf16.msra.mxu1 %v5303_v58 }
 0xa51   :  { %4838 = vmatprep.subr.bf16.mxu0 %v5304_v59  ;;  %4860 = vmatprep.subr.bf16.mxu1 %v5305_v60  ;;  %v5308_v60 = vld [vmem:[%s6749_s3 + $0x60] ss:$12 sps:$4 sm:$0xff]  }
 0xa54   :  { %4839 = vmatpush3.bf16.msra.mxu0 %v5306_v61  ;;  %4861 = vmatpush3.bf16.msra.mxu1 %v5307_v62  ;;  %v5311_v61 = vld [vmem:[%s6749_s3 + $0x68] ss:$12 sps:$4 sm:$0xff]  }
 0xa55   :  { %5105 = vmatprep.subr.bf16.mxu1 %v5473_v15  ;;  %v5314_v62 = vld [vmem:[%s6749_s3 + $0x7c] ss:$12 sps:$4 sm:$0xff]  }
 0xa57   :  { %2038 = vmatmul.mubr.bf16.vlgmr.msra.gmra.mrb[40].mxu0 %v1528_v43  ;;  %2079 = vmatmul.mubr.bf16.vlgmr.msra.gmra.mrb[40].mxu1 %v1530_v44 }
 0xa58   :  { %2429 = vmatprep.mubr.bf16.mxu0 %v5472_v2  ;;  %5113 = vmatprep.mubr.msk.bf16.mxu1 %vm5474_vm1, %v5473_v15 }
 0xa59   :  { %5106 = vmatpush3.bf16.msra.mxu1 %v5311_v61 }
 0xa5a   :  { %5107 = vmatprep.subr.bf16.mxu1 %v5473_v15 }
 0xb0a   :  { %v4796_v0 = vpop.f32.mrb[36].mxu0  ;;  %v4818_v50 = vpop.f32.mrb[36].mxu1 }
 0xb0b   :  { %v4797_v7 = vpop.f32.mrb[37].mxu0  ;;  %v4819_v8 = vpop.f32.mrb[37].mxu1 }
 0xb0c   :  { %v4798_v9 = vadd.f32 %v4797_v7, %v4796_v0  ;;  %v4820_v10 = vadd.f32 %v4819_v8, %v4818_v50  ;;  %v4799_v4 = vpop.f32.mrb[38].mxu0  ;;  %v4821_v11 = vpop.f32.mrb[38].mxu1  ;;  %v5312_v0 = vld [vmem:[%s6749_s3 + $0x78] ss:$12 sps:$4 sm:$0xff]   ;;  %v5315_v50 = vld [vmem:[%s6749_s3 + $0x80] ss:$12 sps:$4 sm:$0xff]  }
 0xb0d   :  { %v4800_v14 = vpop.f32.mrb[39].mxu0  ;;  %v4822_v16 = vpop.f32.mrb[39].mxu1  ;;  %5108 = vmatpush3.bf16.msra.mxu1 %v5315_v50  ;;  %v5316_v7 = vld [vmem:[%s6749_s3 + $0x90] ss:$12 sps:$4 sm:$0xff]   ;;  %v5319_v8 = vld [vmem:[%s6749_s3 + $0x98] ss:$12 sps:$4 sm:$0xff]  }
 0xb0e   :  { %v1958_v17 = vadd.f32 %v4798_v9, %v4333_v1  ;;  %v4801_v18 = vadd.f32 %v4800_v14, %v4799_v4  ;;  %v4823_v20 = vadd.f32 %v4822_v16, %v4821_v11  ;;  %5109 = vmatprep.subr.bf16.mxu1 %v5473_v15  ;;  %v5320_v9 = vld [vmem:[%s6749_s3 + $0xa8] ss:$12 sps:$4 sm:$0xff]   ;;  %v5323_v4 = vld [vmem:[%s6749_s3 + $0xb0] ss:$12 sps:$4 sm:$0xff]  }
 0xb10   :  { %v1999_v23 = vadd.f32 %v4820_v10, %v1958_v17  ;;  %v1961_v28 = vadd.f32 %v4801_v18, %v4333_v1  ;;  %v5318_v1 = vld [vmem:[%s6749_s3 + $0x94] ss:$12 sps:$4 sm:$0xff]   ;;  %v5322_v10 = vld [vmem:[%s6749_s3 + $0xac] ss:$12 sps:$4 sm:$0xff]  }
 0xb11   :  { %5110 = vmatpush3.bf16.msra.mxu1 %v5319_v8 }
 0xb12   :  { %v2002_v29 = vadd.f32 %v4823_v20, %v1961_v28  ;;  %5111 = vmatprep.subr.bf16.mxu1 %v5473_v15 }
 0xb15   :  { %5112 = vmatpush3.bf16.msra.mxu1 %v5323_v4 }
 0xb16   :  { %5123 = vmatprep.subr.bf16.mxu1 %v5473_v15 }
 0xb2a   :  { %v4840_v30 = vpop.f32.mrb[40].mxu0  ;;  %v4862_v31 = vpop.f32.mrb[40].mxu1 }
 0xb2b   :  { %v4841_v32 = vpop.f32.mrb[41].mxu0  ;;  %v4863_v34 = vpop.f32.mrb[41].mxu1 }
 0xb2c   :  { %v4842_v37 = vadd.f32 %v4841_v32, %v4840_v30  ;;  %v4864_v38 = vadd.f32 %v4863_v34, %v4862_v31  ;;  %v4843_v12 = vpop.f32.mrb[42].mxu0  ;;  %v4865_v55 = vpop.f32.mrb[42].mxu1  ;;  %v4399_v34 = vld [vmem:[%s6758_s12] ss:$0 sm:$0xff] }
 0xb2d   :  { %v4844_v27 = vpop.f32.mrb[43].mxu0  ;;  %v4866_v39 = vpop.f32.mrb[43].mxu1 }
 0xb2e   :  { %v2040_v40 = vadd.f32 %v4842_v37, %v1999_v23  ;;  %v4845_v41 = vadd.f32 %v4844_v27, %v4843_v12  ;;  %v4867_v42 = vadd.f32 %v4866_v39, %v4865_v55 }
 0xb30   :  { %v2081_v22 = vadd.f32 %v4864_v38, %v2040_v40  ;;  %v2043_v43 = vadd.f32 %v4845_v41, %v2002_v29  ;;  %v4398_v29 = vld [vmem:[%s6757_s11] ss:$0 sm:$0xff] }
 0xb32   :  { %v2084_v44 = vadd.f32 %v4867_v42, %v2043_v43  ;;  %v2087_v24 = vadd.f32 %v2081_v22, %v5897_v13 }
 0xb34   :  { %v2091_v21 = vsel %vm320_vm0, %v2087_v24, 0.0  ;;  %v2088_v19 = vadd.f32 %v2084_v44, %v5899_v3  ;;  %v5310_v3 = vld [vmem:[%s6749_s3 + $0x64] ss:$12 sps:$4 sm:$0xff]  }
 0xb35   :  { %2092 = vadd.xlane.f32.xlu1 %v2091_v21  ;;  %2397 = vmatprep.subr.bf16.mxu0 %v5310_v3 }
 0xb36   :  { %v2094_v25 = vsel %vm320_vm0, %v2088_v19, 0.0  ;;  %2398 = vmatpush1.bf16.msra.mxu0 %v5308_v60 }
 0xb37   :  { %2399 = vmatprep.subr.bf16.mxu0 %v5314_v62 }
 0xb39   :  { %2095 = vadd.xlane.f32.xlu1 %v2094_v25 }
 0xb3a   :  { %2400 = vmatpush1.bf16.msra.mxu0 %v5312_v0 }
 0xb3b   :  { %2401 = vmatprep.subr.bf16.mxu0 %v5318_v1 }
 0xb3e   :  { %2402 = vmatpush1.bf16.msra.mxu0 %v5316_v7 }
 0xb3f   :  { %2403 = vmatprep.subr.bf16.mxu0 %v5322_v10 }
 0xb42   :  { %2404 = vmatpush1.bf16.msra.mxu0 %v5320_v9 }
 0xb43   :  { %5117 = vmatprep.subr.bf16.mxu0 %v5473_v15 }
 0xbc2   :  { %v2093_v26 = vpop.xlane.xlu1 %2092 }
 0xbc3   :  { %v2097_v45 = vmul.f32 0.015625, %v2093_v26 }
 0xbc5   :  { %v2099_v46 = vsub.f32 %v2087_v24, %v2097_v45 }
 0xbc6   :  { %v2096_v52 = vpop.xlane.xlu1 %2095 }
 0xbc7   :  { %v2098_v53 = vmul.f32 0.015625, %v2096_v52  ;;  %v2101_v54 = vmul.f32 %v2099_v46, %v2099_v46 }
 0xbc9   :  { %v2100_v56 = vsub.f32 %v2088_v19, %v2098_v53  ;;  %v2103_v58 = vsel %vm320_vm0, %v2101_v54, 0.0 }
 0xbca   :  { %2104 = vadd.xlane.f32.xlu1 %v2103_v58 }
 0xbcb   :  { %v2102_v59 = vmul.f32 %v2100_v56, %v2100_v56 }
 0xbcd   :  { %v2106_v13 = vsel %vm320_vm0, %v2102_v59, 0.0 }
 0xbce   :  { %2107 = vadd.xlane.f32.xlu1 %v2106_v13 }
 0xc57   :  { %v2105_v11 = vpop.xlane.xlu1 %2104 }
 0xc58   :  { %v2109_v14 = vmul.f32 0.015625, %v2105_v11 }
 0xc5a   :  { %v2111_v16 = vadd.f32 1e-06, %v2109_v14 }
 0xc5b   :  { %v2108_v17 = vpop.xlane.xlu1 %2107 }
 0xc5c   :  { %5416 = vrsqrt.f32 %v2111_v16  ;;  %v2110_v18 = vmul.f32 0.015625, %v2108_v17 }
 0xc5e   :  { %v2112_v20 = vadd.f32 1e-06, %v2110_v18 }
 0xc60   :  { %5418 = vrsqrt.f32 %v2112_v20 }
 0xc66   :  { %v5417_v23 = vpop.eup %5416 }
 0xc67   :  { %v2115_v28 = vmul.f32 %v5417_v23, %v2099_v46 }
 0xc69   :  { %v2123_v31 = vmul.f32 %v4398_v29, %v2115_v28 }
 0xc6a   :  { %v5419_v30 = vpop.eup %5418 }
 0xc6b   :  { %v2116_v32 = vmul.f32 %v5419_v30, %v2100_v56  ;;  %v6210_v38 = vadd.f32 %v4399_v34, %v2123_v31 }
 0xc6d   :  { %v2124_v37 = vmul.f32 %v4398_v29, %v2116_v32  ;;  %v5328_v32 = vld [vmem:[%s6750_s4 + $0x60] sm:$0xff]  }
 0xc6f   :  { %v6212_v12 = vadd.f32 %v4399_v34, %v2124_v37  ;;  %v5329_v34 = vld [vmem:[%s6750_s4 + $0x68] sm:$0xff]   ;;  %v5330_v37 = vld [vmem:[%s6750_s4 + $0x70] sm:$0xff]  }
 0xc71   :  { %v2329_v55 = vpack.c.bf16 %v6212_v12, %v6210_v38 }
 0xc73   :  { %4604 = vmatmul.mubr.msk.bf16.vlgmr.msra.gmra.mrb[44].mxu0 %vm320_vm0, %v2329_v55  ;;  %5114 = vmatmul.mubr.msk.bf16.vlgmr.msra.gmra.mrb[44].mxu1 %vm320_vm0, %v2329_v55  ;;  %v5331_v55 = vld [vmem:[%s6750_s4 + $0x78] sm:$0xff]  }
 0xc74   :  { %5119 = vmatprep.mubr.msk.bf16.mxu0 %vm5474_vm1, %v5473_v15  ;;  %5125 = vmatprep.mubr.msk.bf16.mxu1 %vm5474_vm1, %v5473_v15 }
 0xd46   :  { %v2431_v27 = vpop.f32.mrb[44].mxu0  ;;  %v2474_v39 = vpop.f32.mrb[44].mxu1 }
 0xd47   :  { %v2433_v40 = vpop.f32.mrb[45].mxu0  ;;  %v5115_v41 = vpop.f32.mrb[45].mxu1 }
 0xd48   :  { %v2435_v42 = vpop.f32.mrb[46].mxu0  ;;  %v2477_v22 = vpop.f32.mrb[46].mxu1  ;;  %v6285_v41 = vld [vmem:[%s6750_s4 + $0x40] sm:$0xff]  }
 0xd49   :  { %v6222_v43 = vpack.c.bf16 %v2435_v42, %v2431_v27  ;;  %v6224_v44 = vpack.c.bf16 %v2477_v22, %v2474_v39  ;;  %v2437_v24 = vpop.f32.mrb[47].mxu0  ;;  %v5116_v21 = vpop.f32.mrb[47].mxu1  ;;  %v6292_v22 = vld [vmem:[%s6750_s4 + $0x48] sm:$0xff]  }
 0xd4a   :  { %v6226_v19 = vpack.c.bf16 %v2437_v24, %v2433_v40  ;;  %v6301_v24 = vld [vmem:[%s6750_s4 + $0x50] sm:$0xff]   ;;  %v6308_v21 = vld [vmem:[%s6750_s4 + $0x58] sm:$0xff]  }
 0xd4b   :  { %2590 = vrot.lane.b32.xlu0 %v6222_v43, %s5475_s0  ;;  %v2546_v25 = vsel %vm479_vm3, %v6224_v44, 0  ;;  %v2837_v4 = vrot.slane %v6222_v43, 4 }
 0xd4c   :  { %5124 = vmatpush3.bf16.msra.mxu1 %v2546_v25  ;;  %2593 = vrot.lane.b32.xlu1 %v6226_v19, %s5475_s0  ;;  %v2488_v26 = vsel %vm320_vm0, %v6226_v19, 0  ;;  %v2838_v18 = vrot.slane %v6226_v19, 4  ;;  %v2897_v19 = vrot.slane %v6224_v44, 4 }
 0xd4d   :  { %5118 = vmatpush3.bf16.xpose.msra.mxu0 %v2488_v26  ;;  %5135 = vmatprep.subr.bf16.mxu1 %v5473_v15 }
 0xd4e   :  { %5129 = vmatprep.subr.bf16.mxu0 %v5473_v15 }
 0xd54   :  { %5120 = vmatmul.mubr.msk.bf16.vlgmr.msra.gmra.mrb[48].mxu0 %vm320_vm0, %v6222_v43 }
 0xd55   :  { %5131 = vmatprep.mubr.msk.bf16.mxu0 %vm5474_vm1, %v5473_v15 }
 0xdbd   :  { %v2591_v52 = vpop.permute.xlu0 %2590 }
 0xdbe   :  { %v2594_v45 = vpop.permute.xlu1 %2593 }
 0xdbf   :  { %v2599_v46 = vsel %vm320_vm0, %v2594_v45, 0 }
 0xdc0   :  { %5130 = vmatpush3.bf16.xpose.msra.mxu0 %v2599_v46 }
 0xdc1   :  { %5141 = vmatprep.subr.bf16.mxu0 %v5473_v15 }
 0xdc7   :  { %5132 = vmatmul.mubr.msk.bf16.vlgmr.msra.gmra.mrb[52].mxu0 %vm320_vm0, %v2591_v52 }
 0xdc8   :  { %5149 = vmatprep.mubr.msk.bf16.mxu0 %vm5474_vm1, %v5473_v15  ;;  %5142 = vmatpush3.bf16.msra.mxu0 %v5328_v32 }
 0xdc9   :  { %5143 = vmatprep.subr.bf16.mxu0 %v5473_v15 }
 0xdcc   :  { %5144 = vmatpush3.bf16.msra.mxu0 %v5329_v34 }
 0xdcd   :  { %5145 = vmatprep.subr.bf16.mxu0 %v5473_v15 }
 0xdd0   :  { %5146 = vmatpush3.bf16.msra.mxu0 %v5330_v37 }
 0xdd1   :  { %5147 = vmatprep.subr.bf16.mxu0 %v5473_v15 }
 0xdd4   :  { %5148 = vmatpush3.bf16.msra.mxu0 %v5331_v55 }
 0xdd5   :  { %5165 = vmatprep.subr.bf16.mxu0 %v5473_v15 }
 0xe27   :  { %v2524_v53 = vpop.f32.mrb[48].mxu0 }
 0xe28   :  { %v2525_v54 = vadd.f32 %v2524_v53, %v5654_v36  ;;  %v5121_v56 = vpop.f32.mrb[49].mxu0  ;;  %v2902_v53 = vsel %vm479_vm3, %v2897_v19, 0 }
 0xe29   :  { %v2527_v58 = vpop.f32.mrb[50].mxu0 }
 0xe2a   :  { %v5122_v59 = vpop.f32.mrb[51].mxu0  ;;  %v2530_v13 = vsel %vm463_vm2, %v2525_v54, -inf }
 0xe2b   :  { %2531 = vmax.xlane.f32.xlu1 %v2530_v13 }
 0xe9a   :  { %v2635_v3 = vpop.f32.mrb[52].mxu0 }
 0xe9b   :  { %v2636_v60 = vadd.f32 %v2635_v3, %v5654_v36  ;;  %v5133_v61 = vpop.f32.mrb[53].mxu0  ;;  %v2843_v3 = vsel %vm320_vm0, %v2838_v18, 0 }
 0xe9c   :  { %v2638_v62 = vpop.f32.mrb[54].mxu0 }
 0xe9d   :  { %v5134_v0 = vpop.f32.mrb[55].mxu0  ;;  %v2641_v50 = vsel %vm463_vm2, %v2636_v60, -inf }
 0xe9e   :  { %2642 = vmax.xlane.f32.xlu0 %v2641_v50 }
 0xeb8   :  { %v2532_v1 = vpop.xlane.xlu1 %2531 }
 0xeb9   :  { %v2533_v7 = vsub.f32 %v2525_v54, %v2532_v1 }
 0xebb   :  { %v2534_v8 = vmul.f32 1.442695, %v2533_v7 }
 0xebd   :  { %5420 = vpow2.f32 %v2534_v8 }
 0xec7   :  { %v5421_v9 = vpop.eup %5420 }
 0xec8   :  { %v2536_v10 = vsel %vm463_vm2, %v5421_v9, 0.0 }
 0xec9   :  { %2537 = vadd.xlane.f32.xlu1 %v2536_v10 }
 0xeda   :  { %2654 = vrot.lane.b32.xlu1 %v6224_v44, %s5475_s0 }
 0xede   :  { %2945 = vrot.lane.b32.xlu1 %v2837_v4, %s5475_s0 }
 0xf2b   :  { %v2643_v36 = vpop.xlane.xlu0 %2642 }
 0xf2c   :  { %v2644_v11 = vsub.f32 %v2636_v60, %v2643_v36 }
 0xf2e   :  { %v2645_v14 = vmul.f32 1.442695, %v2644_v11 }
 0xf30   :  { %5422 = vpow2.f32 %v2645_v14 }
 0xf3a   :  { %v5423_v16 = vpop.eup %5422 }
 0xf3b   :  { %v2647_v17 = vsel %vm463_vm2, %v5423_v16, 0.0 }
 0xf3c   :  { %2648 = vadd.xlane.f32.xlu0 %v2647_v17 }
 0xf52   :  { %2947 = vrot.lane.b32.xlu0 %v2838_v18, %s5475_s0 }
 0xf56   :  { %v2538_v20 = vpop.xlane.xlu1 %2537 }
 0xf57   :  { %5424 = vrcp.f32 %v2538_v20 }
 0xf5a   :  { %v2655_v29 = vpop.permute.xlu1 %2654 }
 0xf5b   :  { %v2660_v31 = vsel %vm479_vm3, %v2655_v29, 0 }
 0xf5e   :  { %v2946_v62 = vpop.permute.xlu1 %2945 }
 0xf61   :  { %v5425_v23 = vpop.eup %5424 }
 0xf62   :  { %v2540_v28 = vmul.f32 %v5425_v23, %v5421_v9 }
 0xf64   :  { %v2541_v30 = vpack.c.bf16 %v2540_v28, %v2540_v28 }
 0xf66   :  { %5126 = vmatmul.mubr.msk.bf16.vlgmr.msra.gmra.mrb[48].mxu1 %vm463_vm2, %v2541_v30 }
 0xf67   :  { %5136 = vmatpush3.bf16.msra.mxu1 %v2660_v31  ;;  %5137 = vmatprep.mubr.msk.bf16.mxu1 %vm5474_vm1, %v5473_v15 }
 0xf68   :  { %5153 = vmatprep.subr.bf16.mxu1 %v5473_v15 }
 0xfc9   :  { %v2649_v27 = vpop.xlane.xlu0 %2648 }
 0xfca   :  { %5426 = vrcp.f32 %v2649_v27 }
 0xfcd   :  { %v2948_v60 = vpop.permute.xlu0 %2947 }
 0xfce   :  { %v2953_v61 = vsel %vm320_vm0, %v2948_v60, 0 }
 0xfd4   :  { %v5427_v39 = vpop.eup %5426 }
 0xfd5   :  { %v2651_v40 = vmul.f32 %v5427_v39, %v5423_v16 }
 0xfd7   :  { %v2652_v42 = vpack.c.bf16 %v2651_v40, %v2651_v40 }
 0xfd9   :  { %5138 = vmatmul.mubr.msk.bf16.vlgmr.msra.gmra.mrb[52].mxu1 %vm463_vm2, %v2652_v42 }
 0xfda   :  { %5154 = vmatpush3.bf16.msra.mxu1 %v6285_v41  ;;  %5161 = vmatprep.mubr.msk.bf16.mxu1 %vm5474_vm1, %v5473_v15 }
 0xfdb   :  { %5155 = vmatprep.subr.bf16.mxu1 %v5473_v15 }
 0xfde   :  { %5156 = vmatpush3.bf16.msra.mxu1 %v6292_v22 }
 0xfdf   :  { %5157 = vmatprep.subr.bf16.mxu1 %v5473_v15 }
 0xfe2   :  { %5158 = vmatpush3.bf16.msra.mxu1 %v6301_v24 }
 0xfe3   :  { %5159 = vmatprep.subr.bf16.mxu1 %v5473_v15 }
 0xfe6   :  { %5160 = vmatpush3.bf16.msra.mxu1 %v6308_v21 }
 0xfe7   :  { %5171 = vmatprep.subr.bf16.mxu1 %v5473_v15 }
0x1039   :  { %v2582_v25 = vpop.f32.mrb[48].mxu1 }
0x103a   :  { %v2588_v26 = vpack.c.bf16 %v2582_v25, %v2582_v25  ;;  %v5127_v45 = vpop.f32.mrb[49].mxu1 }
0x103b   :  { %v2585_v46 = vpop.f32.mrb[50].mxu1 }
0x103c   :  { %v5128_v52 = vpop.f32.mrb[51].mxu1  ;;  %5162 = vmatmul.mubr.msk.bf16.vlgmr.msra.gmra.mrb[56].mxu1 %vm320_vm0, %v2588_v26 }
0x103d   :  { %5172 = vmatpush3.bf16.msra.mxu1 %v2902_v53  ;;  %5173 = vmatprep.mubr.msk.bf16.mxu1 %vm5474_vm1, %v5473_v15 }
0x103e   :  { %5183 = vmatprep.subr.bf16.mxu1 %v5473_v15 }
0x10ac   :  { %v2696_v54 = vpop.f32.mrb[52].mxu1 }
0x10ad   :  { %v2702_v56 = vpack.c.bf16 %v2696_v54, %v2696_v54  ;;  %v5139_v58 = vpop.f32.mrb[53].mxu1 }
0x10ae   :  { %v2699_v59 = vpop.f32.mrb[54].mxu1 }
0x10af   :  { %v5140_v13 = vpop.f32.mrb[55].mxu1  ;;  %5150 = vmatmul.mubr.msk.bf16.vlgmr.msra.gmra.mrb[56].mxu0 %vm320_vm0, %v2702_v56 }
0x10b0   :  { %5166 = vmatpush3.bf16.xpose.msra.mxu0 %v2843_v3  ;;  %5167 = vmatprep.mubr.msk.bf16.mxu0 %vm5474_vm1, %v5473_v15 }
0x10b1   :  { %5177 = vmatprep.subr.bf16.mxu0 %v5473_v15 }
0x10b7   :  { %5168 = vmatmul.mubr.msk.bf16.vlgmr.msra.gmra.mrb[60].mxu0 %vm320_vm0, %v2837_v4 }
0x10b8   :  { %5178 = vmatpush3.bf16.xpose.msra.mxu0 %v2953_v61  ;;  %5179 = vmatprep.mubr.msk.bf16.mxu0 %vm5474_vm1, %v5473_v15 }
0x10b9   :  { %5189 = vmatprep.subr.bf16.mxu0 %v5473_v15 }
0x10bf   :  { %5180 = vmatmul.mubr.msk.bf16.vlgmr.msra.gmra.mrb[64].mxu0 %vm320_vm0, %v2946_v62 }
0x10c0   :  { %5190 = vmatpush3.bf16.msra.mxu0 %v5328_v32  ;;  %5197 = vmatprep.mubr.msk.bf16.mxu0 %vm5474_vm1, %v5473_v15 }
0x10c1   :  { %5191 = vmatprep.subr.bf16.mxu0 %v5473_v15 }
0x10c4   :  { %5192 = vmatpush3.bf16.msra.mxu0 %v5329_v34 }
0x10c5   :  { %5193 = vmatprep.subr.bf16.mxu0 %v5473_v15 }
0x10c8   :  { %5194 = vmatpush3.bf16.msra.mxu0 %v5330_v37 }
0x10c9   :  { %5195 = vmatprep.subr.bf16.mxu0 %v5473_v15 }
0x10cc   :  { %5196 = vmatpush3.bf16.msra.mxu0 %v5331_v55 }
0x110f   :  { %v2831_v43 = vpop.f32.mrb[56].mxu1 }
0x1110   :  { %v5163_v0 = vpop.f32.mrb[57].mxu1 }
0x1111   :  { %v2834_v50 = vpop.f32.mrb[58].mxu1 }
0x1112   :  { %v5164_v1 = vpop.f32.mrb[59].mxu1 }
0x1182   :  { %v2764_v7 = vpop.f32.mrb[56].mxu0 }
0x1183   :  { %v2832_v8 = vadd.f32 %v2831_v43, %v2764_v7  ;;  %v5151_v9 = vpop.f32.mrb[57].mxu0 }
0x1184   :  { %v2767_v10 = vpop.f32.mrb[58].mxu0 }
0x1185   :  { %v5152_v4 = vpop.f32.mrb[59].mxu0  ;;  %v3142_v26 = vadd.f32 %v2832_v8, %v6210_v38 }
0x1187   :  { %v3148_v45 = vsel %vm320_vm0, %v3142_v26, 0.0 }
0x118a   :  { %v2879_v36 = vpop.f32.mrb[60].mxu0 }
0x118b   :  { %v2880_v11 = vadd.f32 %v2879_v36, %v5773_v57  ;;  %v5169_v14 = vpop.f32.mrb[61].mxu0 }
0x118c   :  { %v2882_v16 = vpop.f32.mrb[62].mxu0 }
0x118d   :  { %v5170_v17 = vpop.f32.mrb[63].mxu0  ;;  %v2885_v18 = vsel %vm463_vm2, %v2880_v11, -inf }
0x118e   :  { %2886 = vmax.xlane.f32.xlu1 %v2885_v18 }
0x1192   :  { %v2989_v20 = vpop.f32.mrb[64].mxu0 }
0x1193   :  { %v2990_v23 = vadd.f32 %v2989_v20, %v5773_v57  ;;  %v5181_v28 = vpop.f32.mrb[65].mxu0 }
0x1194   :  { %v2992_v29 = vpop.f32.mrb[66].mxu0 }
0x1195   :  { %v5182_v30 = vpop.f32.mrb[67].mxu0  ;;  %v2995_v31 = vsel %vm463_vm2, %v2990_v23, -inf }
0x1196   :  { %2996 = vmax.xlane.f32.xlu0 %v2995_v31 }
0x121b   :  { %v2887_v32 = vpop.xlane.xlu1 %2886 }
0x121c   :  { %v2888_v34 = vsub.f32 %v2880_v11, %v2887_v32  ;;  %v4436_v32 = vld [vmem:[%s6753_s7 + $0x120] sm:$0xff] }
0x121e   :  { %v2889_v37 = vmul.f32 1.442695, %v2888_v34  ;;  %v4433_v34 = vld [vmem:[%s6753_s7 + $0x108] sm:$0xff] }
0x1220   :  { %5428 = vpow2.f32 %v2889_v37 }
0x1223   :  { %v2997_v55 = vpop.xlane.xlu0 %2996 }
0x1224   :  { %v2998_v27 = vsub.f32 %v2990_v23, %v2997_v55  ;;  %v4437_v55 = vld [vmem:[%s6753_s7 + $0x128] sm:$0xff] }
0x1226   :  { %v2999_v39 = vmul.f32 1.442695, %v2998_v27 }
0x1228   :  { %5430 = vpow2.f32 %v2999_v39  ;;  %v4633_v39 = vcombine.low %v4433_v34, %v4437_v55 }
0x122a   :  { %v5429_v40 = vpop.eup %5428 }
0x122b   :  { %v2891_v42 = vsel %vm463_vm2, %v5429_v40, 0.0 }
0x122c   :  { %2892 = vadd.xlane.f32.xlu0 %v2891_v42  ;;  %v4440_v42 = vld [vmem:[%s6753_s7 + $0x140] sm:$0xff] }
0x1232   :  { %v5431_v25 = vpop.eup %5430 }
0x1233   :  { %v3001_v57 = vsel %vm463_vm2, %v5431_v25, 0.0 }
0x1234   :  { %3002 = vadd.xlane.f32.xlu1 %v3001_v57  ;;  %v4441_v57 = vld [vmem:[%s6753_s7 + $0x148] sm:$0xff] }
0x1238   :  { %3149 = vadd.xlane.f32.xlu1 %v3148_v45  ;;  %v4445_v45 = vld [vmem:[%s6753_s7 + $0x168] sm:$0xff] }
0x1242   :  { %3007 = vrot.lane.b32.xlu0 %v2897_v19, %s5475_s0  ;;  %s5476_s0 = smov [#allocation2]  }
0x1243   :  { %s4248_s3 = sshll.u32 %s5476_s0, 4  ;;  %s4249_s3 = int_to_ptr.vmem [resolvable:$true] %s4248_s3 }
0x1244   :  { %s5448_s1 = scalar_lea.vmem %s4249_s3, 256  ;;  %p5453_p1 = scmp.lt.s32.totalorder %s4249_s3, %s4249_s3 }
0x1245   :  { %p5449_p0 = scmp.ne.s32.totalorder %s4249_s3, %s5448_s1  ;;  %p5454_p2 = scmp.lt.s32.totalorder %s5448_s1, %s5448_s1 }
0x1247   :  { %p5455_p3 = por %p5454_p2, %p5453_p1 }
0x1249   :  { %p5456_p4 = pnand %p5455_p3, %p5449_p0 }
0x12b9   :  { %v2893_v46 = vpop.xlane.xlu0 %2892 }
0x12ba   :  { %5432 = vrcp.f32 %v2893_v46 }
0x12bd   :  { %v3008_v56 = vpop.permute.xlu0 %3007 }
0x12be   :  { %v3013_v59 = vsel %vm479_vm3, %v3008_v56, 0  ;;  %v4452_v56 = vld [vmem:[%s6753_s7 + $0x1a0] sm:$0xff] }
0x12c1   :  { %v3003_v52 = vpop.xlane.xlu1 %3002 }
0x12c2   :  { %5434 = vrcp.f32 %v3003_v52  ;;  %v4641_v52 = vcombine.low %v4441_v57, %v4445_v45 }
0x12c4   :  { %v5433_v53 = vpop.eup %5432 }
0x12c5   :  { %v2895_v54 = vmul.f32 %v5433_v53, %v5429_v40  ;;  %v4634_v40 = vcombine.high %v4433_v34, %v4437_v55  ;;  %v4642_v53 = vcombine.high %v4441_v57, %v4445_v45  ;;  %v4442_v34 = vld [vmem:[%s6753_s7 + $0x150] sm:$0xff]  ;;  %v4455_v45 = vld [vmem:[%s6753_s7 + $0x1b8] sm:$0xff] }
0x12c6   :  { %v4454_v57 = vld [vmem:[%s6753_s7 + $0x1b0] sm:$0xff] }
0x12c7   :  { %v2896_v58 = vpack.c.bf16 %v2895_v54, %v2895_v54  ;;  %v4448_v54 = vld [vmem:[%s6753_s7 + $0x180] sm:$0xff] }
0x12c9   :  { %5174 = vmatmul.mubr.msk.bf16.vlgmr.msra.gmra.mrb[60].mxu1 %vm463_vm2, %v2896_v58  ;;  %v4449_v58 = vld [vmem:[%s6753_s7 + $0x188] sm:$0xff] }
0x12ca   :  { %5184 = vmatpush3.bf16.msra.mxu1 %v3013_v59  ;;  %5185 = vmatprep.mubr.msk.bf16.mxu1 %vm5474_vm1, %v5473_v15  ;;  %v4648_v59 = vcombine.high %v4448_v54, %v4452_v56 }
0x12cb   :  { %5201 = vmatprep.subr.bf16.mxu1 %v5473_v15 }
0x12cc   :  { %v5435_v38 = vpop.eup %5434 }
0x12cd   :  { %v3005_v44 = vmul.f32 %v5435_v38, %v5431_v25  ;;  %v4444_v25 = vld [vmem:[%s6753_s7 + $0x160] sm:$0xff]  ;;  %v4453_v38 = vld [vmem:[%s6753_s7 + $0x1a8] sm:$0xff] }
0x12ce   :  { %v4639_v46 = vcombine.low %v4440_v42, %v4444_v25 }
0x12cf   :  { %v3006_v19 = vpack.c.bf16 %v3005_v44, %v3005_v44  ;;  %v4647_v44 = vcombine.low %v4448_v54, %v4452_v56  ;;  %v4458_v56 = vld [vmem:[%s6753_s7 + $0x1d0] sm:$0xff] }
0x12d1   :  { %5186 = vmatmul.mubr.msk.bf16.vlgmr.msra.gmra.mrb[64].mxu1 %vm463_vm2, %v3006_v19  ;;  %v4649_v19 = vcombine.low %v4449_v58, %v4453_v38 }
0x12d2   :  { %5202 = vmatpush3.bf16.msra.mxu1 %v6285_v41  ;;  %5209 = vmatprep.mubr.msk.bf16.mxu1 %vm5474_vm1, %v5473_v15 }
0x12d3   :  { %5203 = vmatprep.subr.bf16.mxu1 %v5473_v15 }
0x12d6   :  { %5204 = vmatpush3.bf16.msra.mxu1 %v6292_v22 }
0x12d7   :  { %5205 = vmatprep.subr.bf16.mxu1 %v5473_v15 }
0x12da   :  { %5206 = vmatpush3.bf16.msra.mxu1 %v6301_v24 }
0x12db   :  { %5207 = vmatprep.subr.bf16.mxu1 %v5473_v15 }
0x12de   :  { %5208 = vmatpush3.bf16.msra.mxu1 %v6308_v21  ;;  %v3150_v21 = vpop.xlane.xlu1 %3149 }
0x12df   :  { %v3154_v8 = vmul.f32 0.015625, %v3150_v21  ;;  %3440 = vmatprep.subr.bf16.mxu1 %v4634_v40 }
0x12e1   :  { %v6369_v10 = vsub.f32 %v3142_v26, %v3154_v8  ;;  %v4640_v26 = vcombine.high %v4440_v42, %v4444_v25  ;;  %v4450_v25 = vld [vmem:[%s6753_s7 + $0x190] sm:$0xff] }
0x12e3   :  { %v3158_v18 = vmul.f32 %v6369_v10, %v6369_v10 }
0x12e5   :  { %v3160_v20 = vsel %vm320_vm0, %v3158_v18, 0.0 }
0x139c   :  { %v2938_v13 = vpop.f32.mrb[60].mxu1 }
0x139d   :  { %v2944_v3 = vpack.c.bf16 %v2938_v13, %v2938_v13  ;;  %v5175_v60 = vpop.f32.mrb[61].mxu1  ;;  %v4650_v13 = vcombine.high %v4449_v58, %v4453_v38  ;;  %v4462_v58 = vld [vmem:[%s6753_s7 + $0x1f0] sm:$0xff]  ;;  %v4463_v38 = vld [vmem:[%s6753_s7 + $0x1f8] sm:$0xff] }
0x139e   :  { %v2941_v61 = vpop.f32.mrb[62].mxu1  ;;  %v4460_v60 = vld [vmem:[%s6753_s7 + $0x1e0] sm:$0xff] }
0x139f   :  { %v5176_v41 = vpop.f32.mrb[63].mxu1  ;;  %5210 = vmatmul.mubr.msk.bf16.vlgmr.msra.gmra.mrb[68].mxu1 %vm320_vm0, %v2944_v3  ;;  %v4456_v3 = vld [vmem:[%s6753_s7 + $0x1c0] sm:$0xff]  ;;  %v4457_v61 = vld [vmem:[%s6753_s7 + $0x1c8] sm:$0xff] }
0x13a0   :  { %3472 = vmatprep.mubr.bf16.mxu1 %v5472_v2  ;;  %3441 = vmatpush1.bf16.msra.mxu1 %v4633_v39  ;;  %v4655_v41 = vcombine.low %v4456_v3, %v4460_v60 }
0x13a1   :  { %3442 = vmatprep.subr.bf16.mxu1 %v4642_v53  ;;  %v4652_v53 = vcombine.high %v4450_v25, %v4454_v57 }
0x13a4   :  { %v3049_v62 = vpop.f32.mrb[64].mxu1  ;;  %3443 = vmatpush1.bf16.msra.mxu1 %v4641_v52 }
0x13a5   :  { %v3055_v43 = vpack.c.bf16 %v3049_v62, %v3049_v62  ;;  %v5187_v22 = vpop.f32.mrb[65].mxu1  ;;  %3444 = vmatprep.subr.bf16.mxu1 %v4650_v13  ;;  %v4656_v62 = vcombine.high %v4456_v3, %v4460_v60  ;;  %v4660_v13 = vcombine.high %v4458_v56, %v4462_v58  ;;  %v4659_v60 = vcombine.low %v4458_v56, %v4462_v58 }
0x13a6   :  { %v3052_v0 = vpop.f32.mrb[66].mxu1  ;;  %v4434_v22 = vld [vmem:[%s6753_s7 + $0x110] sm:$0xff] }
0x13a7   :  { %v5188_v50 = vpop.f32.mrb[67].mxu1  ;;  %5198 = vmatmul.mubr.msk.bf16.vlgmr.msra.gmra.mrb[68].mxu0 %vm320_vm0, %v3055_v43  ;;  %v4461_v43 = vld [vmem:[%s6753_s7 + $0x1e8] sm:$0xff]  ;;  %v4438_v0 = vld [vmem:[%s6753_s7 + $0x130] sm:$0xff] }
0x13a8   :  { %3429 = vmatprep.mubr.bf16.mxu0 %v5472_v2  ;;  %3445 = vmatpush1.bf16.msra.mxu1 %v4649_v19  ;;  %v4657_v50 = vcombine.low %v4457_v61, %v4461_v43  ;;  %v4636_v21 = vcombine.high %v4434_v22, %v4438_v0 }
0x1472   :  { %v3136_v15 = vpop.f32.mrb[68].mxu1 }
0x1473   :  { %v5211_v24 = vpop.f32.mrb[69].mxu1 }
0x1474   :  { %v3139_v1 = vpop.f32.mrb[70].mxu1  ;;  %v4635_v24 = vcombine.low %v4434_v22, %v4438_v0  ;;  %v5336_v22 = vld [vmem:[%s6755_s9 + $0x248] sm:$0xff]  }
0x1475   :  { %v5212_v7 = vpop.f32.mrb[71].mxu1  ;;  %v4435_v1 = vld [vmem:[%s6753_s7 + $0x118] sm:$0xff]  ;;  %v5337_v0 = vld [vmem:[%s6755_s9 + $0x2c8] sm:$0xff]  }
0x1476   :  { %v4439_v7 = vld [vmem:[%s6753_s7 + $0x138] sm:$0xff] }
0x1477   :  { %v4637_v8 = vcombine.low %v4435_v1, %v4439_v7 }
0x147a   :  { %v3093_v9 = vpop.f32.mrb[68].mxu0 }
0x147b   :  { %v3137_v4 = vadd.f32 %v3136_v15, %v3093_v9  ;;  %v5199_v36 = vpop.f32.mrb[69].mxu0  ;;  %v4658_v15 = vcombine.high %v4457_v61, %v4461_v43  ;;  %v4638_v9 = vcombine.high %v4435_v1, %v4439_v7  ;;  %v5335_v43 = vld [vmem:[%s6755_s9 + $0x280] sm:$0xff]   ;;  %v5342_v1 = vld [vmem:[%s6755_s9 + $0x210] sm:$0xff]  }
0x147c   :  { %v3096_v11 = vpop.f32.mrb[70].mxu0  ;;  %v5343_v7 = vld [vmem:[%s6755_s9 + $0x290] sm:$0xff]  }
0x147d   :  { %v5200_v14 = vpop.f32.mrb[71].mxu0  ;;  %v3143_v16 = vadd.f32 %v3137_v4, %v6212_v12  ;;  %v4432_v12 = vld [vmem:[%s6753_s7 + $0x100] sm:$0xff]  ;;  %3446 = vmatprep.subr.bf16.mxu1 %v4658_v15  ;;  %v5339_v15 = vld [vmem:[%s6755_s9 + $0x288] sm:$0xff]  }
0x147e   :  { %v4632_v37 = vcombine.high %v4432_v12, %v4436_v32  ;;  %v4631_v27 = vcombine.low %v4432_v12, %v4436_v32  ;;  %3447 = vmatpush1.bf16.msra.mxu1 %v4657_v50  ;;  %v4629_v12 = vld [vmem:[%s6752_s6 + $0x1] ss:$0 sm:$0xff]  ;;  %v5338_v50 = vld [vmem:[%s6755_s9 + $0x208] sm:$0xff]  }
0x147f   :  { %v3151_v17 = vsel %vm320_vm0, %v3143_v16, 0.0  ;;  %3526 = vmatprep.subr.bf16.mxu1 %v4638_v9  ;;  %v5345_v9 = vld [vmem:[%s6755_s9 + $0x2d8] sm:$0xff]  }
0x1480   :  { %3152 = vadd.xlane.f32.xlu1 %v3151_v17  ;;  %3397 = vmatprep.subr.bf16.mxu0 %v4632_v37  ;;  %v4443_v37 = vld [vmem:[%s6753_s7 + $0x158] sm:$0xff] }
0x1481   :  { %3398 = vmatpush1.bf16.msra.mxu0 %v4631_v27 }
0x1482   :  { %3399 = vmatprep.subr.bf16.mxu0 %v4640_v26  ;;  %v4451_v26 = vld [vmem:[%s6753_s7 + $0x198] sm:$0xff] }
0x1483   :  { %v4654_v54 = vcombine.high %v4451_v26, %v4455_v45  ;;  %v4653_v19 = vcombine.low %v4451_v26, %v4455_v45 }
0x1484   :  { %3161 = vadd.xlane.f32.xlu1 %v3160_v20 }
0x1485   :  { %3400 = vmatpush1.bf16.msra.mxu0 %v4639_v46 }
0x1486   :  { %3401 = vmatprep.subr.bf16.mxu0 %v4648_v59  ;;  %v4459_v59 = vld [vmem:[%s6753_s7 + $0x1d8] sm:$0xff] }
0x1487   :  { %v4662_v3 = vcombine.high %v4459_v59, %v4463_v38  ;;  %v4661_v61 = vcombine.low %v4459_v59, %v4463_v38 }
0x1489   :  { %3402 = vmatpush1.bf16.msra.mxu0 %v4647_v44  ;;  %v4651_v44 = vcombine.low %v4450_v25, %v4454_v57 }
0x148a   :  { %3403 = vmatprep.subr.bf16.mxu0 %v4656_v62  ;;  %v5334_v62 = vld [vmem:[%s6755_s9 + $0x200] sm:$0xff]  }
0x148d   :  { %3404 = vmatpush1.bf16.msra.mxu0 %v4655_v41  ;;  %v5332_v41 = vld [vmem:[%s6755_s9 + $0x240] sm:$0xff]  }
0x148e   :  { %3483 = vmatprep.subr.bf16.mxu0 %v4636_v21  ;;  %v5341_v21 = vld [vmem:[%s6755_s9 + $0x2d0] sm:$0xff]  }
0x150d   :  { %v3153_v23 = vpop.xlane.xlu1 %3152 }
0x150e   :  { %v3155_v28 = vmul.f32 0.015625, %v3153_v23  ;;  %v4628_v23 = vld [vmem:[%s6751_s5 + $0x1] ss:$0 sm:$0xff] }
0x1510   :  { %v6376_v29 = vsub.f32 %v3143_v16, %v3155_v28 }
0x1511   :  { %v3162_v4 = vpop.xlane.xlu1 %3161 }
0x1512   :  { %v3159_v30 = vmul.f32 %v6376_v29, %v6376_v29  ;;  %v3166_v36 = vmul.f32 0.015625, %v3162_v4  ;;  %v5346_v4 = vld [vmem:[%s6755_s9 + $0x218] sm:$0xff]  }
0x1514   :  { %v3163_v31 = vsel %vm320_vm0, %v3159_v30, 0.0  ;;  %v3168_v11 = vadd.f32 1e-06, %v3166_v36  ;;  %v5347_v36 = vld [vmem:[%s6755_s9 + $0x298] sm:$0xff]  }
0x1515   :  { %3164 = vadd.xlane.f32.xlu1 %v3163_v31 }
0x1516   :  { %5436 = vrsqrt.f32 %v3168_v11  ;;  %v5348_v11 = vld [vmem:[%s6755_s9 + $0x260] sm:$0xff]  }
0x1520   :  { %v5437_v18 = vpop.eup %5436 }
0x1521   :  { %v3172_v20 = vmul.f32 %v5437_v18, %v6369_v10  ;;  %v4446_v10 = vld [vmem:[%s6753_s7 + $0x170] sm:$0xff]  ;;  %v5352_v18 = vld [vmem:[%s6755_s9 + $0x268] sm:$0xff]  }
0x1522   :  { %v4644_v40 = vcombine.high %v4442_v34, %v4446_v10  ;;  %v4643_v46 = vcombine.low %v4442_v34, %v4446_v10  ;;  %v5360_v34 = vld [vmem:[%s6755_s9 + $0x278] sm:$0xff]  }
0x1523   :  { %v3180_v30 = vmul.f32 %v4628_v23, %v3172_v20  ;;  %v5353_v20 = vld [vmem:[%s6755_s9 + $0x2e8] sm:$0xff]   ;;  %v5361_v10 = vld [vmem:[%s6755_s9 + $0x2f8] sm:$0xff]  }
0x1525   :  { %v6461_v55 = vadd.f32 %v4629_v12, %v3180_v30  ;;  %v5356_v30 = vld [vmem:[%s6755_s9 + $0x270] sm:$0xff]  }
0x15a2   :  { %v3165_v14 = vpop.xlane.xlu1 %3164 }
0x15a3   :  { %v3167_v16 = vmul.f32 0.015625, %v3165_v14  ;;  %v5349_v14 = vld [vmem:[%s6755_s9 + $0x2e0] sm:$0xff]  }
0x15a5   :  { %v3169_v17 = vadd.f32 1e-06, %v3167_v16  ;;  %v5350_v16 = vld [vmem:[%s6755_s9 + $0x220] sm:$0xff]  }
0x15a7   :  { %5438 = vrsqrt.f32 %v3169_v17  ;;  %v5351_v17 = vld [vmem:[%s6755_s9 + $0x2a0] sm:$0xff]  }
0x15b1   :  { %v5439_v28 = vpop.eup %5438 }
0x15b2   :  { %v3173_v31 = vmul.f32 %v5439_v28, %v6376_v29  ;;  %v4447_v29 = vld [vmem:[%s6753_s7 + $0x178] sm:$0xff]  ;;  %v5355_v28 = vld [vmem:[%s6755_s9 + $0x2a8] sm:$0xff]  }
0x15b3   :  { %v4646_v42 = vcombine.high %v4443_v37, %v4447_v29  ;;  %v4645_v52 = vcombine.low %v4443_v37, %v4447_v29  ;;  %v5362_v37 = vld [vmem:[%s6755_s9 + $0x238] sm:$0xff]  }
0x15b4   :  { %v3181_v32 = vmul.f32 %v4628_v23, %v3173_v31  ;;  %v5354_v23 = vld [vmem:[%s6755_s9 + $0x228] sm:$0xff]   ;;  %v5357_v31 = vld [vmem:[%s6755_s9 + $0x2f0] sm:$0xff]   ;;  %v5363_v29 = vld [vmem:[%s6755_s9 + $0x2b8] sm:$0xff]  }
0x15b6   :  { %v6463_v27 = vadd.f32 %v4629_v12, %v3181_v32  ;;  %v5358_v12 = vld [vmem:[%s6755_s9 + $0x230] sm:$0xff]  }
0x15b7   :  { %v5359_v32 = vld [vmem:[%s6755_s9 + $0x2b0] sm:$0xff]  }
0x15b8   :  { %v3190_v39 = vpack.c.bf16 %v6463_v27, %v6461_v55 }
0x15ba   :  { %4663 = vmatmul.mubr.msk.bf16.vlgmr.msra.gmra.mrb[72].mxu0 %vm320_vm0, %v3190_v39  ;;  %4664 = vmatmul.mubr.msk.bf16.vlgmr.msra.gmra.mrb[72].mxu1 %vm320_vm0, %v3190_v39 }
0x15bb   :  { %3484 = vmatpush1.bf16.msra.mxu0 %v4635_v24  ;;  %3527 = vmatpush1.bf16.msra.mxu1 %v4637_v8  ;;  %v5340_v24 = vld [vmem:[%s6755_s9 + $0x250] sm:$0xff]   ;;  %v5344_v8 = vld [vmem:[%s6755_s9 + $0x258] sm:$0xff]  }
0x15bc   :  { %3485 = vmatprep.subr.bf16.mxu0 %v4644_v40  ;;  %3528 = vmatprep.subr.bf16.mxu1 %v4646_v42  ;;  %v5365_v40 = vld [vmem:[%s6755_s9 + $0x3c0] sm:$0xff]   ;;  %v4630_v42 = vld [vmem:[%s6754_s8 + $0x8] sm:$0xff] }
0x15bd   :  { %3515 = vmatprep.mubr.bf16.mxu0 %v5472_v2  ;;  %3558 = vmatprep.mubr.bf16.mxu1 %v5472_v2  ;;  %v5333_v2 = vld [vmem:[%s6755_s9 + $0x2c0] sm:$0xff]   ;;  %v3197_v25 = vrot.slane %v4630_v42, %v5651_v35  ;;  %v3205_v57 = vrot.slane %v4630_v42, %v1143_v63  ;;  %v3201_v26 = vrot.slane %v4630_v42, %v1139_v5 }
0x15be   :  { %v3209_v45 = vrot.slane %v4630_v42, %v1147_v6 }
0x15bf   :  { %3486 = vmatpush1.bf16.msra.mxu0 %v4643_v46  ;;  %3529 = vmatpush1.bf16.msra.mxu1 %v4645_v52 }
0x15c0   :  { %3487 = vmatprep.subr.bf16.mxu0 %v4652_v53  ;;  %3530 = vmatprep.subr.bf16.mxu1 %v4654_v54 }
0x15c3   :  { %3488 = vmatpush1.bf16.msra.mxu0 %v4651_v44  ;;  %3531 = vmatpush1.bf16.msra.mxu1 %v4653_v19 }
0x15c4   :  { %3489 = vmatprep.subr.bf16.mxu0 %v4660_v13  ;;  %3532 = vmatprep.subr.bf16.mxu1 %v4662_v3 }
0x15c7   :  { %3490 = vmatpush1.bf16.msra.mxu0 %v4659_v60  ;;  %3533 = vmatpush1.bf16.msra.mxu1 %v4661_v61 }
0x15c8   :  { %4909 = vmatprep.subr.bf16.mxu0 %v5332_v41  ;;  %4931 = vmatprep.subr.bf16.mxu1 %v5333_v2 }
0x15ca   :  { %4665 = vmatmul.mubr.msk.bf16.vlgmr.msra.gmra.mrb[76].mxu0 %vm320_vm0, %v3190_v39  ;;  %4666 = vmatmul.mubr.msk.bf16.vlgmr.msra.gmra.mrb[76].mxu1 %vm320_vm0, %v3190_v39  ;;  %v5364_v39 = vld [vmem:[%s6755_s9 + $0x340] sm:$0xff]  }
0x15cb   :  { %4910 = vmatpush3.bf16.msra.mxu0 %v5334_v62  ;;  %4932 = vmatpush3.bf16.msra.mxu1 %v5335_v43 }
0x15cc   :  { %4911 = vmatprep.subr.bf16.mxu0 %v5336_v22  ;;  %4933 = vmatprep.subr.bf16.mxu1 %v5337_v0 }
0x15cf   :  { %4912 = vmatpush3.bf16.msra.mxu0 %v5338_v50  ;;  %4934 = vmatpush3.bf16.msra.mxu1 %v5339_v15 }
0x15d0   :  { %4913 = vmatprep.subr.bf16.mxu0 %v5340_v24  ;;  %4935 = vmatprep.subr.bf16.mxu1 %v5341_v21 }
0x15d3   :  { %4914 = vmatpush3.bf16.msra.mxu0 %v5342_v1  ;;  %4936 = vmatpush3.bf16.msra.mxu1 %v5343_v7  ;;  %v5366_v1 = vld [vmem:[%s6755_s9 + $0x300] sm:$0xff]  }
0x15d4   :  { %4915 = vmatprep.subr.bf16.mxu0 %v5344_v8  ;;  %4937 = vmatprep.subr.bf16.mxu1 %v5345_v9  ;;  %v5367_v7 = vld [vmem:[%s6755_s9 + $0x380] sm:$0xff]   ;;  %v5368_v8 = vld [vmem:[%s6755_s9 + $0x348] sm:$0xff]  }
0x15d5   :  { %v5369_v9 = vld [vmem:[%s6755_s9 + $0x3c8] sm:$0xff]  }
0x15d7   :  { %4916 = vmatpush3.bf16.msra.mxu0 %v5346_v4  ;;  %4938 = vmatpush3.bf16.msra.mxu1 %v5347_v36  ;;  %v5370_v4 = vld [vmem:[%s6755_s9 + $0x308] sm:$0xff]  }
0x15d8   :  { %4917 = vmatprep.subr.bf16.mxu0 %v5348_v11  ;;  %4939 = vmatprep.subr.bf16.mxu1 %v5349_v14  ;;  %v5371_v36 = vld [vmem:[%s6755_s9 + $0x388] sm:$0xff]   ;;  %v3213_v11 = vrot.slane %v4630_v42, %v1151_v47  ;;  %v3221_v14 = vrot.slane %v4630_v42, %v1159_v48  ;;  %v5374_v47 = vld [vmem:[%s6755_s9 + $0x310] sm:$0xff]  }
0x15d9   :  { %v5375_v48 = vld [vmem:[%s6755_s9 + $0x390] sm:$0xff]  }
0x15db   :  { %4918 = vmatpush3.bf16.msra.mxu0 %v5350_v16  ;;  %4940 = vmatpush3.bf16.msra.mxu1 %v5351_v17  ;;  %v5372_v16 = vld [vmem:[%s6755_s9 + $0x350] sm:$0xff]  }
0x15dc   :  { %4919 = vmatprep.subr.bf16.mxu0 %v5352_v18  ;;  %4941 = vmatprep.subr.bf16.mxu1 %v5353_v20  ;;  %v5373_v17 = vld [vmem:[%s6755_s9 + $0x3d0] sm:$0xff]   ;;  %v3217_v18 = vrot.slane %v4630_v42, %v1155_v49  ;;  %v3225_v20 = vrot.slane %v4630_v42, %v1163_v51  ;;  %v5377_v49 = vld [vmem:[%s6755_s9 + $0x3d8] sm:$0xff]  }
0x15df   :  { %4920 = vmatpush3.bf16.msra.mxu0 %v5354_v23  ;;  %4942 = vmatpush3.bf16.msra.mxu1 %v5355_v28 }
0x15e0   :  { %4921 = vmatprep.subr.bf16.mxu0 %v5356_v30  ;;  %4943 = vmatprep.subr.bf16.mxu1 %v5357_v31 }
0x15e3   :  { %4922 = vmatpush3.bf16.msra.mxu0 %v5358_v12  ;;  %4944 = vmatpush3.bf16.msra.mxu1 %v5359_v32 }
0x15e4   :  { %4923 = vmatprep.subr.bf16.mxu0 %v5360_v34  ;;  %4945 = vmatprep.subr.bf16.mxu1 %v5361_v10 }
0x15e7   :  { %4924 = vmatpush3.bf16.msra.mxu0 %v5362_v37  ;;  %4946 = vmatpush3.bf16.msra.mxu1 %v5363_v29 }
0x15e8   :  { %4953 = vmatprep.subr.bf16.mxu0 %v5364_v39  ;;  %4975 = vmatprep.subr.bf16.mxu1 %v5365_v40 }
0x168d   :  { %v3431_v46 = vpop.f32.mrb[72].mxu0  ;;  %v3474_v52 = vpop.f32.mrb[72].mxu1 }
0x168e   :  { %v3432_v53 = vadd.f32 %v3431_v46, %v3197_v25  ;;  %v3475_v54 = vadd.f32 %v3474_v52, %v3205_v57  ;;  %v3433_v56 = vpop.f32.mrb[73].mxu0  ;;  %v3476_v58 = vpop.f32.mrb[73].mxu1 }
0x168f   :  { %v3434_v59 = vadd.f32 %v3433_v56, %v3201_v26  ;;  %v3477_v38 = vadd.f32 %v3476_v58, %v3209_v45  ;;  %v3435_v44 = vpop.f32.mrb[74].mxu0  ;;  %v3478_v19 = vpop.f32.mrb[74].mxu1  ;;  %v5380_v56 = vld [vmem:[%s6755_s9 + $0x360] sm:$0xff]  }
0x1690   :  { %v3436_v35 = vadd.f32 %v3435_v44, %v3197_v25  ;;  %v3479_v13 = vadd.f32 %v3478_v19, %v3205_v57  ;;  %v3437_v3 = vpop.f32.mrb[75].mxu0  ;;  %v3480_v63 = vpop.f32.mrb[75].mxu1  ;;  %v3569_v5 = vmax.f32 %v3432_v53, 0.0  ;;  %v3571_v41 = vmax.f32 %v3475_v54, 0.0  ;;  %v5381_v58 = vld [vmem:[%s6755_s9 + $0x3e0] sm:$0xff]  }
0x1691   :  { %v3438_v60 = vadd.f32 %v3437_v3, %v3201_v26  ;;  %v3481_v61 = vadd.f32 %v3480_v63, %v3209_v45  ;;  %v3570_v62 = vmax.f32 %v3434_v59, 0.0  ;;  %v3572_v43 = vmax.f32 %v3477_v38, 0.0  ;;  %v5378_v26 = vld [vmem:[%s6755_s9 + $0x318] sm:$0xff]  }
0x1692   :  { %v3577_v2 = vmax.f32 %v3436_v35, 0.0  ;;  %v3579_v6 = vmax.f32 %v3479_v13, 0.0  ;;  %v5379_v45 = vld [vmem:[%s6755_s9 + $0x398] sm:$0xff]  }
0x1693   :  { %v3578_v22 = vmax.f32 %v3438_v60, 0.0  ;;  %v3580_v0 = vmax.f32 %v3481_v61, 0.0  ;;  %v5382_v60 = vld [vmem:[%s6755_s9 + $0x320] sm:$0xff]  }
0x1694   :  { %v3585_v50 = vpack.c.bf16 %v3577_v2, %v3569_v5  ;;  %v3587_v15 = vpack.c.bf16 %v3579_v6, %v3571_v41  ;;  %v5383_v61 = vld [vmem:[%s6755_s9 + $0x3a0] sm:$0xff]   ;;  %v5384_v5 = vld [vmem:[%s6755_s9 + $0x368] sm:$0xff]  }
0x1695   :  { %v3586_v24 = vpack.c.bf16 %v3578_v22, %v3570_v62  ;;  %v3588_v21 = vpack.c.bf16 %v3580_v0, %v3572_v43  ;;  %v5385_v41 = vld [vmem:[%s6755_s9 + $0x3e8] sm:$0xff]   ;;  %v5388_v62 = vld [vmem:[%s6755_s9 + $0x370] sm:$0xff]  }
0x1696   :  { %v5386_v2 = vld [vmem:[%s6755_s9 + $0x328] sm:$0xff]   ;;  %v5389_v43 = vld [vmem:[%s6755_s9 + $0x3f0] sm:$0xff]  }
0x1697   :  { %4017 = vmatprep.mubr.bf16.mxu0 %v3586_v24  ;;  %4058 = vmatprep.mubr.bf16.mxu1 %v3588_v21  ;;  %v5387_v6 = vld [vmem:[%s6755_s9 + $0x3a8] sm:$0xff]   ;;  %v5390_v22 = vld [vmem:[%s6755_s9 + $0x330] sm:$0xff]   ;;  %v5394_v24 = vld [vmem:[%s6755_s9 + $0x338] sm:$0xff]  }
0x1698   :  { %4018 = vmatmul.mubr.bf16.vlgmr.msra.gmra.mrb[80].mxu0 %v3585_v50  ;;  %4059 = vmatmul.mubr.bf16.vlgmr.msra.gmra.mrb[80].mxu1 %v3587_v15  ;;  %v5391_v0 = vld [vmem:[%s6755_s9 + $0x3b0] sm:$0xff]   ;;  %v5392_v50 = vld [vmem:[%s6755_s9 + $0x378] sm:$0xff]  }
0x1699   :  { %4954 = vmatpush3.bf16.msra.mxu0 %v5366_v1  ;;  %4976 = vmatpush3.bf16.msra.mxu1 %v5367_v7  ;;  %v5393_v15 = vld [vmem:[%s6755_s9 + $0x3f8] sm:$0xff]  }
0x169a   :  { %4955 = vmatprep.subr.bf16.mxu0 %v5368_v8  ;;  %4977 = vmatprep.subr.bf16.mxu1 %v5369_v9  ;;  %v5395_v21 = vld [vmem:[%s6755_s9 + $0x3b8] sm:$0xff]   ;;  %v4668_v8 = vld [vmem:[%s6756_s10 + $0x1] ss:$0 sm:$0xff] }
0x169d   :  { %v3517_v23 = vpop.f32.mrb[76].mxu0  ;;  %v3560_v28 = vpop.f32.mrb[76].mxu1  ;;  %4956 = vmatpush3.bf16.msra.mxu0 %v5370_v4  ;;  %4978 = vmatpush3.bf16.msra.mxu1 %v5371_v36 }
0x169e   :  { %v3518_v30 = vadd.f32 %v3517_v23, %v3213_v11  ;;  %v3561_v31 = vadd.f32 %v3560_v28, %v3221_v14  ;;  %v3519_v12 = vpop.f32.mrb[77].mxu0  ;;  %v3562_v32 = vpop.f32.mrb[77].mxu1  ;;  %4957 = vmatprep.subr.bf16.mxu0 %v5372_v16  ;;  %4979 = vmatprep.subr.bf16.mxu1 %v5373_v17 }
0x169f   :  { %v3520_v51 = vadd.f32 %v3519_v12, %v3217_v18  ;;  %v3563_v34 = vadd.f32 %v3562_v32, %v3225_v20  ;;  %v3521_v10 = vpop.f32.mrb[78].mxu0  ;;  %v3564_v37 = vpop.f32.mrb[78].mxu1 }
0x16a0   :  { %v3522_v29 = vadd.f32 %v3521_v10, %v3213_v11  ;;  %v3565_v39 = vadd.f32 %v3564_v37, %v3221_v14  ;;  %v3523_v40 = vpop.f32.mrb[79].mxu0  ;;  %v3566_v42 = vpop.f32.mrb[79].mxu1  ;;  %v3573_v46 = vmax.f32 %v3518_v30, 0.0  ;;  %v3575_v52 = vmax.f32 %v3561_v31, 0.0 }
0x16a1   :  { %v3524_v25 = vadd.f32 %v3523_v40, %v3217_v18  ;;  %v3567_v57 = vadd.f32 %v3566_v42, %v3225_v20  ;;  %4958 = vmatpush3.bf16.msra.mxu0 %v5374_v47  ;;  %4980 = vmatpush3.bf16.msra.mxu1 %v5375_v48  ;;  %v3574_v59 = vmax.f32 %v3520_v51, 0.0  ;;  %v3576_v38 = vmax.f32 %v3563_v34, 0.0 }
0x16a2   :  { %v3581_v53 = vmax.f32 %v3522_v29, 0.0  ;;  %v3583_v54 = vmax.f32 %v3565_v39, 0.0  ;;  %4959 = vmatprep.subr.bf16.mxu0 %v5376_v33  ;;  %4981 = vmatprep.subr.bf16.mxu1 %v5377_v49 }
0x16a3   :  { %v3582_v44 = vmax.f32 %v3524_v25, 0.0  ;;  %v3584_v19 = vmax.f32 %v3567_v57, 0.0 }
0x16a4   :  { %v3589_v35 = vpack.c.bf16 %v3581_v53, %v3573_v46  ;;  %v3591_v13 = vpack.c.bf16 %v3583_v54, %v3575_v52 }
0x16a5   :  { %v3590_v3 = vpack.c.bf16 %v3582_v44, %v3574_v59  ;;  %v3592_v63 = vpack.c.bf16 %v3584_v19, %v3576_v38  ;;  %4960 = vmatpush3.bf16.msra.mxu0 %v5378_v26  ;;  %4982 = vmatpush3.bf16.msra.mxu1 %v5379_v45 }
0x16a6   :  { %4961 = vmatprep.subr.bf16.mxu0 %v5380_v56  ;;  %4983 = vmatprep.subr.bf16.mxu1 %v5381_v58 }
0x16a7   :  { %4099 = vmatprep.mubr.bf16.mxu0 %v3590_v3  ;;  %4140 = vmatprep.mubr.bf16.mxu1 %v3592_v63 }
0x16a9   :  { %4962 = vmatpush3.bf16.msra.mxu0 %v5382_v60  ;;  %4984 = vmatpush3.bf16.msra.mxu1 %v5383_v61 }
0x16aa   :  { %4963 = vmatprep.subr.bf16.mxu0 %v5384_v5  ;;  %4985 = vmatprep.subr.bf16.mxu1 %v5385_v41 }
0x16ad   :  { %4964 = vmatpush3.bf16.msra.mxu0 %v5386_v2  ;;  %4986 = vmatpush3.bf16.msra.mxu1 %v5387_v6  ;;  %v4735_v2 = vld [vmem:[%s6757_s11 + $0x1] ss:$0 sm:$0xff] }
0x16ae   :  { %4965 = vmatprep.subr.bf16.mxu0 %v5388_v62  ;;  %4987 = vmatprep.subr.bf16.mxu1 %v5389_v43  ;;  %v4736_v62 = vld [vmem:[%s6758_s12 + $0x1] ss:$0 sm:$0xff] }
0x16b1   :  { %4966 = vmatpush3.bf16.msra.mxu0 %v5390_v22  ;;  %4988 = vmatpush3.bf16.msra.mxu1 %v5391_v0 }
0x16b2   :  { %4967 = vmatprep.subr.bf16.mxu0 %v5392_v50  ;;  %4989 = vmatprep.subr.bf16.mxu1 %v5393_v15 }
0x16b5   :  { %4968 = vmatpush3.bf16.msra.mxu0 %v5394_v24  ;;  %4990 = vmatpush3.bf16.msra.mxu1 %v5395_v21 }
0x16b8   :  { %4100 = vmatmul.mubr.bf16.vlgmr.msra.gmra.mrb[84].mxu0 %v3589_v35  ;;  %4141 = vmatmul.mubr.bf16.vlgmr.msra.gmra.mrb[84].mxu1 %v3591_v13 }
0x176b   :  { %v4925_v1 = vpop.f32.mrb[80].mxu0  ;;  %v4947_v7 = vpop.f32.mrb[80].mxu1 }
0x176c   :  { %v4926_v9 = vpop.f32.mrb[81].mxu0  ;;  %v4948_v4 = vpop.f32.mrb[81].mxu1 }
0x176d   :  { %v4927_v36 = vadd.f32 %v4926_v9, %v4925_v1  ;;  %v4949_v11 = vadd.f32 %v4948_v4, %v4947_v7  ;;  %v4928_v14 = vpop.f32.mrb[82].mxu0  ;;  %v4950_v16 = vpop.f32.mrb[82].mxu1 }
0x176e   :  { %v4929_v17 = vpop.f32.mrb[83].mxu0  ;;  %v4951_v18 = vpop.f32.mrb[83].mxu1 }
0x176f   :  { %v4020_v20 = vadd.f32 %v4927_v36, %v4668_v8  ;;  %v4930_v23 = vadd.f32 %v4929_v17, %v4928_v14  ;;  %v4952_v28 = vadd.f32 %v4951_v18, %v4950_v16 }
0x1771   :  { %v4061_v47 = vadd.f32 %v4949_v11, %v4020_v20  ;;  %v4023_v48 = vadd.f32 %v4930_v23, %v4668_v8 }
0x1773   :  { %v4064_v30 = vadd.f32 %v4952_v28, %v4023_v48 }
0x178b   :  { %v4969_v31 = vpop.f32.mrb[84].mxu0  ;;  %v4991_v12 = vpop.f32.mrb[84].mxu1 }
0x178c   :  { %v4970_v32 = vpop.f32.mrb[85].mxu0  ;;  %v4992_v33 = vpop.f32.mrb[85].mxu1 }
0x178d   :  { %v4971_v49 = vadd.f32 %v4970_v32, %v4969_v31  ;;  %v4993_v51 = vadd.f32 %v4992_v33, %v4991_v12  ;;  %v4972_v34 = vpop.f32.mrb[86].mxu0  ;;  %v4994_v10 = vpop.f32.mrb[86].mxu1  ;;  %v4737_v12 = vld [vmem:[%s6759_s13] ss:$0 sm:$0xff] }
0x178e   :  { %v4973_v37 = vpop.f32.mrb[87].mxu0  ;;  %v4995_v29 = vpop.f32.mrb[87].mxu1  ;;  %v4738_v33 = vld [vmem:[%s6760_s14] ss:$0 sm:$0xff] }
0x178f   :  { %v4102_v39 = vadd.f32 %v4971_v49, %v4061_v47  ;;  %v4974_v40 = vadd.f32 %v4973_v37, %v4972_v34  ;;  %v4996_v42 = vadd.f32 %v4995_v29, %v4994_v10 }
0x1791   :  { %v4143_v25 = vadd.f32 %v4993_v51, %v4102_v39  ;;  %v4105_v57 = vadd.f32 %v4974_v40, %v4064_v30 }
0x1793   :  { %v4146_v26 = vadd.f32 %v4996_v42, %v4105_v57  ;;  %v4149_v45 = vadd.f32 %v4143_v25, %v6461_v55 }
0x1795   :  { %v4155_v46 = vsel %vm320_vm0, %v4149_v45, 0.0  ;;  %v4150_v52 = vadd.f32 %v4146_v26, %v6463_v27 }
0x1796   :  { %4156 = vadd.xlane.f32.xlu1 %v4155_v46 }
0x1797   :  { %v4158_v53 = vsel %vm320_vm0, %v4150_v52, 0.0 }
0x179a   :  { %4159 = vadd.xlane.f32.xlu1 %v4158_v53 }
0x1823   :  { %v4157_v54 = vpop.xlane.xlu1 %4156 }
0x1824   :  { %v4161_v56 = vmul.f32 0.015625, %v4157_v54 }
0x1826   :  { %v4163_v58 = vsub.f32 %v4149_v45, %v4161_v56 }
0x1827   :  { %v4160_v59 = vpop.xlane.xlu1 %4159 }
0x1828   :  { %v4162_v38 = vmul.f32 0.015625, %v4160_v59  ;;  %v4165_v44 = vmul.f32 %v4163_v58, %v4163_v58 }
0x182a   :  { %v4164_v19 = vsub.f32 %v4150_v52, %v4162_v38  ;;  %v4167_v35 = vsel %vm320_vm0, %v4165_v44, 0.0 }
0x182b   :  { %4168 = vadd.xlane.f32.xlu0 %v4167_v35 }
0x182c   :  { %v4166_v13 = vmul.f32 %v4164_v19, %v4164_v19 }
0x182e   :  { %v4170_v55 = vsel %vm320_vm0, %v4166_v13, 0.0 }
0x182f   :  { %4171 = vadd.xlane.f32.xlu1 %v4170_v55 }
0x18b8   :  { %v4169_v3 = vpop.xlane.xlu0 %4168 }
0x18b9   :  { %v4173_v27 = vmul.f32 0.015625, %v4169_v3 }
0x18bb   :  { %v4175_v63 = vadd.f32 1e-06, %v4173_v27 }
0x18bc   :  { %v4172_v60 = vpop.xlane.xlu1 %4171 }
0x18bd   :  { %5440 = vrsqrt.f32 %v4175_v63  ;;  %v4174_v61 = vmul.f32 0.015625, %v4172_v60 }
0x18bf   :  { %v4176_v5 = vadd.f32 1e-06, %v4174_v61 }
0x18c1   :  { %5442 = vrsqrt.f32 %v4176_v5 }
0x18c7   :  { %v5441_v41 = vpop.eup %5440 }
0x18c8   :  { %v4179_v6 = vmul.f32 %v5441_v41, %v4163_v58 }
0x18ca   :  { %v4187_v43 = vmul.f32 %v4735_v2, %v4179_v6 }
0x18cb   :  { %v5443_v22 = vpop.eup %5442 }
0x18cc   :  { %v4195_v0 = vadd.f32 %v4736_v62, %v4187_v43  ;;  %v4180_v50 = vmul.f32 %v5443_v22, %v4164_v19 }
0x18ce   :  { %v4199_v15 = vsel %vm320_vm0, %v4195_v0, 0.0  ;;  %v4188_v24 = vmul.f32 %v4735_v2, %v4180_v50 }
0x18cf   :  { %4200 = vadd.xlane.f32.xlu1 %v4199_v15 }
0x18d0   :  { %v4196_v21 = vadd.f32 %v4736_v62, %v4188_v24 }
0x18d2   :  { %v4202_v1 = vsel %vm320_vm0, %v4196_v21, 0.0 }
0x18d3   :  { %4203 = vadd.xlane.f32.xlu1 %v4202_v1 }
0x195c   :  { %v4201_v7 = vpop.xlane.xlu1 %4200 }
0x195d   :  { %v4205_v8 = vmul.f32 0.015625, %v4201_v7 }
0x195f   :  { %v4207_v9 = vsub.f32 %v4195_v0, %v4205_v8 }
0x1960   :  { %v4204_v4 = vpop.xlane.xlu1 %4203 }
0x1961   :  { %v4206_v36 = vmul.f32 0.015625, %v4204_v4  ;;  %v4209_v11 = vmul.f32 %v4207_v9, %v4207_v9 }
0x1963   :  { %v4208_v14 = vsub.f32 %v4196_v21, %v4206_v36  ;;  %v4211_v16 = vsel %vm320_vm0, %v4209_v11, 0.0 }
0x1964   :  { %4212 = vadd.xlane.f32.xlu1 %v4211_v16 }
0x1965   :  { %v4210_v17 = vmul.f32 %v4208_v14, %v4208_v14 }
0x1967   :  { %v4214_v18 = vsel %vm320_vm0, %v4210_v17, 0.0 }
0x1968   :  { %4215 = vadd.xlane.f32.xlu1 %v4214_v18 }
0x19f1   :  { %v4213_v20 = vpop.xlane.xlu1 %4212 }
0x19f2   :  { %v4217_v23 = vmul.f32 0.015625, %v4213_v20 }
0x19f4   :  { %v4219_v28 = vadd.f32 1e-06, %v4217_v23 }
0x19f5   :  { %v4216_v47 = vpop.xlane.xlu1 %4215 }
0x19f6   :  { %5444 = vrsqrt.f32 %v4219_v28  ;;  %v4218_v48 = vmul.f32 0.015625, %v4216_v47 }
0x19f8   :  { %v4220_v30 = vadd.f32 1e-06, %v4218_v48 }
0x19fa   :  { %5446 = vrsqrt.f32 %v4220_v30 }
0x1a00   :  { %v5445_v31 = vpop.eup %5444 }
0x1a01   :  { %v4223_v32 = vmul.f32 %v5445_v31, %v4207_v9 }
0x1a03   :  { %v4231_v49 = vmul.f32 %v4737_v12, %v4223_v32 }
0x1a04   :  { %v5447_v51 = vpop.eup %5446 }
0x1a05   :  { %v4224_v34 = vmul.f32 %v5447_v51, %v4208_v14  ;;  %v4239_v10 = vadd.f32 %v4738_v33, %v4231_v49 }
0x1a07   :  { %v4232_v37 = vmul.f32 %v4737_v12, %v4224_v34  ;;  %4241 = vst.msk [vmem:[#allocation2] sm:$0xff] %vm320_vm0, %v4239_v10 }
0x1a09   :  { %v4240_v29 = vadd.f32 %v4738_v33, %v4232_v37 }
0x1a0b   :  { %4242 = vst.msk [vmem:[#allocation2 + $0x8] sm:$0xff] %vm320_vm0, %v4240_v29 }
0x1a0c   :  { %5459 = shalt.err (!%p5456_p4)
}
0x1a0d   :  { %s5460_s25 = scalar_lea.hbm %s6761_s15, 256 }
0x1a0e   :  { %p5461_p5 = scmp.ne.s32.totalorder %s6761_s15, %s5460_s25  ;;  %p5464_p6 = scmp.lt.u32.totalorder %s5460_s25, %s6761_s15 }
0x1a10   :  { %p5466_p7 = pnand %p5464_p6, %p5461_p5 }
0x1a12   :  { %5469 = shalt.err (!%p5466_p7)
}
0x1a13   :  { %s5477_s28 = smov 128   ;;  %s5478_s29 = smov 8  }
0x1a14   :  { %4254 = dma.vmem_to_hbm [thread:$0]  %s4249_s3, 256, %s6761_s15, [#allocation3], %s5477_s28, %s5477_s28, %s5478_s29  }
0x1a15   :  { %5470 = dma.done.wait [#allocation3], 256  }
0x1a16   :  { %5471 = vsyncadd [#allocation3], 4294967040 }
0x1a17   :  { %4258 = vsyncpa [#allocation3], 1 }

</bundles_post_ra>
